<compile_context>
chip_gen: v6e
topology: v6e:2x2x1
jax: 0.10.0
libtpu: 0.0.40
codegen_flags: <defaults>
</compile_context>

<pallas_src>
import jax
import jax.numpy as jnp
from jax import lax
from jax.experimental import pallas as pl
from jax.experimental.pallas import tpu as pltpu

LANE = 128
SUB = 8
BT_MAX = 128  # fill the MXU M dimension (128 rows on v5e) before splitting batch


def _round_up(x, m):
    return ((x + m - 1) // m) * m


def make_gru_kernel(n_layers: int, seq_len: int, b_pad: int, h_pad: int, unroll):
    """Builds a Pallas kernel closure for fixed (n_layers, T, Bt, Hp)."""
    bf16 = jnp.bfloat16

    def kernel(*args):
        n_in = 2 + 5 * n_layers + 2
        x_ref, h0_ref = args[0], args[1]
        layer_refs = args[2:2 + 5 * n_layers]
        fcw_ref, fcb_ref = args[2 + 5 * n_layers], args[3 + 5 * n_layers]
        out_ref, hout_ref = args[n_in], args[n_in + 1]
        seq_ref = args[n_in + 2]   # VMEM (T*Bt, Hp)   : current layer's outputs
        gi_ref = args[n_in + 3]    # VMEM (T*Bt, 3*Hp) : hoisted input projections

        h_final = None
        for l in range(n_layers):
            wih_ref, whhrz_ref, whhn_ref, bih_ref, bhhn_ref = \
                layer_refs[5 * l:5 * l + 5]
            last_layer = (l == n_layers - 1)

            # (1) Whole-sequence input projection, one bf16 MXU matmul, folded
            #     bias (b_ih + b_hh[r,z]) added once.
            layer_in = x_ref[...] if l == 0 else seq_ref[...]
            gi_ref[...] = (
                jnp.dot(layer_in.astype(bf16), wih_ref[...],
                        preferred_element_type=jnp.float32)
                + bih_ref[...]
            )

            # (2) Hoist loop-invariant weights / broadcast bias out of the loop.
            whh_rz = whhrz_ref[...]                                # (Hp, 2Hp) bf16
            whh_n = whhn_ref[...]                                  # (Hp,  Hp) bf16
            bhh_n = jnp.broadcast_to(bhhn_ref[...], (b_pad, h_pad))  # (Bt, Hp) f32
            h0 = h0_ref[l]                                         # (Bt, Hp) f32

            def step(t, h, whh_rz=whh_rz, whh_n=whh_n, bhh_n=bhh_n,
                     last=last_layer):
                row = pl.multiple_of(t * b_pad, b_pad)
                gi = gi_ref[pl.ds(row, b_pad), :]                  # (Bt, 3Hp)
                h16 = h.astype(bf16)
                # Split hidden matmul: r/z sigmoids (EUP) can start as soon as
                # gh_rz pops, overlapping with the n-gate MXU pass.
                gh_rz = jnp.dot(h16, whh_rz, preferred_element_type=jnp.float32)
                gh_n = jnp.dot(h16, whh_n,
                               preferred_element_type=jnp.float32) + bhh_n
                r = jax.nn.sigmoid(gi[:, 0:h_pad] + gh_rz[:, 0:h_pad])
                z = jax.nn.sigmoid(gi[:, h_pad:2 * h_pad]
                                   + gh_rz[:, h_pad:2 * h_pad])
                n = jnp.tanh(gi[:, 2 * h_pad:3 * h_pad] + r * gh_n)
                h_new = (1.0 - z) * n + z * h
                if not last:
                    # Lane-dense (8,128)-aligned store feeding the next layer.
                    # Skipped on the last layer: the FC head only needs h_final.
                    seq_ref[pl.ds(row, b_pad), :] = h_new
                return h_new

            h_final = lax.fori_loop(0, seq_len, step, h0, unroll=unroll)
            hout_ref[l] = h_final

        # fc(relu(out[:, -1])) : last-layer output at the final timestep is
        # exactly h_final.  Output lane-padded to 128 -> unmasked store.
        o = jnp.maximum(h_final, 0.0)
        out_ref[...] = (
            jnp.dot(o, fcw_ref[...], preferred_element_type=jnp.float32)
            + fcb_ref[...]
        )

    return kernel


def prepare_gru_params(layer_params, fc_w, fc_b, vocab_size, hidden_dim):
    """One-time repack of PyTorch-layout GRU/Linear params into kernel layout."""
    H, V = hidden_dim, vocab_size
    Hp = _round_up(H, LANE)
    Vp = _round_up(V, LANE)
    f32, bf16 = jnp.float32, jnp.bfloat16

    prepared = []
    for l, (w_ih, w_hh, b_ih, b_hh) in enumerate(layer_params):
        in_dim = V if l == 0 else H
        in_p = Vp if l == 0 else Hp

        # PyTorch stores w_ih as (3H, in) with gates stacked (r, z, n).
        w = jnp.transpose(w_ih.astype(f32).reshape(3, H, in_dim), (0, 2, 1))
        w = jnp.pad(w, ((0, 0), (0, in_p - in_dim), (0, Hp - H)))
        wih_f = jnp.concatenate([w[0], w[1], w[2]], axis=1).astype(bf16)  # (in_p,3Hp)

        u = jnp.transpose(w_hh.astype(f32).reshape(3, H, H), (0, 2, 1))
        u = jnp.pad(u, ((0, 0), (0, Hp - H), (0, Hp - H)))
        whh_rz = jnp.concatenate([u[0], u[1]], axis=1).astype(bf16)       # (Hp,2Hp)
        whh_n = u[2].astype(bf16)                                         # (Hp, Hp)

        # Fold b_hh[r], b_hh[z] into b_ih (they add linearly); b_hh[n] stays
        # separate because it is multiplied by r inside the n-gate.
        bih3 = b_ih.astype(f32).reshape(3, H)
        bhh3 = b_hh.astype(f32).reshape(3, H)
        bih3 = bih3.at[0].add(bhh3[0]).at[1].add(bhh3[1])
        bih_f = jnp.pad(bih3, ((0, 0), (0, Hp - H))).reshape(1, 3 * Hp)   # f32
        bhhn_f = jnp.pad(bhh3[2:3], ((0, 0), (0, Hp - H)))                # (1, Hp)

        prepared += [wih_f, whh_rz, whh_n, bih_f, bhhn_f]

    # FC head, lane-padded: only column 0 carries the real output.  Kept f32
    # (runs once per call; preserves output precision).
    fcw_p = jnp.zeros((Hp, LANE), f32).at[:H, 0].set(fc_w.astype(f32).reshape(H))
    fcb_p = jnp.zeros((1, LANE), f32).at[0, 0].set(fc_b.astype(f32).reshape(-1)[0])
    prepared += [fcw_p, fcb_p]
    return tuple(prepared)


def gru_net_forward(x, h0, prepared):
    """x: (B, T, V) batch_first, h0: (L, B, H). Returns (out (B,1), h (L,B,H))."""
    B, T, V = x.shape
    L, _, H = h0.shape
    Hp = _round_up(H, LANE)
    Vp = _round_up(V, LANE)
    Bt = min(_round_up(B, SUB), BT_MAX)     # per-tile batch (fills MXU M)
    num_bt = pl.cdiv(B, Bt)                 # grid axis ("parallel" -> megacore)
    Bp_total = num_bt * Bt
    f32 = jnp.float32

    # ---- repack activations into padded, batch-tiled kernel layout ----------
    xt = jnp.transpose(x.astype(f32), (1, 0, 2))                       # (T,B,V)
    xt = jnp.pad(xt, ((0, 0), (0, Bp_total - B), (0, Vp - V)))
    x_g = (xt.reshape(T, num_bt, Bt, Vp)
             .transpose(1, 0, 2, 3)
             .reshape(num_bt, T * Bt, Vp))                             # (nb,T*Bt,Vp)

    h0p = jnp.pad(h0.astype(f32), ((0, 0), (0, Bp_total - B), (0, Hp - H)))
    h0_g = h0p.reshape(L, num_bt, Bt, Hp).transpose(1, 0, 2, 3)        # (nb,L,Bt,Hp)

    layer_arrays = prepared[:-2]
    fcw_p, fcb_p = prepared[-2], prepared[-1]
    kernel_inputs = [x_g, h0_g, *layer_arrays, fcw_p, fcb_p]

    def resident_spec(arr):
        nd = arr.ndim
        return pl.BlockSpec(arr.shape, lambda b, nd=nd: (0,) * nd)

    in_specs = (
        [pl.BlockSpec((None, T * Bt, Vp), lambda b: (b, 0, 0)),
         pl.BlockSpec((None, L, Bt, Hp), lambda b: (b, 0, 0, 0))]
        + [resident_spec(a) for a in layer_arrays]
        + [resident_spec(fcw_p), resident_spec(fcb_p)]
    )
    out_specs = (pl.BlockSpec((None, Bt, LANE), lambda b: (b, 0, 0)),
                 pl.BlockSpec((None, L, Bt, Hp), lambda b: (b, 0, 0, 0)))

    # Explicit scoped-VMEM budget: per-block inputs/outputs + scratches, with
    # headroom for double-buffering (defaults are 16 MiB on v5e / 32 MiB v6e+).
    def nbytes(a):
        return a.size * a.dtype.itemsize
    block_bytes = (T * Bt * Vp * 4 + L * Bt * Hp * 4          # x, h0 blocks
                   + sum(nbytes(a) for a in layer_arrays)
                   + nbytes(fcw_p) + nbytes(fcb_p)
                   + Bt * LANE * 4 + L * Bt * Hp * 4           # outputs
                   + T * Bt * Hp * 4 + T * Bt * 3 * Hp * 4)    # scratches
    vmem_limit = int(min(100 * 1024 * 1024, max(32 * 1024 * 1024, 3 * block_bytes)))

    # Full unroll only for short fixed T; cap for long sequences to avoid
    # vreg-spill blowup.
    unroll = True if T <= 8 else 8

    kernel = make_gru_kernel(L, T, Bt, Hp, unroll)
    out_p, hout_p = pl.pallas_call(
        kernel,
        out_shape=(jax.ShapeDtypeStruct((num_bt, Bt, LANE), f32),
                   jax.ShapeDtypeStruct((num_bt, L, Bt, Hp), f32)),
        grid=(num_bt,),
        in_specs=in_specs,
        out_specs=out_specs,
        scratch_shapes=[pltpu.VMEM((T * Bt, Hp), f32),
                        pltpu.VMEM((T * Bt, 3 * Hp), f32)],
        compiler_params=pltpu.CompilerParams(
            dimension_semantics=("parallel",),
            vmem_limit_bytes=vmem_limit),
    )(*kernel_inputs)

    out = out_p.reshape(num_bt * Bt, LANE)[:B, :1]
    h_out = (hout_p.transpose(1, 0, 2, 3)
                   .reshape(L, num_bt * Bt, Hp)[:, :B, :H])
    return out, h_out


def gru_net_reference(x, h0, layer_params, fc_w, fc_b):
    """Pure-JAX f32 reference matching torch.nn.GRU (eval) + Linear + ReLU."""
    L = h0.shape[0]
    inp = x
    h_finals = []
    for l in range(L):
        w_ih, w_hh, b_ih, b_hh = layer_params[l]
        h = h0[l]
        outs = []
        for t in range(x.shape[1]):
            x_t = inp[:, t]
            gi = x_t @ w_ih.T + b_ih
            gh = h @ w_hh.T + b_hh
            i_r, i_z, i_n = jnp.split(gi, 3, axis=1)
            h_r, h_z, h_n = jnp.split(gh, 3, axis=1)
            r = jax.nn.sigmoid(i_r + h_r)
            z = jax.nn.sigmoid(i_z + h_z)
            n = jnp.tanh(i_n + r * h_n)
            h = (1.0 - z) * n + z * h
            outs.append(h)
        inp = jnp.stack(outs, axis=1)
        h_finals.append(h)
    out = jax.nn.relu(inp[:, -1]) @ fc_w.T + fc_b
    return out, jnp.stack(h_finals)


if __name__ == "__main__":
    # Small shapes implied by the module: x is (batch, seq, vocab_size).
    batch, seq, vocab_size, hidden_dim, n_layers = 4, 8, 16, 32, 2

    key = jax.random.PRNGKey(0)
    keys = jax.random.split(key, 4 * n_layers + 4)
    scale = 1.0 / jnp.sqrt(hidden_dim)

    layer_params = []
    k_idx = 0
    for l in range(n_layers):
        in_dim = vocab_size if l == 0 else hidden_dim
        w_ih = jax.random.uniform(keys[k_idx], (3 * hidden_dim, in_dim),
                                  minval=-scale, maxval=scale); k_idx += 1
        w_hh = jax.random.uniform(keys[k_idx], (3 * hidden_dim, hidden_dim),
                                  minval=-scale, maxval=scale); k_idx += 1
        b_ih = jax.random.uniform(keys[k_idx], (3 * hidden_dim,),
                                  minval=-scale, maxval=scale); k_idx += 1
        b_hh = jax.random.uniform(keys[k_idx], (3 * hidden_dim,),
                                  minval=-scale, maxval=scale); k_idx += 1
        layer_params.append((w_ih, w_hh, b_ih, b_hh))

    fc_w = jax.random.uniform(keys[k_idx], (1, hidden_dim),
                              minval=-scale, maxval=scale); k_idx += 1
    fc_b = jax.random.uniform(keys[k_idx], (1,),
                              minval=-scale, maxval=scale); k_idx += 1

    x = jax.random.normal(keys[k_idx], (batch, seq, vocab_size),
                          dtype=jnp.float32); k_idx += 1
    h0 = jnp.zeros((n_layers, batch, hidden_dim), dtype=jnp.float32)  # init_hidden

    # One-time parameter repack (hoisted out of the per-call wrapper).
    prepared = prepare_gru_params(layer_params, fc_w, fc_b,
                                  vocab_size, hidden_dim)

    out, h_out = gru_net_forward(x, h0, prepared)
    out = jax.block_until_ready(out)
    h_out = jax.block_until_ready(h_out)

    out_ref, h_ref = gru_net_reference(x, h0, layer_params, fc_w, fc_b)
    assert out.shape == (batch, 1) and h_out.shape == (n_layers, batch, hidden_dim)
    # Tolerances loosened vs pure-f32: MXU operands (weights + activations at
    # the dot) are bf16; gate math and accumulation remain f32.
    assert jnp.allclose(out, out_ref, rtol=2e-2, atol=2e-2)
    assert jnp.allclose(h_out, h_ref, rtol=2e-2, atol=2e-2)

    print("KERNEL_OK")
</pallas_src>

<mosaic_0001>
module attributes {stable_mosaic.version = 11 : i64} {
  func.func @kernel(%arg0: i32, %arg1: memref<1x64x128xf32, #tpu.memory_space<vmem>>, %arg2: memref<1x2x8x128xf32, #tpu.memory_space<vmem>>, %arg3: memref<128x384xbf16, #tpu.memory_space<vmem>>, %arg4: memref<128x256xbf16, #tpu.memory_space<vmem>>, %arg5: memref<128x128xbf16, #tpu.memory_space<vmem>>, %arg6: memref<1x384xf32, #tpu.memory_space<vmem>>, %arg7: memref<1x128xf32, #tpu.memory_space<vmem>>, %arg8: memref<128x384xbf16, #tpu.memory_space<vmem>>, %arg9: memref<128x256xbf16, #tpu.memory_space<vmem>>, %arg10: memref<128x128xbf16, #tpu.memory_space<vmem>>, %arg11: memref<1x384xf32, #tpu.memory_space<vmem>>, %arg12: memref<1x128xf32, #tpu.memory_space<vmem>>, %arg13: memref<128x128xf32, #tpu.memory_space<vmem>>, %arg14: memref<1x128xf32, #tpu.memory_space<vmem>>, %arg15: memref<1x8x128xf32, #tpu.memory_space<vmem>>, %arg16: memref<1x2x8x128xf32, #tpu.memory_space<vmem>>, %arg17: memref<64x128xf32, #tpu.memory_space<vmem>>, %arg18: memref<64x384xf32, #tpu.memory_space<vmem>>) attributes {dimension_semantics = [#tpu.dimension_semantics<parallel>], iteration_bounds = array<i64: 1>, scalar_prefetch = 0 : i64, scratch_operands = 2 : i64, tpu.core_type = #tpu.core_type<tc>, window_params = [{transform_indices = @transform_0, window_bounds = array<i64: 1, 64, 128>}, {transform_indices = @transform_1, window_bounds = array<i64: 1, 2, 8, 128>}, {pipeline_mode = #tpu.pipeline_mode<synchronous>, transform_indices = @transform_2, window_bounds = array<i64: 128, 384>}, {pipeline_mode = #tpu.pipeline_mode<synchronous>, transform_indices = @transform_3, window_bounds = array<i64: 128, 256>}, {pipeline_mode = #tpu.pipeline_mode<synchronous>, transform_indices = @transform_4, window_bounds = array<i64: 128, 128>}, {pipeline_mode = #tpu.pipeline_mode<synchronous>, transform_indices = @transform_5, window_bounds = array<i64: 1, 384>}, {pipeline_mode = #tpu.pipeline_mode<synchronous>, transform_indices = @transform_6, window_bounds = array<i64: 1, 128>}, {pipeline_mode = #tpu.pipeline_mode<synchronous>, transform_indices = @transform_7, window_bounds = array<i64: 128, 384>}, {pipeline_mode = #tpu.pipeline_mode<synchronous>, transform_indices = @transform_8, window_bounds = array<i64: 128, 256>}, {pipeline_mode = #tpu.pipeline_mode<synchronous>, transform_indices = @transform_9, window_bounds = array<i64: 128, 128>}, {pipeline_mode = #tpu.pipeline_mode<synchronous>, transform_indices = @transform_10, window_bounds = array<i64: 1, 384>}, {pipeline_mode = #tpu.pipeline_mode<synchronous>, transform_indices = @transform_11, window_bounds = array<i64: 1, 128>}, {pipeline_mode = #tpu.pipeline_mode<synchronous>, transform_indices = @transform_12, window_bounds = array<i64: 128, 128>}, {pipeline_mode = #tpu.pipeline_mode<synchronous>, transform_indices = @transform_13, window_bounds = array<i64: 1, 128>}, {transform_indices = @transform_14, window_bounds = array<i64: 1, 8, 128>}, {transform_indices = @transform_15, window_bounds = array<i64: 1, 2, 8, 128>}]} {
    %c0 = arith.constant 0 : index
    %c0_0 = arith.constant 0 : index
    %c0_1 = arith.constant 0 : index
    %0 = vector.load %arg1[%c0, %c0_0, %c0_1] : memref<1x64x128xf32, #tpu.memory_space<vmem>>, vector<1x64x128xf32>
    %1 = vector.shape_cast %0 : vector<1x64x128xf32> to vector<64x128xf32>
    %2 = arith.truncf %1 : vector<64x128xf32> to vector<64x128xbf16>
    %c0_2 = arith.constant 0 : index
    %c0_3 = arith.constant 0 : index
    %3 = vector.load %arg3[%c0_2, %c0_3] : memref<128x384xbf16, #tpu.memory_space<vmem>>, vector<128x384xbf16>
    %cst = arith.constant dense<0.000000e+00> : vector<64x384xf32>
    %4 = tpu.matmul %2, %3, %cst {dimension_numbers = #tpu.dot_dimension_numbers<[1], [0], [0], [1], [0, 0, 1, 1], [], []>} : vector<64x128xbf16>, vector<128x384xbf16>, vector<64x384xf32> -> vector<64x384xf32>
    %c0_4 = arith.constant 0 : index
    %c0_5 = arith.constant 0 : index
    %5 = vector.load %arg6[%c0_4, %c0_5] : memref<1x384xf32, #tpu.memory_space<vmem>>, vector<1x384xf32>
    %6 = vector.broadcast %5 : vector<1x384xf32> to vector<64x384xf32>
    %7 = arith.addf %4, %6 : vector<64x384xf32>
    %c0_6 = arith.constant 0 : index
    %c0_7 = arith.constant 0 : index
    %8 = vector.load %arg18[%c0_6, %c0_7] : memref<64x384xf32, #tpu.memory_space<vmem>>, vector<64x384xf32>
    tpu.vector_store %arg18[%c0_6, %c0_7], %7 {strides = array<i32>} : memref<64x384xf32, #tpu.memory_space<vmem>>, vector<64x384xf32>,
    %c0_8 = arith.constant 0 : index
    %c0_9 = arith.constant 0 : index
    %9 = vector.load %arg4[%c0_8, %c0_9] : memref<128x256xbf16, #tpu.memory_space<vmem>>, vector<128x256xbf16>
    %c0_10 = arith.constant 0 : index
    %c0_11 = arith.constant 0 : index
    %10 = vector.load %arg5[%c0_10, %c0_11] : memref<128x128xbf16, #tpu.memory_space<vmem>>, vector<128x128xbf16>
    %c0_12 = arith.constant 0 : index
    %c0_13 = arith.constant 0 : index
    %11 = vector.load %arg7[%c0_12, %c0_13] : memref<1x128xf32, #tpu.memory_space<vmem>>, vector<1x128xf32>
    %12 = vector.shape_cast %11 : vector<1x128xf32> to vector<1x128xf32>
    %13 = vector.broadcast %12 : vector<1x128xf32> to vector<8x128xf32>
    %c0_14 = arith.constant 0 : index
    %c0_15 = arith.constant 0 : index
    %c0_16 = arith.constant 0 : index
    %c0_17 = arith.constant 0 : index
    %14 = vector.load %arg2[%c0_14, %c0_15, %c0_16, %c0_17] : memref<1x2x8x128xf32, #tpu.memory_space<vmem>>, vector<1x1x8x128xf32>
    %15 = vector.shape_cast %14 : vector<1x1x8x128xf32> to vector<8x128xf32>
    %c0_i32 = arith.constant 0 : i32
    %c8_i32 = arith.constant 8 : i32
    %16 = arith.muli %c0_i32, %c8_i32 : i32
    %17 = tpu.assume_multiple %16, 8 : i32
    %18 = arith.index_cast %17 : i32 to index
    %c0_18 = arith.constant 0 : index
    %19 = vector.load %arg18[%18, %c0_18] : memref<64x384xf32, #tpu.memory_space<vmem>>, vector<8x384xf32>
    %20 = arith.truncf %15 : vector<8x128xf32> to vector<8x128xbf16>
    %cst_19 = arith.constant dense<0.000000e+00> : vector<8x256xf32>
    %21 = tpu.matmul %20, %9, %cst_19 {dimension_numbers = #tpu.dot_dimension_numbers<[1], [0], [0], [1], [0, 0, 1, 1], [], []>} : vector<8x128xbf16>, vector<128x256xbf16>, vector<8x256xf32> -> vector<8x256xf32>
    %cst_20 = arith.constant dense<0.000000e+00> : vector<8x128xf32>
    %22 = tpu.matmul %20, %10, %cst_20 {dimension_numbers = #tpu.dot_dimension_numbers<[1], [0], [0], [1], [0, 0, 1, 1], [], []>} : vector<8x128xbf16>, vector<128x128xbf16>, vector<8x128xf32> -> vector<8x128xf32>
    %23 = arith.addf %22, %13 : vector<8x128xf32>
    %24 = vector.extract_strided_slice %19 {offsets = [0, 0], sizes = [8, 128], strides = [1, 1]} : vector<8x384xf32> to vector<8x128xf32>
    %25 = vector.extract_strided_slice %21 {offsets = [0, 0], sizes = [8, 128], strides = [1, 1]} : vector<8x256xf32> to vector<8x128xf32>
    %26 = arith.addf %24, %25 : vector<8x128xf32>
    %27 = arith.negf %26 : vector<8x128xf32>
    %28 = math.exp %27 : vector<8x128xf32>
    %cst_21 = arith.constant 1.000000e+00 : f32
    %29 = vector.broadcast %cst_21 : f32 to vector<8x128xf32>
    %30 = arith.addf %29, %28 : vector<8x128xf32>
    %31 = arith.divf %29, %30 : vector<8x128xf32>
    %32 = vector.extract_strided_slice %19 {offsets = [0, 128], sizes = [8, 128], strides = [1, 1]} : vector<8x384xf32> to vector<8x128xf32>
    %33 = vector.extract_strided_slice %21 {offsets = [0, 128], sizes = [8, 128], strides = [1, 1]} : vector<8x256xf32> to vector<8x128xf32>
    %34 = arith.addf %32, %33 : vector<8x128xf32>
    %35 = arith.negf %34 : vector<8x128xf32>
    %36 = math.exp %35 : vector<8x128xf32>
    %cst_22 = arith.constant 1.000000e+00 : f32
    %37 = vector.broadcast %cst_22 : f32 to vector<8x128xf32>
    %38 = arith.addf %37, %36 : vector<8x128xf32>
    %39 = arith.divf %37, %38 : vector<8x128xf32>
    %40 = vector.extract_strided_slice %19 {offsets = [0, 256], sizes = [8, 128], strides = [1, 1]} : vector<8x384xf32> to vector<8x128xf32>
    %41 = arith.mulf %31, %23 : vector<8x128xf32>
    %42 = arith.addf %40, %41 : vector<8x128xf32>
    %43 = math.tanh %42 : vector<8x128xf32>
    %cst_23 = arith.constant 1.000000e+00 : f32
    %44 = vector.broadcast %cst_23 : f32 to vector<8x128xf32>
    %45 = arith.subf %44, %39 : vector<8x128xf32>
    %46 = arith.mulf %45, %43 : vector<8x128xf32>
    %47 = arith.mulf %39, %15 : vector<8x128xf32>
    %48 = arith.addf %46, %47 : vector<8x128xf32>
    %49 = arith.index_cast %17 : i32 to index
    %c0_24 = arith.constant 0 : index
    %50 = vector.load %arg17[%49, %c0_24] : memref<64x128xf32, #tpu.memory_space<vmem>>, vector<8x128xf32>
    tpu.vector_store %arg17[%49, %c0_24], %48 {strides = array<i32>} : memref<64x128xf32, #tpu.memory_space<vmem>>, vector<8x128xf32>,
    %c1_i32 = arith.constant 1 : i32
    %c8_i32_25 = arith.constant 8 : i32
    %51 = arith.muli %c1_i32, %c8_i32_25 : i32
    %52 = tpu.assume_multiple %51, 8 : i32
    %53 = arith.index_cast %52 : i32 to index
    %c0_26 = arith.constant 0 : index
    %54 = vector.load %arg18[%53, %c0_26] : memref<64x384xf32, #tpu.memory_space<vmem>>, vector<8x384xf32>
    %55 = arith.truncf %48 : vector<8x128xf32> to vector<8x128xbf16>
    %cst_27 = arith.constant dense<0.000000e+00> : vector<8x256xf32>
    %56 = tpu.matmul %55, %9, %cst_27 {dimension_numbers = #tpu.dot_dimension_numbers<[1], [0], [0], [1], [0, 0, 1, 1], [], []>} : vector<8x128xbf16>, vector<128x256xbf16>, vector<8x256xf32> -> vector<8x256xf32>
    %cst_28 = arith.constant dense<0.000000e+00> : vector<8x128xf32>
    %57 = tpu.matmul %55, %10, %cst_28 {dimension_numbers = #tpu.dot_dimension_numbers<[1], [0], [0], [1], [0, 0, 1, 1], [], []>} : vector<8x128xbf16>, vector<128x128xbf16>, vector<8x128xf32> -> vector<8x128xf32>
    %58 = arith.addf %57, %13 : vector<8x128xf32>
    %59 = vector.extract_strided_slice %54 {offsets = [0, 0], sizes = [8, 128], strides = [1, 1]} : vector<8x384xf32> to vector<8x128xf32>
    %60 = vector.extract_strided_slice %56 {offsets = [0, 0], sizes = [8, 128], strides = [1, 1]} : vector<8x256xf32> to vector<8x128xf32>
    %61 = arith.addf %59, %60 : vector<8x128xf32>
    %62 = arith.negf %61 : vector<8x128xf32>
    %63 = math.exp %62 : vector<8x128xf32>
    %cst_29 = arith.constant 1.000000e+00 : f32
    %64 = vector.broadcast %cst_29 : f32 to vector<8x128xf32>
    %65 = arith.addf %64, %63 : vector<8x128xf32>
    %66 = arith.divf %64, %65 : vector<8x128xf32>
    %67 = vector.extract_strided_slice %54 {offsets = [0, 128], sizes = [8, 128], strides = [1, 1]} : vector<8x384xf32> to vector<8x128xf32>
    %68 = vector.extract_strided_slice %56 {offsets = [0, 128], sizes = [8, 128], strides = [1, 1]} : vector<8x256xf32> to vector<8x128xf32>
    %69 = arith.addf %67, %68 : vector<8x128xf32>
    %70 = arith.negf %69 : vector<8x128xf32>
    %71 = math.exp %70 : vector<8x128xf32>
    %cst_30 = arith.constant 1.000000e+00 : f32
    %72 = vector.broadcast %cst_30 : f32 to vector<8x128xf32>
    %73 = arith.addf %72, %71 : vector<8x128xf32>
    %74 = arith.divf %72, %73 : vector<8x128xf32>
    %75 = vector.extract_strided_slice %54 {offsets = [0, 256], sizes = [8, 128], strides = [1, 1]} : vector<8x384xf32> to vector<8x128xf32>
    %76 = arith.mulf %66, %58 : vector<8x128xf32>
    %77 = arith.addf %75, %76 : vector<8x128xf32>
    %78 = math.tanh %77 : vector<8x128xf32>
    %cst_31 = arith.constant 1.000000e+00 : f32
    %79 = vector.broadcast %cst_31 : f32 to vector<8x128xf32>
    %80 = arith.subf %79, %74 : vector<8x128xf32>
    %81 = arith.mulf %80, %78 : vector<8x128xf32>
    %82 = arith.mulf %74, %48 : vector<8x128xf32>
    %83 = arith.addf %81, %82 : vector<8x128xf32>
    %84 = arith.index_cast %52 : i32 to index
    %c0_32 = arith.constant 0 : index
    %85 = vector.load %arg17[%84, %c0_32] : memref<64x128xf32, #tpu.memory_space<vmem>>, vector<8x128xf32>
    tpu.vector_store %arg17[%84, %c0_32], %83 {strides = array<i32>} : memref<64x128xf32, #tpu.memory_space<vmem>>, vector<8x128xf32>,
    %c2_i32 = arith.constant 2 : i32
    %c8_i32_33 = arith.constant 8 : i32
    %86 = arith.muli %c2_i32, %c8_i32_33 : i32
    %87 = tpu.assume_multiple %86, 8 : i32
    %88 = arith.index_cast %87 : i32 to index
    %c0_34 = arith.constant 0 : index
    %89 = vector.load %arg18[%88, %c0_34] : memref<64x384xf32, #tpu.memory_space<vmem>>, vector<8x384xf32>
    %90 = arith.truncf %83 : vector<8x128xf32> to vector<8x128xbf16>
    %cst_35 = arith.constant dense<0.000000e+00> : vector<8x256xf32>
    %91 = tpu.matmul %90, %9, %cst_35 {dimension_numbers = #tpu.dot_dimension_numbers<[1], [0], [0], [1], [0, 0, 1, 1], [], []>} : vector<8x128xbf16>, vector<128x256xbf16>, vector<8x256xf32> -> vector<8x256xf32>
    %cst_36 = arith.constant dense<0.000000e+00> : vector<8x128xf32>
    %92 = tpu.matmul %90, %10, %cst_36 {dimension_numbers = #tpu.dot_dimension_numbers<[1], [0], [0], [1], [0, 0, 1, 1], [], []>} : vector<8x128xbf16>, vector<128x128xbf16>, vector<8x128xf32> -> vector<8x128xf32>
    %93 = arith.addf %92, %13 : vector<8x128xf32>
    %94 = vector.extract_strided_slice %89 {offsets = [0, 0], sizes = [8, 128], strides = [1, 1]} : vector<8x384xf32> to vector<8x128xf32>
    %95 = vector.extract_strided_slice %91 {offsets = [0, 0], sizes = [8, 128], strides = [1, 1]} : vector<8x256xf32> to vector<8x128xf32>
    %96 = arith.addf %94, %95 : vector<8x128xf32>
    %97 = arith.negf %96 : vector<8x128xf32>
    %98 = math.exp %97 : vector<8x128xf32>
    %cst_37 = arith.constant 1.000000e+00 : f32
    %99 = vector.broadcast %cst_37 : f32 to vector<8x128xf32>
    %100 = arith.addf %99, %98 : vector<8x128xf32>
    %101 = arith.divf %99, %100 : vector<8x128xf32>
    %102 = vector.extract_strided_slice %89 {offsets = [0, 128], sizes = [8, 128], strides = [1, 1]} : vector<8x384xf32> to vector<8x128xf32>
    %103 = vector.extract_strided_slice %91 {offsets = [0, 128], sizes = [8, 128], strides = [1, 1]} : vector<8x256xf32> to vector<8x128xf32>
    %104 = arith.addf %102, %103 : vector<8x128xf32>
    %105 = arith.negf %104 : vector<8x128xf32>
    %106 = math.exp %105 : vector<8x128xf32>
    %cst_38 = arith.constant 1.000000e+00 : f32
    %107 = vector.broadcast %cst_38 : f32 to vector<8x128xf32>
    %108 = arith.addf %107, %106 : vector<8x128xf32>
    %109 = arith.divf %107, %108 : vector<8x128xf32>
    %110 = vector.extract_strided_slice %89 {offsets = [0, 256], sizes = [8, 128], strides = [1, 1]} : vector<8x384xf32> to vector<8x128xf32>
    %111 = arith.mulf %101, %93 : vector<8x128xf32>
    %112 = arith.addf %110, %111 : vector<8x128xf32>
    %113 = math.tanh %112 : vector<8x128xf32>
    %cst_39 = arith.constant 1.000000e+00 : f32
    %114 = vector.broadcast %cst_39 : f32 to vector<8x128xf32>
    %115 = arith.subf %114, %109 : vector<8x128xf32>
    %116 = arith.mulf %115, %113 : vector<8x128xf32>
    %117 = arith.mulf %109, %83 : vector<8x128xf32>
    %118 = arith.addf %116, %117 : vector<8x128xf32>
    %119 = arith.index_cast %87 : i32 to index
    %c0_40 = arith.constant 0 : index
    %120 = vector.load %arg17[%119, %c0_40] : memref<64x128xf32, #tpu.memory_space<vmem>>, vector<8x128xf32>
    tpu.vector_store %arg17[%119, %c0_40], %118 {strides = array<i32>} : memref<64x128xf32, #tpu.memory_space<vmem>>, vector<8x128xf32>,
    %c3_i32 = arith.constant 3 : i32
    %c8_i32_41 = arith.constant 8 : i32
    %121 = arith.muli %c3_i32, %c8_i32_41 : i32
    %122 = tpu.assume_multiple %121, 8 : i32
    %123 = arith.index_cast %122 : i32 to index
    %c0_42 = arith.constant 0 : index
    %124 = vector.load %arg18[%123, %c0_42] : memref<64x384xf32, #tpu.memory_space<vmem>>, vector<8x384xf32>
    %125 = arith.truncf %118 : vector<8x128xf32> to vector<8x128xbf16>
    %cst_43 = arith.constant dense<0.000000e+00> : vector<8x256xf32>
    %126 = tpu.matmul %125, %9, %cst_43 {dimension_numbers = #tpu.dot_dimension_numbers<[1], [0], [0], [1], [0, 0, 1, 1], [], []>} : vector<8x128xbf16>, vector<128x256xbf16>, vector<8x256xf32> -> vector<8x256xf32>
    %cst_44 = arith.constant dense<0.000000e+00> : vector<8x128xf32>
    %127 = tpu.matmul %125, %10, %cst_44 {dimension_numbers = #tpu.dot_dimension_numbers<[1], [0], [0], [1], [0, 0, 1, 1], [], []>} : vector<8x128xbf16>, vector<128x128xbf16>, vector<8x128xf32> -> vector<8x128xf32>
    %128 = arith.addf %127, %13 : vector<8x128xf32>
    %129 = vector.extract_strided_slice %124 {offsets = [0, 0], sizes = [8, 128], strides = [1, 1]} : vector<8x384xf32> to vector<8x128xf32>
    %130 = vector.extract_strided_slice %126 {offsets = [0, 0], sizes = [8, 128], strides = [1, 1]} : vector<8x256xf32> to vector<8x128xf32>
    %131 = arith.addf %129, %130 : vector<8x128xf32>
    %132 = arith.negf %131 : vector<8x128xf32>
    %133 = math.exp %132 : vector<8x128xf32>
    %cst_45 = arith.constant 1.000000e+00 : f32
    %134 = vector.broadcast %cst_45 : f32 to vector<8x128xf32>
    %135 = arith.addf %134, %133 : vector<8x128xf32>
    %136 = arith.divf %134, %135 : vector<8x128xf32>
    %137 = vector.extract_strided_slice %124 {offsets = [0, 128], sizes = [8, 128], strides = [1, 1]} : vector<8x384xf32> to vector<8x128xf32>
    %138 = vector.extract_strided_slice %126 {offsets = [0, 128], sizes = [8, 128], strides = [1, 1]} : vector<8x256xf32> to vector<8x128xf32>
    %139 = arith.addf %137, %138 : vector<8x128xf32>
    %140 = arith.negf %139 : vector<8x128xf32>
    %141 = math.exp %140 : vector<8x128xf32>
    %cst_46 = arith.constant 1.000000e+00 : f32
    %142 = vector.broadcast %cst_46 : f32 to vector<8x128xf32>
    %143 = arith.addf %142, %141 : vector<8x128xf32>
    %144 = arith.divf %142, %143 : vector<8x128xf32>
    %145 = vector.extract_strided_slice %124 {offsets = [0, 256], sizes = [8, 128], strides = [1, 1]} : vector<8x384xf32> to vector<8x128xf32>
    %146 = arith.mulf %136, %128 : vector<8x128xf32>
    %147 = arith.addf %145, %146 : vector<8x128xf32>
    %148 = math.tanh %147 : vector<8x128xf32>
    %cst_47 = arith.constant 1.000000e+00 : f32
    %149 = vector.broadcast %cst_47 : f32 to vector<8x128xf32>
    %150 = arith.subf %149, %144 : vector<8x128xf32>
    %151 = arith.mulf %150, %148 : vector<8x128xf32>
    %152 = arith.mulf %144, %118 : vector<8x128xf32>
    %153 = arith.addf %151, %152 : vector<8x128xf32>
    %154 = arith.index_cast %122 : i32 to index
    %c0_48 = arith.constant 0 : index
    %155 = vector.load %arg17[%154, %c0_48] : memref<64x128xf32, #tpu.memory_space<vmem>>, vector<8x128xf32>
    tpu.vector_store %arg17[%154, %c0_48], %153 {strides = array<i32>} : memref<64x128xf32, #tpu.memory_space<vmem>>, vector<8x128xf32>,
    %c4_i32 = arith.constant 4 : i32
    %c8_i32_49 = arith.constant 8 : i32
    %156 = arith.muli %c4_i32, %c8_i32_49 : i32
    %157 = tpu.assume_multiple %156, 8 : i32
    %158 = arith.index_cast %157 : i32 to index
    %c0_50 = arith.constant 0 : index
    %159 = vector.load %arg18[%158, %c0_50] : memref<64x384xf32, #tpu.memory_space<vmem>>, vector<8x384xf32>
    %160 = arith.truncf %153 : vector<8x128xf32> to vector<8x128xbf16>
    %cst_51 = arith.constant dense<0.000000e+00> : vector<8x256xf32>
    %161 = tpu.matmul %160, %9, %cst_51 {dimension_numbers = #tpu.dot_dimension_numbers<[1], [0], [0], [1], [0, 0, 1, 1], [], []>} : vector<8x128xbf16>, vector<128x256xbf16>, vector<8x256xf32> -> vector<8x256xf32>
    %cst_52 = arith.constant dense<0.000000e+00> : vector<8x128xf32>
    %162 = tpu.matmul %160, %10, %cst_52 {dimension_numbers = #tpu.dot_dimension_numbers<[1], [0], [0], [1], [0, 0, 1, 1], [], []>} : vector<8x128xbf16>, vector<128x128xbf16>, vector<8x128xf32> -> vector<8x128xf32>
    %163 = arith.addf %162, %13 : vector<8x128xf32>
    %164 = vector.extract_strided_slice %159 {offsets = [0, 0], sizes = [8, 128], strides = [1, 1]} : vector<8x384xf32> to vector<8x128xf32>
    %165 = vector.extract_strided_slice %161 {offsets = [0, 0], sizes = [8, 128], strides = [1, 1]} : vector<8x256xf32> to vector<8x128xf32>
    %166 = arith.addf %164, %165 : vector<8x128xf32>
    %167 = arith.negf %166 : vector<8x128xf32>
    %168 = math.exp %167 : vector<8x128xf32>
    %cst_53 = arith.constant 1.000000e+00 : f32
    %169 = vector.broadcast %cst_53 : f32 to vector<8x128xf32>
    %170 = arith.addf %169, %168 : vector<8x128xf32>
    %171 = arith.divf %169, %170 : vector<8x128xf32>
    %172 = vector.extract_strided_slice %159 {offsets = [0, 128], sizes = [8, 128], strides = [1, 1]} : vector<8x384xf32> to vector<8x128xf32>
    %173 = vector.extract_strided_slice %161 {offsets = [0, 128], sizes = [8, 128], strides = [1, 1]} : vector<8x256xf32> to vector<8x128xf32>
    %174 = arith.addf %172, %173 : vector<8x128xf32>
    %175 = arith.negf %174 : vector<8x128xf32>
    %176 = math.exp %175 : vector<8x128xf32>
    %cst_54 = arith.constant 1.000000e+00 : f32
    %177 = vector.broadcast %cst_54 : f32 to vector<8x128xf32>
    %178 = arith.addf %177, %176 : vector<8x128xf32>
    %179 = arith.divf %177, %178 : vector<8x128xf32>
    %180 = vector.extract_strided_slice %159 {offsets = [0, 256], sizes = [8, 128], strides = [1, 1]} : vector<8x384xf32> to vector<8x128xf32>
    %181 = arith.mulf %171, %163 : vector<8x128xf32>
    %182 = arith.addf %180, %181 : vector<8x128xf32>
    %183 = math.tanh %182 : vector<8x128xf32>
    %cst_55 = arith.constant 1.000000e+00 : f32
    %184 = vector.broadcast %cst_55 : f32 to vector<8x128xf32>
    %185 = arith.subf %184, %179 : vector<8x128xf32>
    %186 = arith.mulf %185, %183 : vector<8x128xf32>
    %187 = arith.mulf %179, %153 : vector<8x128xf32>
    %188 = arith.addf %186, %187 : vector<8x128xf32>
    %189 = arith.index_cast %157 : i32 to index
    %c0_56 = arith.constant 0 : index
    %190 = vector.load %arg17[%189, %c0_56] : memref<64x128xf32, #tpu.memory_space<vmem>>, vector<8x128xf32>
    tpu.vector_store %arg17[%189, %c0_56], %188 {strides = array<i32>} : memref<64x128xf32, #tpu.memory_space<vmem>>, vector<8x128xf32>,
    %c5_i32 = arith.constant 5 : i32
    %c8_i32_57 = arith.constant 8 : i32
    %191 = arith.muli %c5_i32, %c8_i32_57 : i32
    %192 = tpu.assume_multiple %191, 8 : i32
    %193 = arith.index_cast %192 : i32 to index
    %c0_58 = arith.constant 0 : index
    %194 = vector.load %arg18[%193, %c0_58] : memref<64x384xf32, #tpu.memory_space<vmem>>, vector<8x384xf32>
    %195 = arith.truncf %188 : vector<8x128xf32> to vector<8x128xbf16>
    %cst_59 = arith.constant dense<0.000000e+00> : vector<8x256xf32>
    %196 = tpu.matmul %195, %9, %cst_59 {dimension_numbers = #tpu.dot_dimension_numbers<[1], [0], [0], [1], [0, 0, 1, 1], [], []>} : vector<8x128xbf16>, vector<128x256xbf16>, vector<8x256xf32> -> vector<8x256xf32>
    %cst_60 = arith.constant dense<0.000000e+00> : vector<8x128xf32>
    %197 = tpu.matmul %195, %10, %cst_60 {dimension_numbers = #tpu.dot_dimension_numbers<[1], [0], [0], [1], [0, 0, 1, 1], [], []>} : vector<8x128xbf16>, vector<128x128xbf16>, vector<8x128xf32> -> vector<8x128xf32>
    %198 = arith.addf %197, %13 : vector<8x128xf32>
    %199 = vector.extract_strided_slice %194 {offsets = [0, 0], sizes = [8, 128], strides = [1, 1]} : vector<8x384xf32> to vector<8x128xf32>
    %200 = vector.extract_strided_slice %196 {offsets = [0, 0], sizes = [8, 128], strides = [1, 1]} : vector<8x256xf32> to vector<8x128xf32>
    %201 = arith.addf %199, %200 : vector<8x128xf32>
    %202 = arith.negf %201 : vector<8x128xf32>
    %203 = math.exp %202 : vector<8x128xf32>
    %cst_61 = arith.constant 1.000000e+00 : f32
    %204 = vector.broadcast %cst_61 : f32 to vector<8x128xf32>
    %205 = arith.addf %204, %203 : vector<8x128xf32>
    %206 = arith.divf %204, %205 : vector<8x128xf32>
    %207 = vector.extract_strided_slice %194 {offsets = [0, 128], sizes = [8, 128], strides = [1, 1]} : vector<8x384xf32> to vector<8x128xf32>
    %208 = vector.extract_strided_slice %196 {offsets = [0, 128], sizes = [8, 128], strides = [1, 1]} : vector<8x256xf32> to vector<8x128xf32>
    %209 = arith.addf %207, %208 : vector<8x128xf32>
    %210 = arith.negf %209 : vector<8x128xf32>
    %211 = math.exp %210 : vector<8x128xf32>
    %cst_62 = arith.constant 1.000000e+00 : f32
    %212 = vector.broadcast %cst_62 : f32 to vector<8x128xf32>
    %213 = arith.addf %212, %211 : vector<8x128xf32>
    %214 = arith.divf %212, %213 : vector<8x128xf32>
    %215 = vector.extract_strided_slice %194 {offsets = [0, 256], sizes = [8, 128], strides = [1, 1]} : vector<8x384xf32> to vector<8x128xf32>
    %216 = arith.mulf %206, %198 : vector<8x128xf32>
    %217 = arith.addf %215, %216 : vector<8x128xf32>
    %218 = math.tanh %217 : vector<8x128xf32>
    %cst_63 = arith.constant 1.000000e+00 : f32
    %219 = vector.broadcast %cst_63 : f32 to vector<8x128xf32>
    %220 = arith.subf %219, %214 : vector<8x128xf32>
    %221 = arith.mulf %220, %218 : vector<8x128xf32>
    %222 = arith.mulf %214, %188 : vector<8x128xf32>
    %223 = arith.addf %221, %222 : vector<8x128xf32>
    %224 = arith.index_cast %192 : i32 to index
    %c0_64 = arith.constant 0 : index
    %225 = vector.load %arg17[%224, %c0_64] : memref<64x128xf32, #tpu.memory_space<vmem>>, vector<8x128xf32>
    tpu.vector_store %arg17[%224, %c0_64], %223 {strides = array<i32>} : memref<64x128xf32, #tpu.memory_space<vmem>>, vector<8x128xf32>,
    %c6_i32 = arith.constant 6 : i32
    %c8_i32_65 = arith.constant 8 : i32
    %226 = arith.muli %c6_i32, %c8_i32_65 : i32
    %227 = tpu.assume_multiple %226, 8 : i32
    %228 = arith.index_cast %227 : i32 to index
    %c0_66 = arith.constant 0 : index
    %229 = vector.load %arg18[%228, %c0_66] : memref<64x384xf32, #tpu.memory_space<vmem>>, vector<8x384xf32>
    %230 = arith.truncf %223 : vector<8x128xf32> to vector<8x128xbf16>
    %cst_67 = arith.constant dense<0.000000e+00> : vector<8x256xf32>
    %231 = tpu.matmul %230, %9, %cst_67 {dimension_numbers = #tpu.dot_dimension_numbers<[1], [0], [0], [1], [0, 0, 1, 1], [], []>} : vector<8x128xbf16>, vector<128x256xbf16>, vector<8x256xf32> -> vector<8x256xf32>
    %cst_68 = arith.constant dense<0.000000e+00> : vector<8x128xf32>
    %232 = tpu.matmul %230, %10, %cst_68 {dimension_numbers = #tpu.dot_dimension_numbers<[1], [0], [0], [1], [0, 0, 1, 1], [], []>} : vector<8x128xbf16>, vector<128x128xbf16>, vector<8x128xf32> -> vector<8x128xf32>
    %233 = arith.addf %232, %13 : vector<8x128xf32>
    %234 = vector.extract_strided_slice %229 {offsets = [0, 0], sizes = [8, 128], strides = [1, 1]} : vector<8x384xf32> to vector<8x128xf32>
    %235 = vector.extract_strided_slice %231 {offsets = [0, 0], sizes = [8, 128], strides = [1, 1]} : vector<8x256xf32> to vector<8x128xf32>
    %236 = arith.addf %234, %235 : vector<8x128xf32>
    %237 = arith.negf %236 : vector<8x128xf32>
    %238 = math.exp %237 : vector<8x128xf32>
    %cst_69 = arith.constant 1.000000e+00 : f32
    %239 = vector.broadcast %cst_69 : f32 to vector<8x128xf32>
    %240 = arith.addf %239, %238 : vector<8x128xf32>
    %241 = arith.divf %239, %240 : vector<8x128xf32>
    %242 = vector.extract_strided_slice %229 {offsets = [0, 128], sizes = [8, 128], strides = [1, 1]} : vector<8x384xf32> to vector<8x128xf32>
    %243 = vector.extract_strided_slice %231 {offsets = [0, 128], sizes = [8, 128], strides = [1, 1]} : vector<8x256xf32> to vector<8x128xf32>
    %244 = arith.addf %242, %243 : vector<8x128xf32>
    %245 = arith.negf %244 : vector<8x128xf32>
    %246 = math.exp %245 : vector<8x128xf32>
    %cst_70 = arith.constant 1.000000e+00 : f32
    %247 = vector.broadcast %cst_70 : f32 to vector<8x128xf32>
    %248 = arith.addf %247, %246 : vector<8x128xf32>
    %249 = arith.divf %247, %248 : vector<8x128xf32>
    %250 = vector.extract_strided_slice %229 {offsets = [0, 256], sizes = [8, 128], strides = [1, 1]} : vector<8x384xf32> to vector<8x128xf32>
    %251 = arith.mulf %241, %233 : vector<8x128xf32>
    %252 = arith.addf %250, %251 : vector<8x128xf32>
    %253 = math.tanh %252 : vector<8x128xf32>
    %cst_71 = arith.constant 1.000000e+00 : f32
    %254 = vector.broadcast %cst_71 : f32 to vector<8x128xf32>
    %255 = arith.subf %254, %249 : vector<8x128xf32>
    %256 = arith.mulf %255, %253 : vector<8x128xf32>
    %257 = arith.mulf %249, %223 : vector<8x128xf32>
    %258 = arith.addf %256, %257 : vector<8x128xf32>
    %259 = arith.index_cast %227 : i32 to index
    %c0_72 = arith.constant 0 : index
    %260 = vector.load %arg17[%259, %c0_72] : memref<64x128xf32, #tpu.memory_space<vmem>>, vector<8x128xf32>
    tpu.vector_store %arg17[%259, %c0_72], %258 {strides = array<i32>} : memref<64x128xf32, #tpu.memory_space<vmem>>, vector<8x128xf32>,
    %c7_i32 = arith.constant 7 : i32
    %c8_i32_73 = arith.constant 8 : i32
    %261 = arith.muli %c7_i32, %c8_i32_73 : i32
    %262 = tpu.assume_multiple %261, 8 : i32
    %263 = arith.index_cast %262 : i32 to index
    %c0_74 = arith.constant 0 : index
    %264 = vector.load %arg18[%263, %c0_74] : memref<64x384xf32, #tpu.memory_space<vmem>>, vector<8x384xf32>
    %265 = arith.truncf %258 : vector<8x128xf32> to vector<8x128xbf16>
    %cst_75 = arith.constant dense<0.000000e+00> : vector<8x256xf32>
    %266 = tpu.matmul %265, %9, %cst_75 {dimension_numbers = #tpu.dot_dimension_numbers<[1], [0], [0], [1], [0, 0, 1, 1], [], []>} : vector<8x128xbf16>, vector<128x256xbf16>, vector<8x256xf32> -> vector<8x256xf32>
    %cst_76 = arith.constant dense<0.000000e+00> : vector<8x128xf32>
    %267 = tpu.matmul %265, %10, %cst_76 {dimension_numbers = #tpu.dot_dimension_numbers<[1], [0], [0], [1], [0, 0, 1, 1], [], []>} : vector<8x128xbf16>, vector<128x128xbf16>, vector<8x128xf32> -> vector<8x128xf32>
    %268 = arith.addf %267, %13 : vector<8x128xf32>
    %269 = vector.extract_strided_slice %264 {offsets = [0, 0], sizes = [8, 128], strides = [1, 1]} : vector<8x384xf32> to vector<8x128xf32>
    %270 = vector.extract_strided_slice %266 {offsets = [0, 0], sizes = [8, 128], strides = [1, 1]} : vector<8x256xf32> to vector<8x128xf32>
    %271 = arith.addf %269, %270 : vector<8x128xf32>
    %272 = arith.negf %271 : vector<8x128xf32>
    %273 = math.exp %272 : vector<8x128xf32>
    %cst_77 = arith.constant 1.000000e+00 : f32
    %274 = vector.broadcast %cst_77 : f32 to vector<8x128xf32>
    %275 = arith.addf %274, %273 : vector<8x128xf32>
    %276 = arith.divf %274, %275 : vector<8x128xf32>
    %277 = vector.extract_strided_slice %264 {offsets = [0, 128], sizes = [8, 128], strides = [1, 1]} : vector<8x384xf32> to vector<8x128xf32>
    %278 = vector.extract_strided_slice %266 {offsets = [0, 128], sizes = [8, 128], strides = [1, 1]} : vector<8x256xf32> to vector<8x128xf32>
    %279 = arith.addf %277, %278 : vector<8x128xf32>
    %280 = arith.negf %279 : vector<8x128xf32>
    %281 = math.exp %280 : vector<8x128xf32>
    %cst_78 = arith.constant 1.000000e+00 : f32
    %282 = vector.broadcast %cst_78 : f32 to vector<8x128xf32>
    %283 = arith.addf %282, %281 : vector<8x128xf32>
    %284 = arith.divf %282, %283 : vector<8x128xf32>
    %285 = vector.extract_strided_slice %264 {offsets = [0, 256], sizes = [8, 128], strides = [1, 1]} : vector<8x384xf32> to vector<8x128xf32>
    %286 = arith.mulf %276, %268 : vector<8x128xf32>
    %287 = arith.addf %285, %286 : vector<8x128xf32>
    %288 = math.tanh %287 : vector<8x128xf32>
    %cst_79 = arith.constant 1.000000e+00 : f32
    %289 = vector.broadcast %cst_79 : f32 to vector<8x128xf32>
    %290 = arith.subf %289, %284 : vector<8x128xf32>
    %291 = arith.mulf %290, %288 : vector<8x128xf32>
    %292 = arith.mulf %284, %258 : vector<8x128xf32>
    %293 = arith.addf %291, %292 : vector<8x128xf32>
    %294 = arith.index_cast %262 : i32 to index
    %c0_80 = arith.constant 0 : index
    %295 = vector.load %arg17[%294, %c0_80] : memref<64x128xf32, #tpu.memory_space<vmem>>, vector<8x128xf32>
    tpu.vector_store %arg17[%294, %c0_80], %293 {strides = array<i32>} : memref<64x128xf32, #tpu.memory_space<vmem>>, vector<8x128xf32>,
    %c8_i32_81 = arith.constant 8 : i32
    %c0_82 = arith.constant 0 : index
    %c0_83 = arith.constant 0 : index
    %c0_84 = arith.constant 0 : index
    %c0_85 = arith.constant 0 : index
    %296 = vector.load %arg16[%c0_82, %c0_83, %c0_84, %c0_85] : memref<1x2x8x128xf32, #tpu.memory_space<vmem>>, vector<1x1x8x128xf32>
    %297 = vector.shape_cast %296 : vector<1x1x8x128xf32> to vector<8x128xf32>
    %298 = vector.shape_cast %293 : vector<8x128xf32> to vector<1x1x8x128xf32>
    tpu.vector_store %arg16[%c0_82, %c0_83, %c0_84, %c0_85], %298 {strides = array<i32>} : memref<1x2x8x128xf32, #tpu.memory_space<vmem>>, vector<1x1x8x128xf32>,
    %c0_86 = arith.constant 0 : index
    %c0_87 = arith.constant 0 : index
    %299 = vector.load %arg17[%c0_86, %c0_87] : memref<64x128xf32, #tpu.memory_space<vmem>>, vector<64x128xf32>
    %300 = arith.truncf %299 : vector<64x128xf32> to vector<64x128xbf16>
    %c0_88 = arith.constant 0 : index
    %c0_89 = arith.constant 0 : index
    %301 = vector.load %arg8[%c0_88, %c0_89] : memref<128x384xbf16, #tpu.memory_space<vmem>>, vector<128x384xbf16>
    %cst_90 = arith.constant dense<0.000000e+00> : vector<64x384xf32>
    %302 = tpu.matmul %300, %301, %cst_90 {dimension_numbers = #tpu.dot_dimension_numbers<[1], [0], [0], [1], [0, 0, 1, 1], [], []>} : vector<64x128xbf16>, vector<128x384xbf16>, vector<64x384xf32> -> vector<64x384xf32>
    %c0_91 = arith.constant 0 : index
    %c0_92 = arith.constant 0 : index
    %303 = vector.load %arg11[%c0_91, %c0_92] : memref<1x384xf32, #tpu.memory_space<vmem>>, vector<1x384xf32>
    %304 = vector.broadcast %303 : vector<1x384xf32> to vector<64x384xf32>
    %305 = arith.addf %302, %304 : vector<64x384xf32>
    %c0_93 = arith.constant 0 : index
    %c0_94 = arith.constant 0 : index
    %306 = vector.load %arg18[%c0_93, %c0_94] : memref<64x384xf32, #tpu.memory_space<vmem>>, vector<64x384xf32>
    tpu.vector_store %arg18[%c0_93, %c0_94], %305 {strides = array<i32>} : memref<64x384xf32, #tpu.memory_space<vmem>>, vector<64x384xf32>,
    %c0_95 = arith.constant 0 : index
    %c0_96 = arith.constant 0 : index
    %307 = vector.load %arg9[%c0_95, %c0_96] : memref<128x256xbf16, #tpu.memory_space<vmem>>, vector<128x256xbf16>
    %c0_97 = arith.constant 0 : index
    %c0_98 = arith.constant 0 : index
    %308 = vector.load %arg10[%c0_97, %c0_98] : memref<128x128xbf16, #tpu.memory_space<vmem>>, vector<128x128xbf16>
    %c0_99 = arith.constant 0 : index
    %c0_100 = arith.constant 0 : index
    %309 = vector.load %arg12[%c0_99, %c0_100] : memref<1x128xf32, #tpu.memory_space<vmem>>, vector<1x128xf32>
    %310 = vector.shape_cast %309 : vector<1x128xf32> to vector<1x128xf32>
    %311 = vector.broadcast %310 : vector<1x128xf32> to vector<8x128xf32>
    %c0_101 = arith.constant 0 : index
    %c1 = arith.constant 1 : index
    %c0_102 = arith.constant 0 : index
    %c0_103 = arith.constant 0 : index
    %312 = vector.load %arg2[%c0_101, %c1, %c0_102, %c0_103] : memref<1x2x8x128xf32, #tpu.memory_space<vmem>>, vector<1x1x8x128xf32>
    %313 = vector.shape_cast %312 : vector<1x1x8x128xf32> to vector<8x128xf32>
    %c0_i32_104 = arith.constant 0 : i32
    %c8_i32_105 = arith.constant 8 : i32
    %314 = arith.muli %c0_i32_104, %c8_i32_105 : i32
    %315 = tpu.assume_multiple %314, 8 : i32
    %316 = arith.index_cast %315 : i32 to index
    %c0_106 = arith.constant 0 : index
    %317 = vector.load %arg18[%316, %c0_106] : memref<64x384xf32, #tpu.memory_space<vmem>>, vector<8x384xf32>
    %318 = arith.truncf %313 : vector<8x128xf32> to vector<8x128xbf16>
    %cst_107 = arith.constant dense<0.000000e+00> : vector<8x256xf32>
    %319 = tpu.matmul %318, %307, %cst_107 {dimension_numbers = #tpu.dot_dimension_numbers<[1], [0], [0], [1], [0, 0, 1, 1], [], []>} : vector<8x128xbf16>, vector<128x256xbf16>, vector<8x256xf32> -> vector<8x256xf32>
    %cst_108 = arith.constant dense<0.000000e+00> : vector<8x128xf32>
    %320 = tpu.matmul %318, %308, %cst_108 {dimension_numbers = #tpu.dot_dimension_numbers<[1], [0], [0], [1], [0, 0, 1, 1], [], []>} : vector<8x128xbf16>, vector<128x128xbf16>, vector<8x128xf32> -> vector<8x128xf32>
    %321 = arith.addf %320, %311 : vector<8x128xf32>
    %322 = vector.extract_strided_slice %317 {offsets = [0, 0], sizes = [8, 128], strides = [1, 1]} : vector<8x384xf32> to vector<8x128xf32>
    %323 = vector.extract_strided_slice %319 {offsets = [0, 0], sizes = [8, 128], strides = [1, 1]} : vector<8x256xf32> to vector<8x128xf32>
    %324 = arith.addf %322, %323 : vector<8x128xf32>
    %325 = arith.negf %324 : vector<8x128xf32>
    %326 = math.exp %325 : vector<8x128xf32>
    %cst_109 = arith.constant 1.000000e+00 : f32
    %327 = vector.broadcast %cst_109 : f32 to vector<8x128xf32>
    %328 = arith.addf %327, %326 : vector<8x128xf32>
    %329 = arith.divf %327, %328 : vector<8x128xf32>
    %330 = vector.extract_strided_slice %317 {offsets = [0, 128], sizes = [8, 128], strides = [1, 1]} : vector<8x384xf32> to vector<8x128xf32>
    %331 = vector.extract_strided_slice %319 {offsets = [0, 128], sizes = [8, 128], strides = [1, 1]} : vector<8x256xf32> to vector<8x128xf32>
    %332 = arith.addf %330, %331 : vector<8x128xf32>
    %333 = arith.negf %332 : vector<8x128xf32>
    %334 = math.exp %333 : vector<8x128xf32>
    %cst_110 = arith.constant 1.000000e+00 : f32
    %335 = vector.broadcast %cst_110 : f32 to vector<8x128xf32>
    %336 = arith.addf %335, %334 : vector<8x128xf32>
    %337 = arith.divf %335, %336 : vector<8x128xf32>
    %338 = vector.extract_strided_slice %317 {offsets = [0, 256], sizes = [8, 128], strides = [1, 1]} : vector<8x384xf32> to vector<8x128xf32>
    %339 = arith.mulf %329, %321 : vector<8x128xf32>
    %340 = arith.addf %338, %339 : vector<8x128xf32>
    %341 = math.tanh %340 : vector<8x128xf32>
    %cst_111 = arith.constant 1.000000e+00 : f32
    %342 = vector.broadcast %cst_111 : f32 to vector<8x128xf32>
    %343 = arith.subf %342, %337 : vector<8x128xf32>
    %344 = arith.mulf %343, %341 : vector<8x128xf32>
    %345 = arith.mulf %337, %313 : vector<8x128xf32>
    %346 = arith.addf %344, %345 : vector<8x128xf32>
    %c1_i32_112 = arith.constant 1 : i32
    %c8_i32_113 = arith.constant 8 : i32
    %347 = arith.muli %c1_i32_112, %c8_i32_113 : i32
    %348 = tpu.assume_multiple %347, 8 : i32
    %349 = arith.index_cast %348 : i32 to index
    %c0_114 = arith.constant 0 : index
    %350 = vector.load %arg18[%349, %c0_114] : memref<64x384xf32, #tpu.memory_space<vmem>>, vector<8x384xf32>
    %351 = arith.truncf %346 : vector<8x128xf32> to vector<8x128xbf16>
    %cst_115 = arith.constant dense<0.000000e+00> : vector<8x256xf32>
    %352 = tpu.matmul %351, %307, %cst_115 {dimension_numbers = #tpu.dot_dimension_numbers<[1], [0], [0], [1], [0, 0, 1, 1], [], []>} : vector<8x128xbf16>, vector<128x256xbf16>, vector<8x256xf32> -> vector<8x256xf32>
    %cst_116 = arith.constant dense<0.000000e+00> : vector<8x128xf32>
    %353 = tpu.matmul %351, %308, %cst_116 {dimension_numbers = #tpu.dot_dimension_numbers<[1], [0], [0], [1], [0, 0, 1, 1], [], []>} : vector<8x128xbf16>, vector<128x128xbf16>, vector<8x128xf32> -> vector<8x128xf32>
    %354 = arith.addf %353, %311 : vector<8x128xf32>
    %355 = vector.extract_strided_slice %350 {offsets = [0, 0], sizes = [8, 128], strides = [1, 1]} : vector<8x384xf32> to vector<8x128xf32>
    %356 = vector.extract_strided_slice %352 {offsets = [0, 0], sizes = [8, 128], strides = [1, 1]} : vector<8x256xf32> to vector<8x128xf32>
    %357 = arith.addf %355, %356 : vector<8x128xf32>
    %358 = arith.negf %357 : vector<8x128xf32>
    %359 = math.exp %358 : vector<8x128xf32>
    %cst_117 = arith.constant 1.000000e+00 : f32
    %360 = vector.broadcast %cst_117 : f32 to vector<8x128xf32>
    %361 = arith.addf %360, %359 : vector<8x128xf32>
    %362 = arith.divf %360, %361 : vector<8x128xf32>
    %363 = vector.extract_strided_slice %350 {offsets = [0, 128], sizes = [8, 128], strides = [1, 1]} : vector<8x384xf32> to vector<8x128xf32>
    %364 = vector.extract_strided_slice %352 {offsets = [0, 128], sizes = [8, 128], strides = [1, 1]} : vector<8x256xf32> to vector<8x128xf32>
    %365 = arith.addf %363, %364 : vector<8x128xf32>
    %366 = arith.negf %365 : vector<8x128xf32>
    %367 = math.exp %366 : vector<8x128xf32>
    %cst_118 = arith.constant 1.000000e+00 : f32
    %368 = vector.broadcast %cst_118 : f32 to vector<8x128xf32>
    %369 = arith.addf %368, %367 : vector<8x128xf32>
    %370 = arith.divf %368, %369 : vector<8x128xf32>
    %371 = vector.extract_strided_slice %350 {offsets = [0, 256], sizes = [8, 128], strides = [1, 1]} : vector<8x384xf32> to vector<8x128xf32>
    %372 = arith.mulf %362, %354 : vector<8x128xf32>
    %373 = arith.addf %371, %372 : vector<8x128xf32>
    %374 = math.tanh %373 : vector<8x128xf32>
    %cst_119 = arith.constant 1.000000e+00 : f32
    %375 = vector.broadcast %cst_119 : f32 to vector<8x128xf32>
    %376 = arith.subf %375, %370 : vector<8x128xf32>
    %377 = arith.mulf %376, %374 : vector<8x128xf32>
    %378 = arith.mulf %370, %346 : vector<8x128xf32>
    %379 = arith.addf %377, %378 : vector<8x128xf32>
    %c2_i32_120 = arith.constant 2 : i32
    %c8_i32_121 = arith.constant 8 : i32
    %380 = arith.muli %c2_i32_120, %c8_i32_121 : i32
    %381 = tpu.assume_multiple %380, 8 : i32
    %382 = arith.index_cast %381 : i32 to index
    %c0_122 = arith.constant 0 : index
    %383 = vector.load %arg18[%382, %c0_122] : memref<64x384xf32, #tpu.memory_space<vmem>>, vector<8x384xf32>
    %384 = arith.truncf %379 : vector<8x128xf32> to vector<8x128xbf16>
    %cst_123 = arith.constant dense<0.000000e+00> : vector<8x256xf32>
    %385 = tpu.matmul %384, %307, %cst_123 {dimension_numbers = #tpu.dot_dimension_numbers<[1], [0], [0], [1], [0, 0, 1, 1], [], []>} : vector<8x128xbf16>, vector<128x256xbf16>, vector<8x256xf32> -> vector<8x256xf32>
    %cst_124 = arith.constant dense<0.000000e+00> : vector<8x128xf32>
    %386 = tpu.matmul %384, %308, %cst_124 {dimension_numbers = #tpu.dot_dimension_numbers<[1], [0], [0], [1], [0, 0, 1, 1], [], []>} : vector<8x128xbf16>, vector<128x128xbf16>, vector<8x128xf32> -> vector<8x128xf32>
    %387 = arith.addf %386, %311 : vector<8x128xf32>
    %388 = vector.extract_strided_slice %383 {offsets = [0, 0], sizes = [8, 128], strides = [1, 1]} : vector<8x384xf32> to vector<8x128xf32>
    %389 = vector.extract_strided_slice %385 {offsets = [0, 0], sizes = [8, 128], strides = [1, 1]} : vector<8x256xf32> to vector<8x128xf32>
    %390 = arith.addf %388, %389 : vector<8x128xf32>
    %391 = arith.negf %390 : vector<8x128xf32>
    %392 = math.exp %391 : vector<8x128xf32>
    %cst_125 = arith.constant 1.000000e+00 : f32
    %393 = vector.broadcast %cst_125 : f32 to vector<8x128xf32>
    %394 = arith.addf %393, %392 : vector<8x128xf32>
    %395 = arith.divf %393, %394 : vector<8x128xf32>
    %396 = vector.extract_strided_slice %383 {offsets = [0, 128], sizes = [8, 128], strides = [1, 1]} : vector<8x384xf32> to vector<8x128xf32>
    %397 = vector.extract_strided_slice %385 {offsets = [0, 128], sizes = [8, 128], strides = [1, 1]} : vector<8x256xf32> to vector<8x128xf32>
    %398 = arith.addf %396, %397 : vector<8x128xf32>
    %399 = arith.negf %398 : vector<8x128xf32>
    %400 = math.exp %399 : vector<8x128xf32>
    %cst_126 = arith.constant 1.000000e+00 : f32
    %401 = vector.broadcast %cst_126 : f32 to vector<8x128xf32>
    %402 = arith.addf %401, %400 : vector<8x128xf32>
    %403 = arith.divf %401, %402 : vector<8x128xf32>
    %404 = vector.extract_strided_slice %383 {offsets = [0, 256], sizes = [8, 128], strides = [1, 1]} : vector<8x384xf32> to vector<8x128xf32>
    %405 = arith.mulf %395, %387 : vector<8x128xf32>
    %406 = arith.addf %404, %405 : vector<8x128xf32>
    %407 = math.tanh %406 : vector<8x128xf32>
    %cst_127 = arith.constant 1.000000e+00 : f32
    %408 = vector.broadcast %cst_127 : f32 to vector<8x128xf32>
    %409 = arith.subf %408, %403 : vector<8x128xf32>
    %410 = arith.mulf %409, %407 : vector<8x128xf32>
    %411 = arith.mulf %403, %379 : vector<8x128xf32>
    %412 = arith.addf %410, %411 : vector<8x128xf32>
    %c3_i32_128 = arith.constant 3 : i32
    %c8_i32_129 = arith.constant 8 : i32
    %413 = arith.muli %c3_i32_128, %c8_i32_129 : i32
    %414 = tpu.assume_multiple %413, 8 : i32
    %415 = arith.index_cast %414 : i32 to index
    %c0_130 = arith.constant 0 : index
    %416 = vector.load %arg18[%415, %c0_130] : memref<64x384xf32, #tpu.memory_space<vmem>>, vector<8x384xf32>
    %417 = arith.truncf %412 : vector<8x128xf32> to vector<8x128xbf16>
    %cst_131 = arith.constant dense<0.000000e+00> : vector<8x256xf32>
    %418 = tpu.matmul %417, %307, %cst_131 {dimension_numbers = #tpu.dot_dimension_numbers<[1], [0], [0], [1], [0, 0, 1, 1], [], []>} : vector<8x128xbf16>, vector<128x256xbf16>, vector<8x256xf32> -> vector<8x256xf32>
    %cst_132 = arith.constant dense<0.000000e+00> : vector<8x128xf32>
    %419 = tpu.matmul %417, %308, %cst_132 {dimension_numbers = #tpu.dot_dimension_numbers<[1], [0], [0], [1], [0, 0, 1, 1], [], []>} : vector<8x128xbf16>, vector<128x128xbf16>, vector<8x128xf32> -> vector<8x128xf32>
    %420 = arith.addf %419, %311 : vector<8x128xf32>
    %421 = vector.extract_strided_slice %416 {offsets = [0, 0], sizes = [8, 128], strides = [1, 1]} : vector<8x384xf32> to vector<8x128xf32>
    %422 = vector.extract_strided_slice %418 {offsets = [0, 0], sizes = [8, 128], strides = [1, 1]} : vector<8x256xf32> to vector<8x128xf32>
    %423 = arith.addf %421, %422 : vector<8x128xf32>
    %424 = arith.negf %423 : vector<8x128xf32>
    %425 = math.exp %424 : vector<8x128xf32>
    %cst_133 = arith.constant 1.000000e+00 : f32
    %426 = vector.broadcast %cst_133 : f32 to vector<8x128xf32>
    %427 = arith.addf %426, %425 : vector<8x128xf32>
    %428 = arith.divf %426, %427 : vector<8x128xf32>
    %429 = vector.extract_strided_slice %416 {offsets = [0, 128], sizes = [8, 128], strides = [1, 1]} : vector<8x384xf32> to vector<8x128xf32>
    %430 = vector.extract_strided_slice %418 {offsets = [0, 128], sizes = [8, 128], strides = [1, 1]} : vector<8x256xf32> to vector<8x128xf32>
    %431 = arith.addf %429, %430 : vector<8x128xf32>
    %432 = arith.negf %431 : vector<8x128xf32>
    %433 = math.exp %432 : vector<8x128xf32>
    %cst_134 = arith.constant 1.000000e+00 : f32
    %434 = vector.broadcast %cst_134 : f32 to vector<8x128xf32>
    %435 = arith.addf %434, %433 : vector<8x128xf32>
    %436 = arith.divf %434, %435 : vector<8x128xf32>
    %437 = vector.extract_strided_slice %416 {offsets = [0, 256], sizes = [8, 128], strides = [1, 1]} : vector<8x384xf32> to vector<8x128xf32>
    %438 = arith.mulf %428, %420 : vector<8x128xf32>
    %439 = arith.addf %437, %438 : vector<8x128xf32>
    %440 = math.tanh %439 : vector<8x128xf32>
    %cst_135 = arith.constant 1.000000e+00 : f32
    %441 = vector.broadcast %cst_135 : f32 to vector<8x128xf32>
    %442 = arith.subf %441, %436 : vector<8x128xf32>
    %443 = arith.mulf %442, %440 : vector<8x128xf32>
    %444 = arith.mulf %436, %412 : vector<8x128xf32>
    %445 = arith.addf %443, %444 : vector<8x128xf32>
    %c4_i32_136 = arith.constant 4 : i32
    %c8_i32_137 = arith.constant 8 : i32
    %446 = arith.muli %c4_i32_136, %c8_i32_137 : i32
    %447 = tpu.assume_multiple %446, 8 : i32
    %448 = arith.index_cast %447 : i32 to index
    %c0_138 = arith.constant 0 : index
    %449 = vector.load %arg18[%448, %c0_138] : memref<64x384xf32, #tpu.memory_space<vmem>>, vector<8x384xf32>
    %450 = arith.truncf %445 : vector<8x128xf32> to vector<8x128xbf16>
    %cst_139 = arith.constant dense<0.000000e+00> : vector<8x256xf32>
    %451 = tpu.matmul %450, %307, %cst_139 {dimension_numbers = #tpu.dot_dimension_numbers<[1], [0], [0], [1], [0, 0, 1, 1], [], []>} : vector<8x128xbf16>, vector<128x256xbf16>, vector<8x256xf32> -> vector<8x256xf32>
    %cst_140 = arith.constant dense<0.000000e+00> : vector<8x128xf32>
    %452 = tpu.matmul %450, %308, %cst_140 {dimension_numbers = #tpu.dot_dimension_numbers<[1], [0], [0], [1], [0, 0, 1, 1], [], []>} : vector<8x128xbf16>, vector<128x128xbf16>, vector<8x128xf32> -> vector<8x128xf32>
    %453 = arith.addf %452, %311 : vector<8x128xf32>
    %454 = vector.extract_strided_slice %449 {offsets = [0, 0], sizes = [8, 128], strides = [1, 1]} : vector<8x384xf32> to vector<8x128xf32>
    %455 = vector.extract_strided_slice %451 {offsets = [0, 0], sizes = [8, 128], strides = [1, 1]} : vector<8x256xf32> to vector<8x128xf32>
    %456 = arith.addf %454, %455 : vector<8x128xf32>
    %457 = arith.negf %456 : vector<8x128xf32>
    %458 = math.exp %457 : vector<8x128xf32>
    %cst_141 = arith.constant 1.000000e+00 : f32
    %459 = vector.broadcast %cst_141 : f32 to vector<8x128xf32>
    %460 = arith.addf %459, %458 : vector<8x128xf32>
    %461 = arith.divf %459, %460 : vector<8x128xf32>
    %462 = vector.extract_strided_slice %449 {offsets = [0, 128], sizes = [8, 128], strides = [1, 1]} : vector<8x384xf32> to vector<8x128xf32>
    %463 = vector.extract_strided_slice %451 {offsets = [0, 128], sizes = [8, 128], strides = [1, 1]} : vector<8x256xf32> to vector<8x128xf32>
    %464 = arith.addf %462, %463 : vector<8x128xf32>
    %465 = arith.negf %464 : vector<8x128xf32>
    %466 = math.exp %465 : vector<8x128xf32>
    %cst_142 = arith.constant 1.000000e+00 : f32
    %467 = vector.broadcast %cst_142 : f32 to vector<8x128xf32>
    %468 = arith.addf %467, %466 : vector<8x128xf32>
    %469 = arith.divf %467, %468 : vector<8x128xf32>
    %470 = vector.extract_strided_slice %449 {offsets = [0, 256], sizes = [8, 128], strides = [1, 1]} : vector<8x384xf32> to vector<8x128xf32>
    %471 = arith.mulf %461, %453 : vector<8x128xf32>
    %472 = arith.addf %470, %471 : vector<8x128xf32>
    %473 = math.tanh %472 : vector<8x128xf32>
    %cst_143 = arith.constant 1.000000e+00 : f32
    %474 = vector.broadcast %cst_143 : f32 to vector<8x128xf32>
    %475 = arith.subf %474, %469 : vector<8x128xf32>
    %476 = arith.mulf %475, %473 : vector<8x128xf32>
    %477 = arith.mulf %469, %445 : vector<8x128xf32>
    %478 = arith.addf %476, %477 : vector<8x128xf32>
    %c5_i32_144 = arith.constant 5 : i32
    %c8_i32_145 = arith.constant 8 : i32
    %479 = arith.muli %c5_i32_144, %c8_i32_145 : i32
    %480 = tpu.assume_multiple %479, 8 : i32
    %481 = arith.index_cast %480 : i32 to index
    %c0_146 = arith.constant 0 : index
    %482 = vector.load %arg18[%481, %c0_146] : memref<64x384xf32, #tpu.memory_space<vmem>>, vector<8x384xf32>
    %483 = arith.truncf %478 : vector<8x128xf32> to vector<8x128xbf16>
    %cst_147 = arith.constant dense<0.000000e+00> : vector<8x256xf32>
    %484 = tpu.matmul %483, %307, %cst_147 {dimension_numbers = #tpu.dot_dimension_numbers<[1], [0], [0], [1], [0, 0, 1, 1], [], []>} : vector<8x128xbf16>, vector<128x256xbf16>, vector<8x256xf32> -> vector<8x256xf32>
    %cst_148 = arith.constant dense<0.000000e+00> : vector<8x128xf32>
    %485 = tpu.matmul %483, %308, %cst_148 {dimension_numbers = #tpu.dot_dimension_numbers<[1], [0], [0], [1], [0, 0, 1, 1], [], []>} : vector<8x128xbf16>, vector<128x128xbf16>, vector<8x128xf32> -> vector<8x128xf32>
    %486 = arith.addf %485, %311 : vector<8x128xf32>
    %487 = vector.extract_strided_slice %482 {offsets = [0, 0], sizes = [8, 128], strides = [1, 1]} : vector<8x384xf32> to vector<8x128xf32>
    %488 = vector.extract_strided_slice %484 {offsets = [0, 0], sizes = [8, 128], strides = [1, 1]} : vector<8x256xf32> to vector<8x128xf32>
    %489 = arith.addf %487, %488 : vector<8x128xf32>
    %490 = arith.negf %489 : vector<8x128xf32>
    %491 = math.exp %490 : vector<8x128xf32>
    %cst_149 = arith.constant 1.000000e+00 : f32
    %492 = vector.broadcast %cst_149 : f32 to vector<8x128xf32>
    %493 = arith.addf %492, %491 : vector<8x128xf32>
    %494 = arith.divf %492, %493 : vector<8x128xf32>
    %495 = vector.extract_strided_slice %482 {offsets = [0, 128], sizes = [8, 128], strides = [1, 1]} : vector<8x384xf32> to vector<8x128xf32>
    %496 = vector.extract_strided_slice %484 {offsets = [0, 128], sizes = [8, 128], strides = [1, 1]} : vector<8x256xf32> to vector<8x128xf32>
    %497 = arith.addf %495, %496 : vector<8x128xf32>
    %498 = arith.negf %497 : vector<8x128xf32>
    %499 = math.exp %498 : vector<8x128xf32>
    %cst_150 = arith.constant 1.000000e+00 : f32
    %500 = vector.broadcast %cst_150 : f32 to vector<8x128xf32>
    %501 = arith.addf %500, %499 : vector<8x128xf32>
    %502 = arith.divf %500, %501 : vector<8x128xf32>
    %503 = vector.extract_strided_slice %482 {offsets = [0, 256], sizes = [8, 128], strides = [1, 1]} : vector<8x384xf32> to vector<8x128xf32>
    %504 = arith.mulf %494, %486 : vector<8x128xf32>
    %505 = arith.addf %503, %504 : vector<8x128xf32>
    %506 = math.tanh %505 : vector<8x128xf32>
    %cst_151 = arith.constant 1.000000e+00 : f32
    %507 = vector.broadcast %cst_151 : f32 to vector<8x128xf32>
    %508 = arith.subf %507, %502 : vector<8x128xf32>
    %509 = arith.mulf %508, %506 : vector<8x128xf32>
    %510 = arith.mulf %502, %478 : vector<8x128xf32>
    %511 = arith.addf %509, %510 : vector<8x128xf32>
    %c6_i32_152 = arith.constant 6 : i32
    %c8_i32_153 = arith.constant 8 : i32
    %512 = arith.muli %c6_i32_152, %c8_i32_153 : i32
    %513 = tpu.assume_multiple %512, 8 : i32
    %514 = arith.index_cast %513 : i32 to index
    %c0_154 = arith.constant 0 : index
    %515 = vector.load %arg18[%514, %c0_154] : memref<64x384xf32, #tpu.memory_space<vmem>>, vector<8x384xf32>
    %516 = arith.truncf %511 : vector<8x128xf32> to vector<8x128xbf16>
    %cst_155 = arith.constant dense<0.000000e+00> : vector<8x256xf32>
    %517 = tpu.matmul %516, %307, %cst_155 {dimension_numbers = #tpu.dot_dimension_numbers<[1], [0], [0], [1], [0, 0, 1, 1], [], []>} : vector<8x128xbf16>, vector<128x256xbf16>, vector<8x256xf32> -> vector<8x256xf32>
    %cst_156 = arith.constant dense<0.000000e+00> : vector<8x128xf32>
    %518 = tpu.matmul %516, %308, %cst_156 {dimension_numbers = #tpu.dot_dimension_numbers<[1], [0], [0], [1], [0, 0, 1, 1], [], []>} : vector<8x128xbf16>, vector<128x128xbf16>, vector<8x128xf32> -> vector<8x128xf32>
    %519 = arith.addf %518, %311 : vector<8x128xf32>
    %520 = vector.extract_strided_slice %515 {offsets = [0, 0], sizes = [8, 128], strides = [1, 1]} : vector<8x384xf32> to vector<8x128xf32>
    %521 = vector.extract_strided_slice %517 {offsets = [0, 0], sizes = [8, 128], strides = [1, 1]} : vector<8x256xf32> to vector<8x128xf32>
    %522 = arith.addf %520, %521 : vector<8x128xf32>
    %523 = arith.negf %522 : vector<8x128xf32>
    %524 = math.exp %523 : vector<8x128xf32>
    %cst_157 = arith.constant 1.000000e+00 : f32
    %525 = vector.broadcast %cst_157 : f32 to vector<8x128xf32>
    %526 = arith.addf %525, %524 : vector<8x128xf32>
    %527 = arith.divf %525, %526 : vector<8x128xf32>
    %528 = vector.extract_strided_slice %515 {offsets = [0, 128], sizes = [8, 128], strides = [1, 1]} : vector<8x384xf32> to vector<8x128xf32>
    %529 = vector.extract_strided_slice %517 {offsets = [0, 128], sizes = [8, 128], strides = [1, 1]} : vector<8x256xf32> to vector<8x128xf32>
    %530 = arith.addf %528, %529 : vector<8x128xf32>
    %531 = arith.negf %530 : vector<8x128xf32>
    %532 = math.exp %531 : vector<8x128xf32>
    %cst_158 = arith.constant 1.000000e+00 : f32
    %533 = vector.broadcast %cst_158 : f32 to vector<8x128xf32>
    %534 = arith.addf %533, %532 : vector<8x128xf32>
    %535 = arith.divf %533, %534 : vector<8x128xf32>
    %536 = vector.extract_strided_slice %515 {offsets = [0, 256], sizes = [8, 128], strides = [1, 1]} : vector<8x384xf32> to vector<8x128xf32>
    %537 = arith.mulf %527, %519 : vector<8x128xf32>
    %538 = arith.addf %536, %537 : vector<8x128xf32>
    %539 = math.tanh %538 : vector<8x128xf32>
    %cst_159 = arith.constant 1.000000e+00 : f32
    %540 = vector.broadcast %cst_159 : f32 to vector<8x128xf32>
    %541 = arith.subf %540, %535 : vector<8x128xf32>
    %542 = arith.mulf %541, %539 : vector<8x128xf32>
    %543 = arith.mulf %535, %511 : vector<8x128xf32>
    %544 = arith.addf %542, %543 : vector<8x128xf32>
    %c7_i32_160 = arith.constant 7 : i32
    %c8_i32_161 = arith.constant 8 : i32
    %545 = arith.muli %c7_i32_160, %c8_i32_161 : i32
    %546 = tpu.assume_multiple %545, 8 : i32
    %547 = arith.index_cast %546 : i32 to index
    %c0_162 = arith.constant 0 : index
    %548 = vector.load %arg18[%547, %c0_162] : memref<64x384xf32, #tpu.memory_space<vmem>>, vector<8x384xf32>
    %549 = arith.truncf %544 : vector<8x128xf32> to vector<8x128xbf16>
    %cst_163 = arith.constant dense<0.000000e+00> : vector<8x256xf32>
    %550 = tpu.matmul %549, %307, %cst_163 {dimension_numbers = #tpu.dot_dimension_numbers<[1], [0], [0], [1], [0, 0, 1, 1], [], []>} : vector<8x128xbf16>, vector<128x256xbf16>, vector<8x256xf32> -> vector<8x256xf32>
    %cst_164 = arith.constant dense<0.000000e+00> : vector<8x128xf32>
    %551 = tpu.matmul %549, %308, %cst_164 {dimension_numbers = #tpu.dot_dimension_numbers<[1], [0], [0], [1], [0, 0, 1, 1], [], []>} : vector<8x128xbf16>, vector<128x128xbf16>, vector<8x128xf32> -> vector<8x128xf32>
    %552 = arith.addf %551, %311 : vector<8x128xf32>
    %553 = vector.extract_strided_slice %548 {offsets = [0, 0], sizes = [8, 128], strides = [1, 1]} : vector<8x384xf32> to vector<8x128xf32>
    %554 = vector.extract_strided_slice %550 {offsets = [0, 0], sizes = [8, 128], strides = [1, 1]} : vector<8x256xf32> to vector<8x128xf32>
    %555 = arith.addf %553, %554 : vector<8x128xf32>
    %556 = arith.negf %555 : vector<8x128xf32>
    %557 = math.exp %556 : vector<8x128xf32>
    %cst_165 = arith.constant 1.000000e+00 : f32
    %558 = vector.broadcast %cst_165 : f32 to vector<8x128xf32>
    %559 = arith.addf %558, %557 : vector<8x128xf32>
    %560 = arith.divf %558, %559 : vector<8x128xf32>
    %561 = vector.extract_strided_slice %548 {offsets = [0, 128], sizes = [8, 128], strides = [1, 1]} : vector<8x384xf32> to vector<8x128xf32>
    %562 = vector.extract_strided_slice %550 {offsets = [0, 128], sizes = [8, 128], strides = [1, 1]} : vector<8x256xf32> to vector<8x128xf32>
    %563 = arith.addf %561, %562 : vector<8x128xf32>
    %564 = arith.negf %563 : vector<8x128xf32>
    %565 = math.exp %564 : vector<8x128xf32>
    %cst_166 = arith.constant 1.000000e+00 : f32
    %566 = vector.broadcast %cst_166 : f32 to vector<8x128xf32>
    %567 = arith.addf %566, %565 : vector<8x128xf32>
    %568 = arith.divf %566, %567 : vector<8x128xf32>
    %569 = vector.extract_strided_slice %548 {offsets = [0, 256], sizes = [8, 128], strides = [1, 1]} : vector<8x384xf32> to vector<8x128xf32>
    %570 = arith.mulf %560, %552 : vector<8x128xf32>
    %571 = arith.addf %569, %570 : vector<8x128xf32>
    %572 = math.tanh %571 : vector<8x128xf32>
    %cst_167 = arith.constant 1.000000e+00 : f32
    %573 = vector.broadcast %cst_167 : f32 to vector<8x128xf32>
    %574 = arith.subf %573, %568 : vector<8x128xf32>
    %575 = arith.mulf %574, %572 : vector<8x128xf32>
    %576 = arith.mulf %568, %544 : vector<8x128xf32>
    %577 = arith.addf %575, %576 : vector<8x128xf32>
    %c8_i32_168 = arith.constant 8 : i32
    %c0_169 = arith.constant 0 : index
    %c1_170 = arith.constant 1 : index
    %c0_171 = arith.constant 0 : index
    %c0_172 = arith.constant 0 : index
    %578 = vector.load %arg16[%c0_169, %c1_170, %c0_171, %c0_172] : memref<1x2x8x128xf32, #tpu.memory_space<vmem>>, vector<1x1x8x128xf32>
    %579 = vector.shape_cast %578 : vector<1x1x8x128xf32> to vector<8x128xf32>
    %580 = vector.shape_cast %577 : vector<8x128xf32> to vector<1x1x8x128xf32>
    tpu.vector_store %arg16[%c0_169, %c1_170, %c0_171, %c0_172], %580 {strides = array<i32>} : memref<1x2x8x128xf32, #tpu.memory_space<vmem>>, vector<1x1x8x128xf32>,
    %cst_173 = arith.constant 0.000000e+00 : f32
    %581 = vector.broadcast %cst_173 : f32 to vector<8x128xf32>
    %582 = arith.maximumf %577, %581 : vector<8x128xf32>
    %c0_174 = arith.constant 0 : index
    %c0_175 = arith.constant 0 : index
    %583 = vector.load %arg13[%c0_174, %c0_175] : memref<128x128xf32, #tpu.memory_space<vmem>>, vector<128x128xf32>
    %cst_176 = arith.constant dense<0.000000e+00> : vector<8x128xf32>
    %584 = tpu.matmul %582, %583, %cst_176 {dimension_numbers = #tpu.dot_dimension_numbers<[1], [0], [0], [1], [0, 0, 1, 1], [], []>} : vector<8x128xf32>, vector<128x128xf32>, vector<8x128xf32> -> vector<8x128xf32>
    %c0_177 = arith.constant 0 : index
    %c0_178 = arith.constant 0 : index
    %585 = vector.load %arg14[%c0_177, %c0_178] : memref<1x128xf32, #tpu.memory_space<vmem>>, vector<1x128xf32>
    %586 = vector.broadcast %585 : vector<1x128xf32> to vector<8x128xf32>
    %587 = arith.addf %584, %586 : vector<8x128xf32>
    %c0_179 = arith.constant 0 : index
    %c0_180 = arith.constant 0 : index
    %c0_181 = arith.constant 0 : index
    %588 = vector.load %arg15[%c0_179, %c0_180, %c0_181] : memref<1x8x128xf32, #tpu.memory_space<vmem>>, vector<1x8x128xf32>
    %589 = vector.shape_cast %588 : vector<1x8x128xf32> to vector<8x128xf32>
    %590 = vector.shape_cast %587 : vector<8x128xf32> to vector<1x8x128xf32>
    tpu.vector_store %arg15[%c0_179, %c0_180, %c0_181], %590 {strides = array<i32>} : memref<1x8x128xf32, #tpu.memory_space<vmem>>, vector<1x8x128xf32>,
    return
  }
  func.func @transform_0(%arg0: i32) -> (i32, i32, i32) {
    %c0_i32 = arith.constant 0 : i32
    %c0_i32_0 = arith.constant 0 : i32
    %c0_i32_1 = arith.constant 0 : i32
    return %arg0, %c0_i32, %c0_i32_0 : i32, i32, i32
  }
  func.func @transform_1(%arg0: i32) -> (i32, i32, i32, i32) {
    %c0_i32 = arith.constant 0 : i32
    %c0_i32_0 = arith.constant 0 : i32
    %c0_i32_1 = arith.constant 0 : i32
    %c0_i32_2 = arith.constant 0 : i32
    return %arg0, %c0_i32, %c0_i32_0, %c0_i32_1 : i32, i32, i32, i32
  }
  func.func @transform_2(%arg0: i32) -> (i32, i32) {
    %c0_i32 = arith.constant 0 : i32
    %c0_i32_0 = arith.constant 0 : i32
    %c0_i32_1 = arith.constant 0 : i32
    return %c0_i32, %c0_i32_0 : i32, i32
  }
  func.func @transform_3(%arg0: i32) -> (i32, i32) {
    %c0_i32 = arith.constant 0 : i32
    %c0_i32_0 = arith.constant 0 : i32
    %c0_i32_1 = arith.constant 0 : i32
    return %c0_i32, %c0_i32_0 : i32, i32
  }
  func.func @transform_4(%arg0: i32) -> (i32, i32) {
    %c0_i32 = arith.constant 0 : i32
    %c0_i32_0 = arith.constant 0 : i32
    %c0_i32_1 = arith.constant 0 : i32
    return %c0_i32, %c0_i32_0 : i32, i32
  }
  func.func @transform_5(%arg0: i32) -> (i32, i32) {
    %c0_i32 = arith.constant 0 : i32
    %c0_i32_0 = arith.constant 0 : i32
    %c0_i32_1 = arith.constant 0 : i32
    return %c0_i32, %c0_i32_0 : i32, i32
  }
  func.func @transform_6(%arg0: i32) -> (i32, i32) {
    %c0_i32 = arith.constant 0 : i32
    %c0_i32_0 = arith.constant 0 : i32
    %c0_i32_1 = arith.constant 0 : i32
    return %c0_i32, %c0_i32_0 : i32, i32
  }
  func.func @transform_7(%arg0: i32) -> (i32, i32) {
    %c0_i32 = arith.constant 0 : i32
    %c0_i32_0 = arith.constant 0 : i32
    %c0_i32_1 = arith.constant 0 : i32
    return %c0_i32, %c0_i32_0 : i32, i32
  }
  func.func @transform_8(%arg0: i32) -> (i32, i32) {
    %c0_i32 = arith.constant 0 : i32
    %c0_i32_0 = arith.constant 0 : i32
    %c0_i32_1 = arith.constant 0 : i32
    return %c0_i32, %c0_i32_0 : i32, i32
  }
  func.func @transform_9(%arg0: i32) -> (i32, i32) {
    %c0_i32 = arith.constant 0 : i32
    %c0_i32_0 = arith.constant 0 : i32
    %c0_i32_1 = arith.constant 0 : i32
    return %c0_i32, %c0_i32_0 : i32, i32
  }
  func.func @transform_10(%arg0: i32) -> (i32, i32) {
    %c0_i32 = arith.constant 0 : i32
    %c0_i32_0 = arith.constant 0 : i32
    %c0_i32_1 = arith.constant 0 : i32
    return %c0_i32, %c0_i32_0 : i32, i32
  }
  func.func @transform_11(%arg0: i32) -> (i32, i32) {
    %c0_i32 = arith.constant 0 : i32
    %c0_i32_0 = arith.constant 0 : i32
    %c0_i32_1 = arith.constant 0 : i32
    return %c0_i32, %c0_i32_0 : i32, i32
  }
  func.func @transform_12(%arg0: i32) -> (i32, i32) {
    %c0_i32 = arith.constant 0 : i32
    %c0_i32_0 = arith.constant 0 : i32
    %c0_i32_1 = arith.constant 0 : i32
    return %c0_i32, %c0_i32_0 : i32, i32
  }
  func.func @transform_13(%arg0: i32) -> (i32, i32) {
    %c0_i32 = arith.constant 0 : i32
    %c0_i32_0 = arith.constant 0 : i32
    %c0_i32_1 = arith.constant 0 : i32
    return %c0_i32, %c0_i32_0 : i32, i32
  }
  func.func @transform_14(%arg0: i32) -> (i32, i32, i32) {
    %c0_i32 = arith.constant 0 : i32
    %c0_i32_0 = arith.constant 0 : i32
    %c0_i32_1 = arith.constant 0 : i32
    return %arg0, %c0_i32, %c0_i32_0 : i32, i32, i32
  }
  func.func @transform_15(%arg0: i32) -> (i32, i32, i32, i32) {
    %c0_i32 = arith.constant 0 : i32
    %c0_i32_0 = arith.constant 0 : i32
    %c0_i32_1 = arith.constant 0 : i32
    %c0_i32_2 = arith.constant 0 : i32
    return %arg0, %c0_i32, %c0_i32_0, %c0_i32_1 : i32, i32, i32, i32
  }
}

</mosaic_0001>

<bundles_post_ra>
// kernel: tpu_custom_call.1
= control target key start
LH: loop header
LB: loop body
LE: loop exit
PB: predicated region body
PF: predicated region fallthrough
CT: control target
= control target key end

     0   :  { %21 = vsyncpa [#allocation5], 0  ;;  %s5544_s0 = inlined_call_operand.hbm [shape: f32[1,64,128], index: 0, kind: input, shape index: {}]   ;;  %s5545_s1 = inlined_call_operand.hbm [shape: f32[1,2,8,128], index: 1, kind: input, shape index: {}]   ;;  %s5546_s2 = inlined_call_operand.hbm [shape: bf16[128,384], index: 2, kind: input, shape index: {}]   ;;  %s5547_s3 = inlined_call_operand.hbm [shape: bf16[128,256], index: 3, kind: input, shape index: {}]   ;;  %s5548_s4 = inlined_call_operand.hbm [shape: bf16[128,128], index: 4, kind: input, shape index: {}]   ;;  %s5549_s5 = inlined_call_operand.vmem [shape: f32[1,384], index: 5, kind: input, shape index: {}]   ;;  %s5550_s6 = inlined_call_operand.vmem [shape: f32[1,128], index: 6, kind: input, shape index: {}]   ;;  %s5551_s7 = inlined_call_operand.hbm [shape: bf16[128,384], index: 7, kind: input, shape index: {}]   ;;  %s5552_s8 = inlined_call_operand.hbm [shape: bf16[128,256], index: 8, kind: input, shape index: {}]   ;;  %s5553_s9 = inlined_call_operand.hbm [shape: bf16[128,128], index: 9, kind: input, shape index: {}]   ;;  %s5554_s10 = inlined_call_operand.vmem [shape: f32[1,384], index: 10, kind: input, shape index: {}]   ;;  %s5555_s11 = inlined_call_operand.vmem [shape: f32[1,128], index: 11, kind: input, shape index: {}]   ;;  %s5556_s12 = inlined_call_operand.hbm [shape: f32[128,128], index: 12, kind: input, shape index: {}]   ;;  %s5557_s13 = inlined_call_operand.vmem [shape: f32[1,128], index: 13, kind: input, shape index: {}]   ;;  %s5558_s14 = inlined_call_operand.hbm [shape: f32[1,8,128], index: 14, kind: output, shape index: {0}]   ;;  %s5559_s15 = inlined_call_operand.hbm [shape: f32[1,2,8,128], index: 15, kind: output, shape index: {1}]  }
   0x1   :  { %22 = vsyncpa [#allocation8], 0 }
   0x2   :  { %23 = vsyncpa [#allocation11], 0 }
   0x3   :  { %24 = vsyncpa [#allocation14], 0 }
   0x4   :  { %25 = vsyncpa [#allocation17], 0 }
   0x5   :  { %26 = vsyncpa [#allocation6], 0 }
   0x6   :  { %27 = vsyncpa [#allocation21], 0  ;;  %s4397_s18 = smov [#allocation7]   ;;  %s4398_s20 = smov [#allocation10]  }
   0x7   :  { %s45_s19 = sshll.u32 %s4397_s18, 4  ;;  %s69_s21 = sshll.u32 %s4398_s20, 4  ;;  %s46_s19 = int_to_ptr.vmem [resolvable:$true] %s45_s19  ;;  %s70_s21 = int_to_ptr.vmem [resolvable:$true] %s69_s21 }
   0x8   :  { %s4171_s22 = scalar_lea.vmem %s46_s19, 256  ;;  %p4176_p1 = scmp.lt.s32.totalorder %s46_s19, %s46_s19 }
   0x9   :  { %p4172_p0 = scmp.ne.s32.totalorder %s46_s19, %s4171_s22  ;;  %p4177_p2 = scmp.lt.s32.totalorder %s4171_s22, %s4171_s22 }
   0xb   :  { %p4178_p3 = por %p4177_p2, %p4176_p1 }
   0xd   :  { %p4179_p4 = pnand %p4178_p3, %p4172_p0 }
   0xf   :  { %4182 = shalt.err (!%p4179_p4)
}
  0x10   :  { %s4399_s23 = smov 128   ;;  %s4400_s24 = smov 8  }
  0x11   :  { %51 = dma.hbm_to_vmem [thread:$0]  %s5545_s1, 256, %s46_s19, [#allocation8], %s4399_s23, %s4399_s23, %s4400_s24  }
  0x12   :  { %s4191_s27 = scalar_lea.vmem %s70_s21, 2048  ;;  %p4196_p6 = scmp.lt.s32.totalorder %s70_s21, %s70_s21 }
  0x13   :  { %p4192_p5 = scmp.ne.s32.totalorder %s70_s21, %s4191_s27  ;;  %p4197_p7 = scmp.lt.s32.totalorder %s4191_s27, %s4191_s27 }
  0x15   :  { %p4198_p8 = por %p4197_p7, %p4196_p6 }
  0x17   :  { %p4199_p9 = pnand %p4198_p8, %p4192_p5 }
  0x19   :  { %4202 = shalt.err (!%p4199_p9)
}
  0x1a   :  { %75 = dma.hbm_to_vmem [thread:$0]  %s5547_s3, 2048, %s70_s21, [#allocation11], %s4399_s23, %s4399_s23, %s4400_s24  }
  0x1b   :  { %s4401_s30 = smov [#allocation13]  }
  0x1c   :  { %s97_s16 = sshll.u32 %s4401_s30, 4  ;;  %s98_s16 = int_to_ptr.vmem [resolvable:$true] %s97_s16 }
  0x1d   :  { %s4211_s17 = scalar_lea.vmem %s98_s16, 3072  ;;  %p4216_p11 = scmp.lt.s32.totalorder %s98_s16, %s98_s16 }
  0x1e   :  { %p4212_p10 = scmp.ne.s32.totalorder %s98_s16, %s4211_s17  ;;  %p4217_p12 = scmp.lt.s32.totalorder %s4211_s17, %s4211_s17 }
  0x20   :  { %p4218_p13 = por %p4217_p12, %p4216_p11 }
  0x22   :  { %p4219_p0 = pnand %p4218_p13, %p4212_p10 }
  0x24   :  { %4222 = shalt.err (!%p4219_p0)
}
  0x25   :  { %s4402_s1 = smov 192   ;;  %s4403_s18 = smov 12  }
  0x26   :  { %103 = dma.hbm_to_vmem [thread:$0]  %s5551_s7, 3072, %s98_s16, [#allocation14], %s4402_s1, %s4402_s1, %s4403_s18  }
  0x27   :  { %s4404_s3 = smov [#allocation16]   ;;  %s4405_s22 = smov [#allocation4]  }
  0x28   :  { %s121_s21 = sshll.u32 %s4404_s3, 4  ;;  %s33_s25 = sshll.u32 %s4405_s22, 4  ;;  %s122_s21 = int_to_ptr.vmem [resolvable:$true] %s121_s21  ;;  %s34_s25 = int_to_ptr.vmem [resolvable:$true] %s33_s25 }
  0x29   :  { %s4231_s26 = scalar_lea.vmem %s122_s21, 1024  ;;  %p4236_p2 = scmp.lt.s32.totalorder %s122_s21, %s122_s21 }
  0x2a   :  { %p4232_p1 = scmp.ne.s32.totalorder %s122_s21, %s4231_s26  ;;  %p4237_p3 = scmp.lt.s32.totalorder %s4231_s26, %s4231_s26 }
  0x2c   :  { %p4238_p4 = por %p4237_p3, %p4236_p2 }
  0x2e   :  { %p4239_p5 = pnand %p4238_p4, %p4232_p1 }
  0x30   :  { %4242 = shalt.err (!%p4239_p5)
}
  0x31   :  { %s4406_s27 = smov 64   ;;  %s4407_s28 = smov 4  }
  0x32   :  { %127 = dma.hbm_to_vmem [thread:$0]  %s5553_s9, 1024, %s122_s21, [#allocation17], %s4406_s27, %s4406_s27, %s4407_s28  }
  0x33   :  { %s4251_s7 = scalar_lea.vmem %s34_s25, 1024  ;;  %p4256_p7 = scmp.lt.s32.totalorder %s34_s25, %s34_s25 }
  0x34   :  { %p4252_p6 = scmp.ne.s32.totalorder %s34_s25, %s4251_s7  ;;  %p4257_p8 = scmp.lt.s32.totalorder %s4251_s7, %s4251_s7 }
  0x36   :  { %p4258_p9 = por %p4257_p8, %p4256_p7 }
  0x38   :  { %p4259_p10 = pnand %p4258_p9, %p4252_p6 }
  0x3a   :  { %4262 = shalt.err (!%p4259_p10)
}
  0x3b   :  { %39 = dma.hbm_to_vmem [thread:$0]  %s5544_s0, 1024, %s34_s25, [#allocation5], %s4399_s23, %s4399_s23, %s4400_s24  }
  0x3c   :  { %s4408_s19 = smov [#allocation9]   ;;  %s4409_s3 = smov [#allocation12]  }
  0x3d   :  { %s57_s20 = sshll.u32 %s4408_s19, 4  ;;  %s81_s9 = sshll.u32 %s4409_s3, 4  ;;  %s58_s20 = int_to_ptr.vmem [resolvable:$true] %s57_s20  ;;  %s82_s9 = int_to_ptr.vmem [resolvable:$true] %s81_s9 }
  0x3e   :  { %s4271_s21 = scalar_lea.vmem %s58_s20, 3072  ;;  %p4276_p12 = scmp.lt.s32.totalorder %s58_s20, %s58_s20 }
  0x3f   :  { %p4272_p11 = scmp.ne.s32.totalorder %s58_s20, %s4271_s21  ;;  %p4277_p13 = scmp.lt.s32.totalorder %s4271_s21, %s4271_s21 }
  0x41   :  { %p4278_p0 = por %p4277_p13, %p4276_p12 }
  0x43   :  { %p4279_p1 = pnand %p4278_p0, %p4272_p11 }
  0x45   :  { %4282 = shalt.err (!%p4279_p1)
}
  0x46   :  { %63 = dma.hbm_to_vmem [thread:$0]  %s5546_s2, 3072, %s58_s20, [#allocation8], %s4402_s1, %s4402_s1, %s4403_s18  }
  0x47   :  { %s4291_s0 = scalar_lea.vmem %s82_s9, 1024  ;;  %p4296_p3 = scmp.lt.s32.totalorder %s82_s9, %s82_s9 }
  0x48   :  { %p4292_p2 = scmp.ne.s32.totalorder %s82_s9, %s4291_s0  ;;  %p4297_p4 = scmp.lt.s32.totalorder %s4291_s0, %s4291_s0 }
  0x4a   :  { %p4298_p5 = por %p4297_p4, %p4296_p3 }
  0x4c   :  { %p4299_p6 = pnand %p4298_p5, %p4292_p2 }
  0x4e   :  { %4302 = shalt.err (!%p4299_p6)
}
  0x4f   :  { %87 = dma.hbm_to_vmem [thread:$0]  %s5548_s4, 1024, %s82_s9, [#allocation11], %s4406_s27, %s4406_s27, %s4407_s28  }
  0x50   :  { %s4410_s30 = smov [#allocation15]   ;;  %s4411_s16 = smov [#allocation18]  }
  0x51   :  { %s109_s7 = sshll.u32 %s4410_s30, 4  ;;  %s137_s2 = sshll.u32 %s4411_s16, 4  ;;  %s110_s7 = int_to_ptr.vmem [resolvable:$true] %s109_s7  ;;  %s138_s2 = int_to_ptr.vmem [resolvable:$true] %s137_s2 }
  0x52   :  { %s4311_s1 = scalar_lea.vmem %s110_s7, 2048  ;;  %p4316_p8 = scmp.lt.s32.totalorder %s110_s7, %s110_s7 }
  0x53   :  { %p4312_p7 = scmp.ne.s32.totalorder %s110_s7, %s4311_s1  ;;  %p4317_p9 = scmp.lt.s32.totalorder %s4311_s1, %s4311_s1 }
  0x55   :  { %p4318_p10 = por %p4317_p9, %p4316_p8 }
  0x57   :  { %p4319_p11 = pnand %p4318_p10, %p4312_p7 }
  0x59   :  { %4322 = shalt.err (!%p4319_p11)
}
  0x5a   :  { %115 = dma.hbm_to_vmem [thread:$0]  %s5552_s8, 2048, %s110_s7, [#allocation14], %s4399_s23, %s4399_s23, %s4400_s24  }
  0x5b   :  { %s4331_s4 = scalar_lea.vmem %s138_s2, 2048  ;;  %p4336_p13 = scmp.lt.s32.totalorder %s138_s2, %s138_s2 }
  0x5c   :  { %p4332_p12 = scmp.ne.s32.totalorder %s138_s2, %s4331_s4  ;;  %p4337_p0 = scmp.lt.s32.totalorder %s4331_s4, %s4331_s4 }
  0x5e   :  { %p4338_p1 = por %p4337_p0, %p4336_p13 }
  0x60   :  { %p4339_p2 = pnand %p4338_p1, %p4332_p12 }
  0x62   :  { %4342 = shalt.err (!%p4339_p2)
}
  0x63   :  { %143 = dma.hbm_to_vmem [thread:$0]  %s5556_s12, 2048, %s138_s2, [#allocation17], %s4399_s23, %s4399_s23, %s4400_s24  }
  0x64   :  { %4383 = dma.done.wait [#allocation5], 1024  }
  0x65   :  { %4384 = vsyncadd [#allocation5], 4294966272 }
  0x66   :  { %4385 = dma.done.wait [#allocation8], 3328  }
  0x67   :  { %4386 = vsyncadd [#allocation8], 4294963968 }
  0x68   :  { %4387 = dma.done.wait [#allocation11], 3072  }
  0x69   :  { %4388 = vsyncadd [#allocation11], 4294964224 }
  0x6a   :  { %4389 = dma.done.wait [#allocation14], 5120  }
  0x6b   :  { %4390 = vsyncadd [#allocation14], 4294962176 }
  0x6c   :  { %4391 = dma.done.wait [#allocation17], 3072  }
  0x6d   :  { %4392 = vsyncadd [#allocation17], 4294964224  ;;  %v5563_v0 = vmov 0   ;;  %v3827_v1 = vld [vmem:[#allocation9 + $0xac] ss:$12 sps:$4 sm:$0xff]   ;;  %v174_v12 = vld [vmem:[#allocation4] sm:$0xff] }
  0x6e   :  { %395 = vmatprep.mubr.bf16.mxu0 %v5563_v0  ;;  %v3829_v2 = vld [vmem:[#allocation9 + $0xa8] ss:$12 sps:$4 sm:$0xff]   ;;  %363 = vmatprep.subr.bf16.mxu0 %v3827_v1  ;;  %v3832_v4 = vld [vmem:[#allocation9 + $0x90] ss:$12 sps:$4 sm:$0xff]   ;;  %v3835_v6 = vld [vmem:[#allocation9 + $0x78] ss:$12 sps:$4 sm:$0xff]   ;;  %v220_v1 = vlaneseq }
  0x6f   :  { %v3830_v3 = vld [vmem:[#allocation9 + $0x94] ss:$12 sps:$4 sm:$0xff]   ;;  %364 = vmatpush1.bf16.msra.mxu0 %v3829_v2  ;;  %v3833_v5 = vld [vmem:[#allocation9 + $0x7c] ss:$12 sps:$4 sm:$0xff]   ;;  %v3836_v7 = vld [vmem:[#allocation9 + $0x64] ss:$12 sps:$4 sm:$0xff]  }
  0x70   :  { %365 = vmatprep.subr.bf16.mxu0 %v3830_v3  ;;  %v3848_v8 = vld [vmem:[#allocation9 + $0xb0] ss:$12 sps:$4 sm:$0xff]   ;;  %v3838_v9 = vld [vmem:[#allocation9 + $0x60] ss:$12 sps:$4 sm:$0xff]   ;;  %v3852_v11 = vld [vmem:[#allocation9 + $0x98] ss:$12 sps:$4 sm:$0xff]  }
  0x71   :  { %v3839_v10 = vld [vmem:[#allocation9 + $0x4c] ss:$12 sps:$4 sm:$0xff]   ;;  %3404 = vmatprep.subr.bf16.mxu1 %v3848_v8  ;;  %v3841_v14 = vld [vmem:[#allocation9 + $0x48] ss:$12 sps:$4 sm:$0xff]   ;;  %v3844_v19 = vld [vmem:[#allocation9 + $0x30] ss:$12 sps:$4 sm:$0xff]  }
  0x72   :  { %3405 = vmatpush3.bf16.msra.mxu1 %v3848_v8  ;;  %v175_v13 = vld [vmem:[#allocation4 + $0x8] sm:$0xff]  ;;  %v3856_v16 = vld [vmem:[#allocation9 + $0x80] ss:$12 sps:$4 sm:$0xff]   ;;  %v3860_v18 = vld [vmem:[#allocation9 + $0x68] ss:$12 sps:$4 sm:$0xff]   ;;  %v5565_v43 = vmov 0.0  }
  0x73   :  { %366 = vmatpush1.bf16.msra.mxu0 %v3832_v4  ;;  %3406 = vmatprep.subr.bf16.mxu1 %v3852_v11  ;;  %v182_v15 = vpack.c.bf16 %v175_v13, %v174_v12  ;;  %v3842_v17 = vld [vmem:[#allocation9 + $0x34] ss:$12 sps:$4 sm:$0xff]   ;;  %v3845_v20 = vld [vmem:[#allocation9 + $0x1c] ss:$12 sps:$4 sm:$0xff]   ;;  %v3847_v22 = vld [vmem:[#allocation9 + $0x18] ss:$12 sps:$4 sm:$0xff]  }
  0x74   :  { %367 = vmatprep.subr.bf16.mxu0 %v3833_v5  ;;  %v3864_v21 = vld [vmem:[#allocation9 + $0x50] ss:$12 sps:$4 sm:$0xff]   ;;  %v3868_v24 = vld [vmem:[#allocation9 + $0x38] ss:$12 sps:$4 sm:$0xff]   ;;  %v3851_v25 = vld [vmem:[#allocation9] ss:$12 sps:$4 sm:$0xff]  }
  0x75   :  { %3420 = vmatprep.mubr.bf16.mxu1 %v182_v15  ;;  %v3849_v23 = vld [vmem:[#allocation9 + $0x4] ss:$12 sps:$4 sm:$0xff]   ;;  %v4552_v26 = vld [vmem:[#allocation10 + $0x74] ss:$8 sps:$4 sm:$0xff]   ;;  %v3872_v27 = vld [vmem:[#allocation9 + $0x20] ss:$12 sps:$4 sm:$0xff]  }
  0x76   :  { %3407 = vmatpush3.bf16.msra.mxu1 %v3852_v11  ;;  %v4554_v28 = vld [vmem:[#allocation10 + $0x70] ss:$8 sps:$4 sm:$0xff]   ;;  %v4557_v29 = vld [vmem:[#allocation10 + $0x64] ss:$8 sps:$4 sm:$0xff]   ;;  %v4559_v30 = vld [vmem:[#allocation10 + $0x60] ss:$8 sps:$4 sm:$0xff]  }
  0x77   :  { %368 = vmatpush1.bf16.msra.mxu0 %v3835_v6  ;;  %3408 = vmatprep.subr.bf16.mxu1 %v3856_v16  ;;  %v176_v31 = vld [vmem:[#allocation4 + $0x10] sm:$0xff]  ;;  %v3876_v32 = vld [vmem:[#allocation9 + $0x8] ss:$12 sps:$4 sm:$0xff]   ;;  %v4566_v35 = vld [vmem:[#allocation10 + $0x50] ss:$8 sps:$4 sm:$0xff]   ;;  %vm4414_vm0 = vmmov 0  }
  0x78   :  { %369 = vmatprep.subr.bf16.mxu0 %v3836_v7  ;;  %v177_v33 = vld [vmem:[#allocation4 + $0x18] sm:$0xff]  ;;  %v4564_v34 = vld [vmem:[#allocation10 + $0x54] ss:$8 sps:$4 sm:$0xff]   ;;  %v4584_v46 = vld [vmem:[#allocation10 + $0x30] ss:$8 sps:$4 sm:$0xff]   ;;  %v4679_v2 = vshrl.u32 %v220_v1, 7 }
  0x79   :  { %v183_v36 = vpack.c.bf16 %v177_v33, %v176_v31  ;;  %v4568_v37 = vld [vmem:[#allocation10 + $0x44] ss:$8 sps:$4 sm:$0xff]   ;;  %v178_v38 = vld [vmem:[#allocation4 + $0x20] sm:$0xff]  ;;  %v179_v39 = vld [vmem:[#allocation4 + $0x28] sm:$0xff] }
  0x7a   :  { %3409 = vmatpush3.bf16.msra.mxu1 %v3856_v16  ;;  %v4572_v40 = vld [vmem:[#allocation12 + $0x38] sm:$0xff]   ;;  %v4574_v41 = vld [vmem:[#allocation10 + $0x40] ss:$8 sps:$4 sm:$0xff]   ;;  %v184_v44 = vpack.c.bf16 %v179_v39, %v178_v38  ;;  %v4581_v45 = vld [vmem:[#allocation12 + $0x30] sm:$0xff]   ;;  %5569 = vst [vmem:[#allocation29_spill] sm:$0xff] %v4679_v2  ;;  %v5562_v3 = vsub.s32 0, %v4679_v2 }
  0x7b   :  { %370 = vmatpush1.bf16.msra.mxu0 %v3838_v9  ;;  %3410 = vmatprep.subr.bf16.mxu1 %v3860_v18  ;;  %v4576_v42 = vld [vmem:[#allocation10 + $0x34] ss:$8 sps:$4 sm:$0xff]   ;;  %v180_v47 = vld [vmem:[#allocation4 + $0x30] sm:$0xff]  ;;  %v181_v48 = vld [vmem:[#allocation4 + $0x38] sm:$0xff]  ;;  %v5561_v6 = vsub.s32 1, %v4679_v2  ;;  %v5560_v9 = vsub.s32 2, %v4679_v2 }
  0x7c   :  { %371 = vmatprep.subr.bf16.mxu0 %v3839_v10  ;;  %v4587_v49 = vld [vmem:[#allocation10 + $0x24] ss:$8 sps:$4 sm:$0xff]   ;;  %v4594_v51 = vld [vmem:[#allocation10 + $0x20] ss:$8 sps:$4 sm:$0xff]   ;;  %v185_v52 = vpack.c.bf16 %v181_v48, %v180_v47  ;;  %v4597_v53 = vld [vmem:[#allocation10 + $0x14] ss:$8 sps:$4 sm:$0xff]  }
  0x7d   :  { %v4591_v50 = vld [vmem:[#allocation12 + $0x28] sm:$0xff]   ;;  %v4602_v54 = vld [vmem:[#allocation12 + $0x20] sm:$0xff]   ;;  %v4605_v55 = vld [vmem:[#allocation10 + $0x10] ss:$8 sps:$4 sm:$0xff]  }
  0x7e   :  { %3411 = vmatpush3.bf16.msra.mxu1 %v3860_v18  ;;  %v4610_v56 = vld [vmem:[#allocation10 + $0x4] ss:$8 sps:$4 sm:$0xff]   ;;  %v4614_v57 = vld [vmem:[#allocation12 + $0x18] sm:$0xff]   ;;  %v4617_v58 = vld [vmem:[#allocation10] ss:$8 sps:$4 sm:$0xff]  }
  0x7f   :  { %372 = vmatpush1.bf16.msra.mxu0 %v3841_v14  ;;  %3412 = vmatprep.subr.bf16.mxu1 %v3864_v21  ;;  %v4619_v59 = vld [vmem:[#allocation7] sm:$0xff]  ;;  %v4635_v62 = vld [vmem:[#allocation12 + $0x8] sm:$0xff]   ;;  %v4642_v63 = vld [vmem:[#allocation12] sm:$0xff]  }
  0x80   :  { %373 = vmatprep.subr.bf16.mxu0 %v3842_v17  ;;  %v4625_v60 = vld [vmem:[#allocation12 + $0x10] sm:$0xff]   ;;  %v571_v61 = vpack.c.bf16 %v4619_v59, %v4619_v59 }
  0x81   :  { %v218_v4 = vld [vmem:[%s5549_s5] sm:$0x7] }
  0x82   :  { %3413 = vmatpush3.bf16.msra.mxu1 %v3864_v21  ;;  %v223_v8 = vrot.slane %v218_v4, %v5562_v3  ;;  %v227_v11 = vrot.slane %v218_v4, %v5561_v6 }
  0x83   :  { %374 = vmatpush1.bf16.msra.mxu0 %v3844_v19  ;;  %3414 = vmatprep.subr.bf16.mxu1 %v3868_v24 }
  0x84   :  { %375 = vmatprep.subr.bf16.mxu0 %v3845_v20 }
  0x86   :  { %3415 = vmatpush3.bf16.msra.mxu1 %v3868_v24 }
  0x87   :  { %376 = vmatpush1.bf16.msra.mxu0 %v3847_v22  ;;  %3416 = vmatprep.subr.bf16.mxu1 %v3872_v27 }
  0x88   :  { %377 = vmatprep.subr.bf16.mxu0 %v3849_v23 }
  0x8a   :  { %3417 = vmatpush3.bf16.msra.mxu1 %v3872_v27 }
  0x8b   :  { %378 = vmatpush1.bf16.msra.mxu0 %v3851_v25  ;;  %3418 = vmatprep.subr.bf16.mxu1 %v3876_v32 }
  0x8c   :  { %652 = vmatprep.subr.bf16.mxu0 %v4552_v26 }
  0x8e   :  { %396 = vmatmul.mubr.bf16.vlgmr.msra.gmra.mxu0 %v182_v15  ;;  %3419 = vmatpush3.bf16.msra.mxu1 %v3876_v32  ;;  %v4697_v15 = vrot.slane %v218_v4, %v5560_v9 }
  0x8f   :  { %653 = vmatpush1.bf16.msra.mxu0 %v4554_v28  ;;  %405 = vmatprep.mubr.bf16.mxu0 %v5563_v0 }
  0x90   :  { %654 = vmatprep.subr.bf16.mxu0 %v4557_v29  ;;  %3428 = vmatprep.subr.bf16.mxu1 %v5565_v43 }
  0x91   :  { %3421 = vmatmul.mubr.bf16.vlgmr.msra.gmra.mxu1 %v183_v36 }
  0x92   :  { %3429 = vmatpush3.bf16.msra.mxu1 %v4572_v40  ;;  %3424 = vmatprep.mubr.bf16.mxu1 %v184_v44 }
  0x93   :  { %655 = vmatpush1.bf16.msra.mxu0 %v4559_v30  ;;  %3430 = vmatprep.subr.bf16.mxu1 %v5565_v43 }
  0x94   :  { %656 = vmatprep.subr.bf16.mxu0 %v4564_v34 }
  0x96   :  { %406 = vmatmul.mubr.bf16.gmra.mxu0 %v183_v36  ;;  %3431 = vmatpush3.bf16.msra.mxu1 %v4581_v45 }
  0x97   :  { %657 = vmatpush1.bf16.msra.mxu0 %v4566_v35  ;;  %415 = vmatprep.mubr.bf16.mxu0 %v5563_v0 }
  0x98   :  { %658 = vmatprep.subr.bf16.mxu0 %v4568_v37  ;;  %3432 = vmatprep.subr.bf16.mxu1 %v5565_v43 }
  0x99   :  { %3425 = vmatmul.mubr.bf16.gmra.mxu1 %v185_v52 }
  0x9a   :  { %3433 = vmatpush3.bf16.msra.mxu1 %v4591_v50  ;;  %3444 = vmatprep.mubr.msk.bf16.mxu1 %vm4414_vm0, %v5565_v43 }
  0x9b   :  { %659 = vmatpush1.bf16.msra.mxu0 %v4574_v41  ;;  %3434 = vmatprep.subr.bf16.mxu1 %v5565_v43 }
  0x9c   :  { %660 = vmatprep.subr.bf16.mxu0 %v4576_v42 }
  0x9e   :  { %416 = vmatmul.mubr.bf16.gmra.mxu0 %v184_v44  ;;  %3435 = vmatpush3.bf16.msra.mxu1 %v4602_v54 }
  0x9f   :  { %661 = vmatpush1.bf16.msra.mxu0 %v4584_v46  ;;  %425 = vmatprep.mubr.bf16.mxu0 %v5563_v0 }
  0xa0   :  { %662 = vmatprep.subr.bf16.mxu0 %v4587_v49  ;;  %3436 = vmatprep.subr.bf16.mxu1 %v5565_v43 }
  0xa2   :  { %3437 = vmatpush3.bf16.msra.mxu1 %v4614_v57 }
  0xa3   :  { %663 = vmatpush1.bf16.msra.mxu0 %v4594_v51  ;;  %3438 = vmatprep.subr.bf16.mxu1 %v5565_v43 }
  0xa4   :  { %664 = vmatprep.subr.bf16.mxu0 %v4597_v53 }
  0xa6   :  { %426 = vmatmul.mubr.bf16.gmra.mxu0 %v185_v52  ;;  %3439 = vmatpush3.bf16.msra.mxu1 %v4625_v60 }
  0xa7   :  { %665 = vmatpush1.bf16.msra.mxu0 %v4605_v55  ;;  %684 = vmatprep.mubr.bf16.mxu0 %v5563_v0 }
  0xa8   :  { %666 = vmatprep.subr.bf16.mxu0 %v4610_v56  ;;  %3440 = vmatprep.subr.bf16.mxu1 %v5565_v43 }
  0xaa   :  { %3441 = vmatpush3.bf16.msra.mxu1 %v4635_v62 }
  0xab   :  { %667 = vmatpush1.bf16.msra.mxu0 %v4617_v58  ;;  %3442 = vmatprep.subr.bf16.mxu1 %v5565_v43 }
  0xac   :  { %810 = vmatprep.subr.bf16.mxu0 %v4552_v26 }
  0xae   :  { %685 = vmatmul.mubr.bf16.vlgmr.msra.gmra.mxu0 %v571_v61  ;;  %3443 = vmatpush3.bf16.msra.mxu1 %v4642_v63 }
  0xaf   :  { %811 = vmatpush1.bf16.msra.mxu0 %v4554_v28  ;;  %842 = vmatprep.mubr.bf16.mxu0 %v5563_v0 }
  0xb0   :  { %812 = vmatprep.subr.bf16.mxu0 %v4557_v29  ;;  %3448 = vmatprep.subr.bf16.mxu1 %v5565_v43 }
  0xb1   :  { %3445 = vmatmul.mubr.bf16.vlgmr.msra.gmra.mxu1 %v571_v61 }
  0xb2   :  { %3449 = vmatpush3.bf16.msra.mxu1 %v4572_v40  ;;  %3464 = vmatprep.mubr.msk.bf16.mxu1 %vm4414_vm0, %v5565_v43 }
  0xb3   :  { %813 = vmatpush1.bf16.msra.mxu0 %v4559_v30  ;;  %3450 = vmatprep.subr.bf16.mxu1 %v5565_v43 }
  0xb4   :  { %814 = vmatprep.subr.bf16.mxu0 %v4564_v34 }
  0xb6   :  { %3451 = vmatpush3.bf16.msra.mxu1 %v4581_v45 }
  0xb7   :  { %815 = vmatpush1.bf16.msra.mxu0 %v4566_v35  ;;  %3452 = vmatprep.subr.bf16.mxu1 %v5565_v43 }
  0xb8   :  { %816 = vmatprep.subr.bf16.mxu0 %v4568_v37 }
  0xba   :  { %3453 = vmatpush3.bf16.msra.mxu1 %v4591_v50 }
  0xbb   :  { %817 = vmatpush1.bf16.msra.mxu0 %v4574_v41  ;;  %3454 = vmatprep.subr.bf16.mxu1 %v5565_v43 }
  0xbc   :  { %818 = vmatprep.subr.bf16.mxu0 %v4576_v42 }
  0xbe   :  { %3455 = vmatpush3.bf16.msra.mxu1 %v4602_v54 }
  0xbf   :  { %819 = vmatpush1.bf16.msra.mxu0 %v4584_v46  ;;  %3456 = vmatprep.subr.bf16.mxu1 %v5565_v43 }
  0xc0   :  { %820 = vmatprep.subr.bf16.mxu0 %v4587_v49 }
  0xc2   :  { %3457 = vmatpush3.bf16.msra.mxu1 %v4614_v57 }
  0xc3   :  { %821 = vmatpush1.bf16.msra.mxu0 %v4594_v51  ;;  %3458 = vmatprep.subr.bf16.mxu1 %v5565_v43 }
  0xc4   :  { %822 = vmatprep.subr.bf16.mxu0 %v4597_v53 }
  0xc6   :  { %3459 = vmatpush3.bf16.msra.mxu1 %v4625_v60 }
  0xc7   :  { %823 = vmatpush1.bf16.msra.mxu0 %v4605_v55  ;;  %3460 = vmatprep.subr.bf16.mxu1 %v5565_v43 }
  0xc8   :  { %824 = vmatprep.subr.bf16.mxu0 %v4610_v56 }
  0xca   :  { %3461 = vmatpush3.bf16.msra.mxu1 %v4635_v62 }
  0xcb   :  { %825 = vmatpush1.bf16.msra.mxu0 %v4617_v58  ;;  %3462 = vmatprep.subr.bf16.mxu1 %v5565_v43 }
  0xcc   :  { %921 = vmatprep.subr.bf16.mxu0 %v4552_v26 }
  0xce   :  { %3463 = vmatpush3.bf16.msra.mxu1 %v4642_v63 }
  0xcf   :  { %3468 = vmatprep.subr.bf16.mxu1 %v5565_v43 }
 0x14e   :  { %v397_v5 = vpop.f32.mrf.mxu0 }
 0x14f   :  { %v398_v9 = vadd.f32 %v397_v5, %v223_v8 }
 0x150   :  { %v399_v7 = vpop.f32.mrf.mxu0 }
 0x151   :  { %v3422_v19 = vpop.f32.mrf.mxu1 }
 0x152   :  { %v401_v10 = vpop.f32.mrf.mxu0  ;;  %v4704_v21 = vadd.f32 %v3422_v19, %v4697_v15 }
 0x153   :  { %v4691_v12 = vadd.f32 %v401_v10, %v223_v8  ;;  %v470_v23 = vpop.f32.mrf.mxu1 }
 0x154   :  { %v403_v13 = vpop.f32.mrf.mxu0 }
 0x155   :  { %v4693_v14 = vadd.f32 %v403_v13, %v227_v11  ;;  %v3423_v27 = vpop.f32.mrf.mxu1 }
 0x156   :  { %v407_v16 = vpop.f32.mrf.mxu0  ;;  %v4711_v32 = vadd.f32 %v3423_v27, %v4697_v15 }
 0x157   :  { %v4699_v17 = vadd.f32 %v407_v16, %v223_v8  ;;  %v473_v36 = vpop.f32.mrf.mxu1 }
 0x158   :  { %v409_v18 = vpop.f32.mrf.mxu0  ;;  %v4716_v39 = vadd.f32 %v473_v36, %v4697_v15 }
 0x159   :  { %v4701_v20 = vadd.f32 %v409_v18, %v227_v11  ;;  %v3426_v47 = vpop.f32.mrf.mxu1 }
 0x15a   :  { %v411_v22 = vpop.f32.mrf.mxu0  ;;  %v4721_v52 = vadd.f32 %v3426_v47, %v4697_v15 }
 0x15b   :  { %v4706_v24 = vadd.f32 %v411_v22, %v223_v8  ;;  %v486_v1 = vpop.f32.mrf.mxu1 }
 0x15c   :  { %v413_v25 = vpop.f32.mrf.mxu0  ;;  %5570 = vst [vmem:[#allocation30_spill] sm:$0xff] %v4721_v52  ;;  %v4726_v10 = vadd.f32 %v486_v1, %v4697_v15 }
 0x15d   :  { %v4708_v31 = vadd.f32 %v413_v25, %v227_v11  ;;  %v3427_v16 = vpop.f32.mrf.mxu1 }
 0x15e   :  { %v417_v33 = vpop.f32.mrf.mxu0  ;;  %v4731_v19 = vadd.f32 %v3427_v16, %v4697_v15 }
 0x15f   :  { %v4713_v38 = vadd.f32 %v417_v33, %v223_v8  ;;  %v489_v25 = vpop.f32.mrf.mxu1 }
 0x160   :  { %v419_v44 = vpop.f32.mrf.mxu0  ;;  %5571 = vst [vmem:[#allocation31_spill] sm:$0xff] %v4731_v19  ;;  %v4736_v33 = vadd.f32 %v489_v25, %v4697_v15 }
 0x161   :  { %v4718_v48 = vadd.f32 %v419_v44, %v227_v11 }
 0x162   :  { %v421_v61 = vpop.f32.mrf.mxu0 }
 0x163   :  { %v4723_v4 = vadd.f32 %v421_v61, %v223_v8 }
 0x164   :  { %v423_v13 = vpop.f32.mrf.mxu0 }
 0x165   :  { %v4728_v18 = vadd.f32 %v423_v13, %v227_v11 }
 0x166   :  { %v427_v22 = vpop.f32.mrf.mxu0 }
 0x167   :  { %v4733_v27 = vadd.f32 %v427_v22, %v223_v8  ;;  %v400_v22 = vadd.f32 %v399_v7, %v227_v11 }
 0x168   :  { %v429_v36 = vpop.f32.mrf.mxu0 }
 0x169   :  { %5572 = vst [vmem:[#allocation32_spill] sm:$0xff] %v4733_v27  ;;  %v4738_v44 = vadd.f32 %v429_v36, %v227_v11 }
 0x16a   :  { %v431_v47 = vpop.f32.mrf.mxu0 }
 0x16b   :  { %5573 = vst [vmem:[#allocation33_spill] sm:$0xff] %v4738_v44  ;;  %v4740_v61 = vadd.f32 %v431_v47, %v223_v8 }
 0x16c   :  { %v433_v1 = vpop.f32.mrf.mxu0 }
 0x16d   :  { %5574 = vst [vmem:[#allocation34_spill] sm:$0xff] %v4740_v61  ;;  %v4742_v13 = vadd.f32 %v433_v1, %v227_v11 }
 0x16e   :  { %v686_v6 = vpop.f32.mrf.mxu0 }
 0x16f   :  { %v781_v16 = vadd.f32 %v686_v6, %v398_v9  ;;  %v4747_v6 = vld [vmem:[%s5550_s6] ss:$0 sm:$0xff] }
 0x170   :  { %v688_v3 = vpop.f32.mrf.mxu0 }
 0x171   :  { %v3137_v0 = vmul.f32 -1.442695, %v781_v16  ;;  %v788_v25 = vadd.f32 %v688_v3, %v400_v22  ;;  %v775_v19 = vpop.f32.mrf.mxu1  ;;  %v471_v3 = vadd.f32 %v470_v23, %v4697_v15  ;;  %v5575_v15 = vmov 0.0  }
 0x172   :  { %v690_v43 = vpop.f32.mrf.mxu0  ;;  %v5576_v23 = vmov 0  }
 0x173   :  { %3955 = vpow2.f32 %v3137_v0  ;;  %v3138_v52 = vmul.f32 -1.442695, %v788_v25  ;;  %v3446_v36 = vpop.f32.mrf.mxu1  ;;  %v776_v0 = vadd.f32 %v4747_v6, %v775_v19 }
 0x174   :  { %v691_v2 = vpop.f32.mrf.mxu0 }
 0x175   :  { %v778_v44 = vpop.f32.mrf.mxu1  ;;  %3957 = vpow2.f32 %v3138_v52 }
 0x177   :  { %v3447_v47 = vpop.f32.mrf.mxu1 }
 0x180   :  { %v3956_v61 = vpop.eup %3955 }
 0x181   :  { %v785_v27 = vadd.f32 1.0, %v3956_v61 }
 0x182   :  { %v3958_v5 = vpop.eup %3957 }
 0x183   :  { %3959 = vrcp.f32 %v785_v27  ;;  %v792_v43 = vadd.f32 1.0, %v3958_v5 }
 0x185   :  { %3961 = vrcp.f32 %v792_v43 }
 0x190   :  { %v3960_v2 = vpop.eup %3959 }
 0x191   :  { %v795_v7 = vmul.f32 %v3960_v2, %v776_v0 }
 0x192   :  { %v3962_v9 = vpop.eup %3961 }
 0x193   :  { %v796_v8 = vadd.f32 %v795_v7, %v471_v3  ;;  %v798_v11 = vsub.f32 1.0, %v3962_v9  ;;  %v800_v44 = vmul.f32 %v3962_v9, %v4619_v59 }
 0x195   :  { %3963 = vtanh.f32 %v796_v8 }
 0x1a2   :  { %v3964_v52 = vpop.eup %3963 }
 0x1a3   :  { %v799_v27 = vmul.f32 %v3964_v52, %v798_v11 }
 0x1a5   :  { %v4752_v61 = vadd.f32 %v800_v44, %v799_v27 }
 0x1a7   :  { %v809_v1 = vpack.c.bf16 %v4752_v61, %v4752_v61 }
 0x1a9   :  { %843 = vmatmul.mubr.bf16.vlgmr.msra.gmra.mxu0 %v809_v1  ;;  %3465 = vmatmul.mubr.bf16.vlgmr.msra.gmra.mxu1 %v809_v1 }
 0x1aa   :  { %922 = vmatpush1.bf16.msra.mxu0 %v4554_v28  ;;  %3469 = vmatpush3.bf16.msra.mxu1 %v4572_v40 }
 0x1ab   :  { %923 = vmatprep.subr.bf16.mxu0 %v4557_v29  ;;  %3470 = vmatprep.subr.bf16.mxu1 %v5575_v15 }
 0x1ac   :  { %953 = vmatprep.mubr.bf16.mxu0 %v5576_v23  ;;  %3484 = vmatprep.mubr.msk.bf16.mxu1 %vm4414_vm0, %v5575_v15 }
 0x1ae   :  { %924 = vmatpush1.bf16.msra.mxu0 %v4559_v30  ;;  %3471 = vmatpush3.bf16.msra.mxu1 %v4581_v45 }
 0x1af   :  { %925 = vmatprep.subr.bf16.mxu0 %v4564_v34  ;;  %3472 = vmatprep.subr.bf16.mxu1 %v5575_v15 }
 0x1b2   :  { %926 = vmatpush1.bf16.msra.mxu0 %v4566_v35  ;;  %3473 = vmatpush3.bf16.msra.mxu1 %v4591_v50 }
 0x1b3   :  { %927 = vmatprep.subr.bf16.mxu0 %v4568_v37  ;;  %3474 = vmatprep.subr.bf16.mxu1 %v5575_v15 }
 0x1b6   :  { %928 = vmatpush1.bf16.msra.mxu0 %v4574_v41  ;;  %3475 = vmatpush3.bf16.msra.mxu1 %v4602_v54 }
 0x1b7   :  { %929 = vmatprep.subr.bf16.mxu0 %v4576_v42  ;;  %3476 = vmatprep.subr.bf16.mxu1 %v5575_v15 }
 0x1ba   :  { %930 = vmatpush1.bf16.msra.mxu0 %v4584_v46  ;;  %3477 = vmatpush3.bf16.msra.mxu1 %v4614_v57 }
 0x1bb   :  { %931 = vmatprep.subr.bf16.mxu0 %v4587_v49  ;;  %3478 = vmatprep.subr.bf16.mxu1 %v5575_v15 }
 0x1be   :  { %932 = vmatpush1.bf16.msra.mxu0 %v4594_v51  ;;  %3479 = vmatpush3.bf16.msra.mxu1 %v4625_v60 }
 0x1bf   :  { %933 = vmatprep.subr.bf16.mxu0 %v4597_v53  ;;  %3480 = vmatprep.subr.bf16.mxu1 %v5575_v15 }
 0x1c2   :  { %934 = vmatpush1.bf16.msra.mxu0 %v4605_v55  ;;  %3481 = vmatpush3.bf16.msra.mxu1 %v4635_v62 }
 0x1c3   :  { %935 = vmatprep.subr.bf16.mxu0 %v4610_v56  ;;  %3482 = vmatprep.subr.bf16.mxu1 %v5575_v15 }
 0x1c6   :  { %936 = vmatpush1.bf16.msra.mxu0 %v4617_v58  ;;  %3483 = vmatpush3.bf16.msra.mxu1 %v4642_v63 }
 0x1c7   :  { %1032 = vmatprep.subr.bf16.mxu0 %v4552_v26  ;;  %3488 = vmatprep.subr.bf16.mxu1 %v5575_v15 }
 0x269   :  { %v844_v59 = vpop.f32.mrf.mxu0  ;;  %v885_v19 = vpop.f32.mrf.mxu1 }
 0x26a   :  { %v891_v16 = vadd.f32 %v844_v59, %v4691_v12  ;;  %v886_v52 = vadd.f32 %v4747_v6, %v885_v19 }
 0x26b   :  { %v846_v22 = vpop.f32.mrf.mxu0  ;;  %v3466_v25 = vpop.f32.mrf.mxu1 }
 0x26c   :  { %v3139_v36 = vmul.f32 -1.442695, %v891_v16  ;;  %v898_v2 = vadd.f32 %v846_v22, %v4693_v14 }
 0x26d   :  { %v848_v47 = vpop.f32.mrf.mxu0  ;;  %v888_v5 = vpop.f32.mrf.mxu1 }
 0x26e   :  { %3965 = vpow2.f32 %v3139_v36  ;;  %v3140_v3 = vmul.f32 -1.442695, %v898_v2 }
 0x26f   :  { %v849_v43 = vpop.f32.mrf.mxu0  ;;  %v3467_v0 = vpop.f32.mrf.mxu1 }
 0x270   :  { %3967 = vpow2.f32 %v3140_v3 }
 0x27b   :  { %v3966_v7 = vpop.eup %3965 }
 0x27c   :  { %v895_v8 = vadd.f32 1.0, %v3966_v7 }
 0x27d   :  { %v3968_v9 = vpop.eup %3967 }
 0x27e   :  { %3969 = vrcp.f32 %v895_v8  ;;  %v902_v11 = vadd.f32 1.0, %v3968_v9 }
 0x280   :  { %3971 = vrcp.f32 %v902_v11 }
 0x28b   :  { %v3970_v12 = vpop.eup %3969 }
 0x28c   :  { %v905_v27 = vmul.f32 %v3970_v12, %v886_v52 }
 0x28d   :  { %v3972_v1 = vpop.eup %3971 }
 0x28e   :  { %v906_v44 = vadd.f32 %v905_v27, %v4716_v39  ;;  %v908_v59 = vsub.f32 1.0, %v3972_v1  ;;  %v910_v14 = vmul.f32 %v3972_v1, %v4752_v61 }
 0x290   :  { %3973 = vtanh.f32 %v906_v44 }
 0x29d   :  { %v3974_v16 = vpop.eup %3973 }
 0x29e   :  { %v909_v25 = vmul.f32 %v3974_v16, %v908_v59 }
 0x2a0   :  { %v4796_v22 = vadd.f32 %v910_v14, %v909_v25 }
 0x2a2   :  { %v920_v36 = vpack.c.bf16 %v4796_v22, %v4796_v22 }
 0x2a4   :  { %954 = vmatmul.mubr.bf16.vlgmr.msra.gmra.mxu0 %v920_v36  ;;  %3485 = vmatmul.mubr.bf16.vlgmr.msra.gmra.mxu1 %v920_v36 }
 0x2a5   :  { %1033 = vmatpush1.bf16.msra.mxu0 %v4554_v28  ;;  %3489 = vmatpush3.bf16.msra.mxu1 %v4572_v40 }
 0x2a6   :  { %1034 = vmatprep.subr.bf16.mxu0 %v4557_v29  ;;  %3490 = vmatprep.subr.bf16.mxu1 %v5575_v15 }
 0x2a7   :  { %1064 = vmatprep.mubr.bf16.mxu0 %v5576_v23  ;;  %3504 = vmatprep.mubr.msk.bf16.mxu1 %vm4414_vm0, %v5575_v15 }
 0x2a9   :  { %1035 = vmatpush1.bf16.msra.mxu0 %v4559_v30  ;;  %3491 = vmatpush3.bf16.msra.mxu1 %v4581_v45 }
 0x2aa   :  { %1036 = vmatprep.subr.bf16.mxu0 %v4564_v34  ;;  %3492 = vmatprep.subr.bf16.mxu1 %v5575_v15 }
 0x2ad   :  { %1037 = vmatpush1.bf16.msra.mxu0 %v4566_v35  ;;  %3493 = vmatpush3.bf16.msra.mxu1 %v4591_v50 }
 0x2ae   :  { %1038 = vmatprep.subr.bf16.mxu0 %v4568_v37  ;;  %3494 = vmatprep.subr.bf16.mxu1 %v5575_v15 }
 0x2b1   :  { %1039 = vmatpush1.bf16.msra.mxu0 %v4574_v41  ;;  %3495 = vmatpush3.bf16.msra.mxu1 %v4602_v54 }
 0x2b2   :  { %1040 = vmatprep.subr.bf16.mxu0 %v4576_v42  ;;  %3496 = vmatprep.subr.bf16.mxu1 %v5575_v15 }
 0x2b5   :  { %1041 = vmatpush1.bf16.msra.mxu0 %v4584_v46  ;;  %3497 = vmatpush3.bf16.msra.mxu1 %v4614_v57 }
 0x2b6   :  { %1042 = vmatprep.subr.bf16.mxu0 %v4587_v49  ;;  %3498 = vmatprep.subr.bf16.mxu1 %v5575_v15 }
 0x2b9   :  { %1043 = vmatpush1.bf16.msra.mxu0 %v4594_v51  ;;  %3499 = vmatpush3.bf16.msra.mxu1 %v4625_v60 }
 0x2ba   :  { %1044 = vmatprep.subr.bf16.mxu0 %v4597_v53  ;;  %3500 = vmatprep.subr.bf16.mxu1 %v5575_v15 }
 0x2bd   :  { %1045 = vmatpush1.bf16.msra.mxu0 %v4605_v55  ;;  %3501 = vmatpush3.bf16.msra.mxu1 %v4635_v62 }
 0x2be   :  { %1046 = vmatprep.subr.bf16.mxu0 %v4610_v56  ;;  %3502 = vmatprep.subr.bf16.mxu1 %v5575_v15 }
 0x2c1   :  { %1047 = vmatpush1.bf16.msra.mxu0 %v4617_v58  ;;  %3503 = vmatpush3.bf16.msra.mxu1 %v4642_v63 }
 0x2c2   :  { %1143 = vmatprep.subr.bf16.mxu0 %v4552_v26  ;;  %3508 = vmatprep.subr.bf16.mxu1 %v5575_v15 }
 0x364   :  { %v955_v39 = vpop.f32.mrf.mxu0  ;;  %v996_v19 = vpop.f32.mrf.mxu1 }
 0x365   :  { %v1002_v47 = vadd.f32 %v955_v39, %v4699_v17  ;;  %v997_v1 = vadd.f32 %v4747_v6, %v996_v19 }
 0x366   :  { %v957_v5 = vpop.f32.mrf.mxu0  ;;  %v3486_v43 = vpop.f32.mrf.mxu1 }
 0x367   :  { %v3141_v0 = vmul.f32 -1.442695, %v1002_v47  ;;  %v1009_v9 = vadd.f32 %v957_v5, %v4701_v20 }
 0x368   :  { %v959_v2 = vpop.f32.mrf.mxu0  ;;  %v999_v3 = vpop.f32.mrf.mxu1 }
 0x369   :  { %3975 = vpow2.f32 %v3141_v0  ;;  %v3142_v11 = vmul.f32 -1.442695, %v1009_v9 }
 0x36a   :  { %v960_v7 = vpop.f32.mrf.mxu0  ;;  %v3487_v8 = vpop.f32.mrf.mxu1 }
 0x36b   :  { %3977 = vpow2.f32 %v3142_v11 }
 0x376   :  { %v3976_v52 = vpop.eup %3975 }
 0x377   :  { %v1006_v12 = vadd.f32 1.0, %v3976_v52 }
 0x378   :  { %v3978_v27 = vpop.eup %3977 }
 0x379   :  { %3979 = vrcp.f32 %v1006_v12  ;;  %v1013_v44 = vadd.f32 1.0, %v3978_v27 }
 0x37b   :  { %3981 = vrcp.f32 %v1013_v44 }
 0x386   :  { %v3980_v17 = vpop.eup %3979 }
 0x387   :  { %v1016_v59 = vmul.f32 %v3980_v17, %v997_v1 }
 0x388   :  { %v3982_v25 = vpop.eup %3981 }
 0x389   :  { %v1017_v16 = vadd.f32 %v1016_v59, %v4704_v21  ;;  %v1019_v14 = vsub.f32 1.0, %v3982_v25  ;;  %v1021_v20 = vmul.f32 %v3982_v25, %v4796_v22 }
 0x38b   :  { %3983 = vtanh.f32 %v1017_v16 }
 0x398   :  { %v3984_v36 = vpop.eup %3983 }
 0x399   :  { %v1020_v39 = vmul.f32 %v3984_v36, %v1019_v14 }
 0x39b   :  { %v4840_v47 = vadd.f32 %v1021_v20, %v1020_v39 }
 0x39d   :  { %v1031_v5 = vpack.c.bf16 %v4840_v47, %v4840_v47 }
 0x39f   :  { %1065 = vmatmul.mubr.bf16.vlgmr.msra.gmra.mxu0 %v1031_v5  ;;  %3505 = vmatmul.mubr.bf16.vlgmr.msra.gmra.mxu1 %v1031_v5 }
 0x3a0   :  { %1144 = vmatpush1.bf16.msra.mxu0 %v4554_v28  ;;  %3509 = vmatpush3.bf16.msra.mxu1 %v4572_v40 }
 0x3a1   :  { %1145 = vmatprep.subr.bf16.mxu0 %v4557_v29  ;;  %3510 = vmatprep.subr.bf16.mxu1 %v5575_v15 }
 0x3a2   :  { %1175 = vmatprep.mubr.bf16.mxu0 %v5576_v23  ;;  %3524 = vmatprep.mubr.msk.bf16.mxu1 %vm4414_vm0, %v5575_v15 }
 0x3a4   :  { %1146 = vmatpush1.bf16.msra.mxu0 %v4559_v30  ;;  %3511 = vmatpush3.bf16.msra.mxu1 %v4581_v45 }
 0x3a5   :  { %1147 = vmatprep.subr.bf16.mxu0 %v4564_v34  ;;  %3512 = vmatprep.subr.bf16.mxu1 %v5575_v15 }
 0x3a8   :  { %1148 = vmatpush1.bf16.msra.mxu0 %v4566_v35  ;;  %3513 = vmatpush3.bf16.msra.mxu1 %v4591_v50 }
 0x3a9   :  { %1149 = vmatprep.subr.bf16.mxu0 %v4568_v37  ;;  %3514 = vmatprep.subr.bf16.mxu1 %v5575_v15 }
 0x3ac   :  { %1150 = vmatpush1.bf16.msra.mxu0 %v4574_v41  ;;  %3515 = vmatpush3.bf16.msra.mxu1 %v4602_v54 }
 0x3ad   :  { %1151 = vmatprep.subr.bf16.mxu0 %v4576_v42  ;;  %3516 = vmatprep.subr.bf16.mxu1 %v5575_v15 }
 0x3b0   :  { %1152 = vmatpush1.bf16.msra.mxu0 %v4584_v46  ;;  %3517 = vmatpush3.bf16.msra.mxu1 %v4614_v57 }
 0x3b1   :  { %1153 = vmatprep.subr.bf16.mxu0 %v4587_v49  ;;  %3518 = vmatprep.subr.bf16.mxu1 %v5575_v15 }
 0x3b4   :  { %1154 = vmatpush1.bf16.msra.mxu0 %v4594_v51  ;;  %3519 = vmatpush3.bf16.msra.mxu1 %v4625_v60 }
 0x3b5   :  { %1155 = vmatprep.subr.bf16.mxu0 %v4597_v53  ;;  %3520 = vmatprep.subr.bf16.mxu1 %v5575_v15 }
 0x3b8   :  { %1156 = vmatpush1.bf16.msra.mxu0 %v4605_v55  ;;  %3521 = vmatpush3.bf16.msra.mxu1 %v4635_v62 }
 0x3b9   :  { %1157 = vmatprep.subr.bf16.mxu0 %v4610_v56  ;;  %3522 = vmatprep.subr.bf16.mxu1 %v5575_v15 }
 0x3bc   :  { %1158 = vmatpush1.bf16.msra.mxu0 %v4617_v58  ;;  %3523 = vmatpush3.bf16.msra.mxu1 %v4642_v63 }
 0x3bd   :  { %1254 = vmatprep.subr.bf16.mxu0 %v4552_v26  ;;  %3528 = vmatprep.subr.bf16.mxu1 %v5575_v15 }
 0x45f   :  { %v1066_v21 = vpop.f32.mrf.mxu0  ;;  %v1107_v19 = vpop.f32.mrf.mxu1 }
 0x460   :  { %v1113_v43 = vadd.f32 %v1066_v21, %v4706_v24  ;;  %v1108_v17 = vadd.f32 %v4747_v6, %v1107_v19 }
 0x461   :  { %v1068_v0 = vpop.f32.mrf.mxu0  ;;  %v3506_v2 = vpop.f32.mrf.mxu1 }
 0x462   :  { %v3143_v3 = vmul.f32 -1.442695, %v1113_v43  ;;  %v1120_v52 = vadd.f32 %v1068_v0, %v4708_v31 }
 0x463   :  { %v1070_v7 = vpop.f32.mrf.mxu0  ;;  %v1110_v8 = vpop.f32.mrf.mxu1 }
 0x464   :  { %3985 = vpow2.f32 %v3143_v3  ;;  %v3144_v12 = vmul.f32 -1.442695, %v1120_v52 }
 0x465   :  { %v1071_v9 = vpop.f32.mrf.mxu0  ;;  %v3507_v11 = vpop.f32.mrf.mxu1 }
 0x466   :  { %3987 = vpow2.f32 %v3144_v12 }
 0x471   :  { %v3986_v27 = vpop.eup %3985 }
 0x472   :  { %v1117_v26 = vadd.f32 1.0, %v3986_v27 }
 0x473   :  { %v3988_v44 = vpop.eup %3987 }
 0x474   :  { %3989 = vrcp.f32 %v1117_v26  ;;  %v1124_v1 = vadd.f32 1.0, %v3988_v44  ;;  %v4934_v26 = vld [vmem:[#allocation10 + $0x70] ss:$8 sps:$4 sm:$0xff]  }
 0x475   :  { %v4937_v44 = vld [vmem:[#allocation12 + $0x38] sm:$0xff]  }
 0x476   :  { %3991 = vrcp.f32 %v1124_v1  ;;  %v4947_v1 = vld [vmem:[#allocation10 + $0x60] ss:$8 sps:$4 sm:$0xff]  }
 0x481   :  { %v3990_v24 = vpop.eup %3989 }
 0x482   :  { %v1127_v59 = vmul.f32 %v3990_v24, %v1108_v17  ;;  %v4950_v17 = vld [vmem:[#allocation12 + $0x30] sm:$0xff]  }
 0x483   :  { %v3992_v25 = vpop.eup %3991  ;;  %v4953_v24 = vld [vmem:[#allocation10 + $0x54] ss:$8 sps:$4 sm:$0xff]  }
 0x484   :  { %v1128_v16 = vadd.f32 %v1127_v59, %v4711_v32  ;;  %v1130_v14 = vsub.f32 1.0, %v3992_v25  ;;  %v1132_v31 = vmul.f32 %v3992_v25, %v4840_v47  ;;  %v4957_v59 = vld [vmem:[#allocation10 + $0x50] ss:$8 sps:$4 sm:$0xff]   ;;  %v4965_v25 = vld [vmem:[#allocation10 + $0x40] ss:$8 sps:$4 sm:$0xff]  }
 0x486   :  { %3993 = vtanh.f32 %v1128_v16  ;;  %v4961_v16 = vld [vmem:[#allocation10 + $0x44] ss:$8 sps:$4 sm:$0xff]  }
 0x493   :  { %v3994_v36 = vpop.eup %3993 }
 0x494   :  { %v1131_v39 = vmul.f32 %v3994_v36, %v1130_v14  ;;  %v4969_v14 = vld [vmem:[#allocation10 + $0x34] ss:$8 sps:$4 sm:$0xff]   ;;  %v4973_v36 = vld [vmem:[#allocation10 + $0x30] ss:$8 sps:$4 sm:$0xff]  }
 0x496   :  { %v4884_v20 = vadd.f32 %v1132_v31, %v1131_v39 }
 0x498   :  { %v1142_v5 = vpack.c.bf16 %v4884_v20, %v4884_v20 }
 0x49a   :  { %1176 = vmatmul.mubr.bf16.vlgmr.msra.gmra.mxu0 %v1142_v5  ;;  %3525 = vmatmul.mubr.bf16.vlgmr.msra.gmra.mxu1 %v1142_v5 }
 0x49b   :  { %1255 = vmatpush1.bf16.msra.mxu0 %v4554_v28  ;;  %3529 = vmatpush3.bf16.msra.mxu1 %v4572_v40  ;;  %v4921_v28 = vld [vmem:[#allocation10 + $0x74] ss:$8 sps:$4 sm:$0xff]  }
 0x49c   :  { %1256 = vmatprep.subr.bf16.mxu0 %v4557_v29  ;;  %3530 = vmatprep.subr.bf16.mxu1 %v5575_v15 }
 0x49d   :  { %1286 = vmatprep.mubr.bf16.mxu0 %v5576_v23  ;;  %3544 = vmatprep.mubr.msk.bf16.mxu1 %vm4414_vm0, %v5575_v15 }
 0x49f   :  { %1257 = vmatpush1.bf16.msra.mxu0 %v4559_v30  ;;  %3531 = vmatpush3.bf16.msra.mxu1 %v4581_v45 }
 0x4a0   :  { %1258 = vmatprep.subr.bf16.mxu0 %v4564_v34  ;;  %3532 = vmatprep.subr.bf16.mxu1 %v5575_v15 }
 0x4a3   :  { %1259 = vmatpush1.bf16.msra.mxu0 %v4566_v35  ;;  %3533 = vmatpush3.bf16.msra.mxu1 %v4591_v50 }
 0x4a4   :  { %1260 = vmatprep.subr.bf16.mxu0 %v4568_v37  ;;  %3534 = vmatprep.subr.bf16.mxu1 %v5575_v15 }
 0x4a7   :  { %1261 = vmatpush1.bf16.msra.mxu0 %v4574_v41  ;;  %3535 = vmatpush3.bf16.msra.mxu1 %v4602_v54 }
 0x4a8   :  { %1262 = vmatprep.subr.bf16.mxu0 %v4576_v42  ;;  %3536 = vmatprep.subr.bf16.mxu1 %v5575_v15 }
 0x4ab   :  { %1263 = vmatpush1.bf16.msra.mxu0 %v4584_v46  ;;  %3537 = vmatpush3.bf16.msra.mxu1 %v4614_v57 }
 0x4ac   :  { %1264 = vmatprep.subr.bf16.mxu0 %v4587_v49  ;;  %3538 = vmatprep.subr.bf16.mxu1 %v5575_v15 }
 0x4af   :  { %1265 = vmatpush1.bf16.msra.mxu0 %v4594_v51  ;;  %3539 = vmatpush3.bf16.msra.mxu1 %v4625_v60 }
 0x4b0   :  { %1266 = vmatprep.subr.bf16.mxu0 %v4597_v53  ;;  %3540 = vmatprep.subr.bf16.mxu1 %v5575_v15 }
 0x4b3   :  { %1267 = vmatpush1.bf16.msra.mxu0 %v4605_v55  ;;  %3541 = vmatpush3.bf16.msra.mxu1 %v4635_v62 }
 0x4b4   :  { %1268 = vmatprep.subr.bf16.mxu0 %v4610_v56  ;;  %3542 = vmatprep.subr.bf16.mxu1 %v5575_v15 }
 0x4b7   :  { %1269 = vmatpush1.bf16.msra.mxu0 %v4617_v58  ;;  %3543 = vmatpush3.bf16.msra.mxu1 %v4642_v63 }
 0x4b8   :  { %1365 = vmatprep.subr.bf16.mxu0 %v4921_v28  ;;  %3548 = vmatprep.subr.bf16.mxu1 %v5575_v15 }
 0x55a   :  { %v1177_v29 = vpop.f32.mrf.mxu0  ;;  %v1218_v30 = vpop.f32.mrf.mxu1 }
 0x55b   :  { %v1224_v34 = vadd.f32 %v1177_v29, %v4713_v38  ;;  %v1219_v2 = vadd.f32 %v4747_v6, %v1218_v30 }
 0x55c   :  { %v1179_v35 = vpop.f32.mrf.mxu0  ;;  %v3526_v37 = vpop.f32.mrf.mxu1 }
 0x55d   :  { %v3145_v40 = vmul.f32 -1.442695, %v1224_v34  ;;  %v1231_v49 = vadd.f32 %v1179_v35, %v4718_v48 }
 0x55e   :  { %v1181_v41 = vpop.f32.mrf.mxu0  ;;  %v1221_v42 = vpop.f32.mrf.mxu1 }
 0x55f   :  { %3995 = vpow2.f32 %v3145_v40  ;;  %v3146_v32 = vmul.f32 -1.442695, %v1231_v49 }
 0x560   :  { %v1182_v45 = vpop.f32.mrf.mxu0  ;;  %v3527_v46 = vpop.f32.mrf.mxu1 }
 0x561   :  { %3997 = vpow2.f32 %v3146_v32 }
 0x56c   :  { %v3996_v21 = vpop.eup %3995 }
 0x56d   :  { %v1228_v19 = vadd.f32 1.0, %v3996_v21 }
 0x56e   :  { %v3998_v43 = vpop.eup %3997 }
 0x56f   :  { %3999 = vrcp.f32 %v1228_v19  ;;  %v1235_v0 = vadd.f32 1.0, %v3998_v43  ;;  %v4129_v19 = vld [vmem:[#allocation12 + $0x20] sm:$0xff]   ;;  %v4130_v43 = vld [vmem:[#allocation12 + $0x18] sm:$0xff]  }
 0x571   :  { %4001 = vrcp.f32 %v1235_v0  ;;  %v4131_v0 = vld [vmem:[#allocation10 + $0x20] ss:$8 sps:$4 sm:$0xff]  }
 0x57c   :  { %v4000_v38 = vpop.eup %3999 }
 0x57d   :  { %v1238_v3 = vmul.f32 %v4000_v38, %v1219_v2  ;;  %v4132_v2 = vld [vmem:[#allocation12 + $0x10] sm:$0xff]  }
 0x57e   :  { %v4002_v8 = vpop.eup %4001  ;;  %v4133_v38 = vld [vmem:[#allocation10 + $0x14] ss:$8 sps:$4 sm:$0xff]  }
 0x57f   :  { %v1239_v7 = vadd.f32 %v1238_v3, %v4726_v10  ;;  %v1241_v9 = vsub.f32 1.0, %v4002_v8  ;;  %v1243_v48 = vmul.f32 %v4002_v8, %v4884_v20  ;;  %v4940_v10 = vld [vmem:[#allocation10 + $0x64] ss:$8 sps:$4 sm:$0xff]   ;;  %v4134_v3 = vld [vmem:[#allocation10 + $0x10] ss:$8 sps:$4 sm:$0xff]  }
 0x580   :  { %v4136_v8 = vld [vmem:[#allocation10] ss:$8 sps:$4 sm:$0xff]  }
 0x581   :  { %4003 = vtanh.f32 %v1239_v7  ;;  %v4135_v7 = vld [vmem:[#allocation10 + $0x4] ss:$8 sps:$4 sm:$0xff]  }
 0x58e   :  { %v4004_v11 = vpop.eup %4003 }
 0x58f   :  { %v1242_v52 = vmul.f32 %v4004_v11, %v1241_v9  ;;  %v3893_v9 = vld [vmem:[#allocation13 + $0xac] ss:$12 sps:$4 sm:$0xff]   ;;  %v3894_v11 = vld [vmem:[#allocation13 + $0xb0] ss:$12 sps:$4 sm:$0xff]  }
 0x591   :  { %v4930_v12 = vadd.f32 %v1243_v48, %v1242_v52 }
 0x593   :  { %v1253_v27 = vpack.c.bf16 %v4930_v12, %v4930_v12 }
 0x595   :  { %1287 = vmatmul.mubr.bf16.vlgmr.msra.gmra.mxu0 %v1253_v27  ;;  %3545 = vmatmul.mubr.bf16.vlgmr.msra.gmra.mxu1 %v1253_v27  ;;  %v5577_v27 = vld [vmem:[#allocation32_spill] sm:$0xff] }
 0x596   :  { %1366 = vmatpush1.bf16.msra.mxu0 %v4934_v26  ;;  %3549 = vmatpush3.bf16.msra.mxu1 %v4937_v44 }
 0x597   :  { %1367 = vmatprep.subr.bf16.mxu0 %v4940_v10  ;;  %3550 = vmatprep.subr.bf16.mxu1 %v5575_v15 }
 0x598   :  { %1397 = vmatprep.mubr.bf16.mxu0 %v5576_v23  ;;  %3564 = vmatprep.mubr.msk.bf16.mxu1 %vm4414_vm0, %v5575_v15 }
 0x59a   :  { %1368 = vmatpush1.bf16.msra.mxu0 %v4947_v1  ;;  %3551 = vmatpush3.bf16.msra.mxu1 %v4950_v17 }
 0x59b   :  { %1369 = vmatprep.subr.bf16.mxu0 %v4953_v24  ;;  %3552 = vmatprep.subr.bf16.mxu1 %v5575_v15 }
 0x59e   :  { %1370 = vmatpush1.bf16.msra.mxu0 %v4957_v59  ;;  %3553 = vmatpush3.bf16.msra.mxu1 %v4591_v50  ;;  %v4977_v50 = vld [vmem:[#allocation10 + $0x24] ss:$8 sps:$4 sm:$0xff]  }
 0x59f   :  { %1371 = vmatprep.subr.bf16.mxu0 %v4961_v16  ;;  %3554 = vmatprep.subr.bf16.mxu1 %v5575_v15 }
 0x5a2   :  { %1372 = vmatpush1.bf16.msra.mxu0 %v4965_v25  ;;  %3555 = vmatpush3.bf16.msra.mxu1 %v4602_v54 }
 0x5a3   :  { %1373 = vmatprep.subr.bf16.mxu0 %v4969_v14  ;;  %3556 = vmatprep.subr.bf16.mxu1 %v5575_v15 }
 0x5a6   :  { %1374 = vmatpush1.bf16.msra.mxu0 %v4973_v36  ;;  %3557 = vmatpush3.bf16.msra.mxu1 %v4614_v57 }
 0x5a7   :  { %1375 = vmatprep.subr.bf16.mxu0 %v4977_v50  ;;  %3558 = vmatprep.subr.bf16.mxu1 %v5575_v15 }
 0x5aa   :  { %1376 = vmatpush1.bf16.msra.mxu0 %v4594_v51  ;;  %3559 = vmatpush3.bf16.msra.mxu1 %v4625_v60 }
 0x5ab   :  { %1377 = vmatprep.subr.bf16.mxu0 %v4597_v53  ;;  %3560 = vmatprep.subr.bf16.mxu1 %v5575_v15 }
 0x5ae   :  { %1378 = vmatpush1.bf16.msra.mxu0 %v4605_v55  ;;  %3561 = vmatpush3.bf16.msra.mxu1 %v4635_v62 }
 0x5af   :  { %1379 = vmatprep.subr.bf16.mxu0 %v4610_v56  ;;  %3562 = vmatprep.subr.bf16.mxu1 %v5575_v15 }
 0x5b2   :  { %1380 = vmatpush1.bf16.msra.mxu0 %v4617_v58  ;;  %3563 = vmatpush3.bf16.msra.mxu1 %v4642_v63 }
 0x5b3   :  { %1476 = vmatprep.subr.bf16.mxu0 %v4921_v28  ;;  %3568 = vmatprep.subr.bf16.mxu1 %v5575_v15 }
 0x655   :  { %v1288_v51 = vpop.f32.mrf.mxu0  ;;  %v1329_v53 = vpop.f32.mrf.mxu1 }
 0x656   :  { %v1335_v54 = vadd.f32 %v1288_v51, %v4723_v4  ;;  %v1330_v37 = vadd.f32 %v4747_v6, %v1329_v53 }
 0x657   :  { %v1290_v57 = vpop.f32.mrf.mxu0  ;;  %v3546_v55 = vpop.f32.mrf.mxu1 }
 0x658   :  { %v3147_v60 = vmul.f32 -1.442695, %v1335_v54  ;;  %v1342_v58 = vadd.f32 %v1290_v57, %v4728_v18  ;;  %v5579_v55 = vld [vmem:[#allocation30_spill] sm:$0xff] }
 0x659   :  { %v1292_v39 = vpop.f32.mrf.mxu0  ;;  %v1332_v31 = vpop.f32.mrf.mxu1 }
 0x65a   :  { %4005 = vpow2.f32 %v3147_v60  ;;  %v3148_v29 = vmul.f32 -1.442695, %v1342_v58 }
 0x65b   :  { %v1293_v56 = vpop.f32.mrf.mxu0  ;;  %v3547_v5 = vpop.f32.mrf.mxu1 }
 0x65c   :  { %4007 = vpow2.f32 %v3148_v29 }
 0x667   :  { %v4006_v30 = vpop.eup %4005 }
 0x668   :  { %v1339_v28 = vadd.f32 1.0, %v4006_v30  ;;  %v3891_v30 = vld [vmem:[#allocation13 + $0xa8] ss:$12 sps:$4 sm:$0xff]  }
 0x669   :  { %v4008_v34 = vpop.eup %4007 }
 0x66a   :  { %4009 = vrcp.f32 %v1339_v28  ;;  %v1346_v35 = vadd.f32 1.0, %v4008_v34  ;;  %v3897_v34 = vld [vmem:[#allocation13 + $0x94] ss:$12 sps:$4 sm:$0xff]  }
 0x66c   :  { %4011 = vrcp.f32 %v1346_v35  ;;  %v1589_v35 = vpack.c.bf16 %v4796_v22, %v4752_v61  ;;  %v3903_v61 = vld [vmem:[#allocation13 + $0x60] ss:$12 sps:$4 sm:$0xff]  }
 0x66d   :  { %v3909_v22 = vld [vmem:[#allocation13 + $0x4c] ss:$12 sps:$4 sm:$0xff]  }
 0x677   :  { %v4010_v4 = vpop.eup %4009 }
 0x678   :  { %v1349_v40 = vmul.f32 %v4010_v4, %v1330_v37  ;;  %v3895_v37 = vld [vmem:[#allocation13 + $0x90] ss:$12 sps:$4 sm:$0xff]  }
 0x679   :  { %v4012_v42 = vpop.eup %4011  ;;  %v3901_v4 = vld [vmem:[#allocation13 + $0x7c] ss:$12 sps:$4 sm:$0xff]  }
 0x67a   :  { %v1350_v41 = vadd.f32 %v1349_v40, %v4736_v33  ;;  %v1352_v45 = vsub.f32 1.0, %v4012_v42  ;;  %v1354_v18 = vmul.f32 %v4012_v42, %v4930_v12  ;;  %v4128_v33 = vld [vmem:[#allocation12 + $0x28] sm:$0xff]   ;;  %v3905_v42 = vld [vmem:[#allocation13 + $0x64] ss:$12 sps:$4 sm:$0xff]  }
 0x67b   :  { %v3902_v40 = vld [vmem:[#allocation13 + $0x80] ss:$12 sps:$4 sm:$0xff]  }
 0x67c   :  { %4013 = vtanh.f32 %v1350_v41  ;;  %v3899_v41 = vld [vmem:[#allocation13 + $0x78] ss:$12 sps:$4 sm:$0xff]  }
 0x689   :  { %v4014_v46 = vpop.eup %4013 }
 0x68a   :  { %v1353_v49 = vmul.f32 %v4014_v46, %v1352_v45  ;;  %v3906_v45 = vld [vmem:[#allocation13 + $0x68] ss:$12 sps:$4 sm:$0xff]   ;;  %v3910_v46 = vld [vmem:[#allocation13 + $0x50] ss:$12 sps:$4 sm:$0xff]  }
 0x68c   :  { %v4998_v32 = vadd.f32 %v1354_v18, %v1353_v49  ;;  %v3907_v49 = vld [vmem:[#allocation13 + $0x48] ss:$12 sps:$4 sm:$0xff]  }
 0x68d   :  { %v3913_v18 = vld [vmem:[#allocation13 + $0x34] ss:$12 sps:$4 sm:$0xff]  }
 0x68e   :  { %v1364_v21 = vpack.c.bf16 %v4998_v32, %v4998_v32 }
 0x690   :  { %1398 = vmatmul.mubr.bf16.vlgmr.msra.gmra.mxu0 %v1364_v21  ;;  %3565 = vmatmul.mubr.bf16.vlgmr.msra.gmra.mxu1 %v1364_v21  ;;  %v3914_v21 = vld [vmem:[#allocation13 + $0x38] ss:$12 sps:$4 sm:$0xff]  }
 0x691   :  { %1477 = vmatpush1.bf16.msra.mxu0 %v4934_v26  ;;  %3569 = vmatpush3.bf16.msra.mxu1 %v4937_v44 }
 0x692   :  { %1478 = vmatprep.subr.bf16.mxu0 %v4940_v10  ;;  %3570 = vmatprep.subr.bf16.mxu1 %v5575_v15 }
 0x693   :  { %1508 = vmatprep.mubr.bf16.mxu0 %v5576_v23  ;;  %3584 = vmatprep.mubr.msk.bf16.mxu1 %vm4414_vm0, %v5575_v15 }
 0x695   :  { %1479 = vmatpush1.bf16.msra.mxu0 %v4947_v1  ;;  %3571 = vmatpush3.bf16.msra.mxu1 %v4950_v17 }
 0x696   :  { %1480 = vmatprep.subr.bf16.mxu0 %v4953_v24  ;;  %3572 = vmatprep.subr.bf16.mxu1 %v5575_v15 }
 0x699   :  { %1481 = vmatpush1.bf16.msra.mxu0 %v4957_v59  ;;  %3573 = vmatpush3.bf16.msra.mxu1 %v4128_v33  ;;  %v3911_v33 = vld [vmem:[#allocation13 + $0x30] ss:$12 sps:$4 sm:$0xff]  }
 0x69a   :  { %1482 = vmatprep.subr.bf16.mxu0 %v4961_v16  ;;  %3574 = vmatprep.subr.bf16.mxu1 %v5575_v15  ;;  %v5578_v16 = vld [vmem:[#allocation33_spill] sm:$0xff] }
 0x69d   :  { %1483 = vmatpush1.bf16.msra.mxu0 %v4965_v25  ;;  %3575 = vmatpush3.bf16.msra.mxu1 %v4129_v19  ;;  %v3917_v19 = vld [vmem:[#allocation13 + $0x1c] ss:$12 sps:$4 sm:$0xff]  }
 0x69e   :  { %1484 = vmatprep.subr.bf16.mxu0 %v4969_v14  ;;  %3576 = vmatprep.subr.bf16.mxu1 %v5575_v15 }
 0x6a1   :  { %1485 = vmatpush1.bf16.msra.mxu0 %v4973_v36  ;;  %3577 = vmatpush3.bf16.msra.mxu1 %v4130_v43  ;;  %v3918_v43 = vld [vmem:[#allocation13 + $0x20] ss:$12 sps:$4 sm:$0xff]  }
 0x6a2   :  { %1486 = vmatprep.subr.bf16.mxu0 %v4977_v50  ;;  %3578 = vmatprep.subr.bf16.mxu1 %v5575_v15 }
 0x6a5   :  { %1487 = vmatpush1.bf16.msra.mxu0 %v4131_v0  ;;  %3579 = vmatpush3.bf16.msra.mxu1 %v4132_v2  ;;  %v3915_v0 = vld [vmem:[#allocation13 + $0x18] ss:$12 sps:$4 sm:$0xff]  }
 0x6a6   :  { %1488 = vmatprep.subr.bf16.mxu0 %v4133_v38  ;;  %3580 = vmatprep.subr.bf16.mxu1 %v5575_v15  ;;  %v3921_v2 = vld [vmem:[#allocation13 + $0x4] ss:$12 sps:$4 sm:$0xff]   ;;  %v3922_v38 = vld [vmem:[#allocation13 + $0x8] ss:$12 sps:$4 sm:$0xff]  }
 0x6a9   :  { %1489 = vmatpush1.bf16.msra.mxu0 %v4134_v3  ;;  %3581 = vmatpush3.bf16.msra.mxu1 %v4635_v62  ;;  %v3919_v3 = vld [vmem:[#allocation13] ss:$12 sps:$4 sm:$0xff]  }
 0x6aa   :  { %1490 = vmatprep.subr.bf16.mxu0 %v4135_v7  ;;  %3582 = vmatprep.subr.bf16.mxu1 %v5575_v15  ;;  %v1590_v7 = vpack.c.bf16 %v4884_v20, %v4840_v47  ;;  %v5052_v47 = vld [vmem:[#allocation15 + $0x64] ss:$8 sps:$4 sm:$0xff]   ;;  %v5054_v20 = vld [vmem:[#allocation15 + $0x60] ss:$8 sps:$4 sm:$0xff]  }
 0x6ad   :  { %1491 = vmatpush1.bf16.msra.mxu0 %v4136_v8  ;;  %3583 = vmatpush3.bf16.msra.mxu1 %v4642_v63  ;;  %v1591_v8 = vpack.c.bf16 %v4998_v32, %v4930_v12  ;;  %v5058_v12 = vld [vmem:[#allocation15 + $0x54] ss:$8 sps:$4 sm:$0xff]  }
 0x6ae   :  { %1770 = vmatprep.subr.bf16.mxu0 %v3893_v9  ;;  %3588 = vmatprep.subr.bf16.mxu1 %v3894_v11  ;;  %v5046_v9 = vld [vmem:[#allocation15 + $0x74] ss:$8 sps:$4 sm:$0xff]  }
 0x750   :  { %v1399_v52 = vpop.f32.mrf.mxu0  ;;  %v1440_v48 = vpop.f32.mrf.mxu1 }
 0x751   :  { %v1446_v26 = vadd.f32 %v1399_v52, %v5577_v27  ;;  %v1441_v53 = vadd.f32 %v4747_v6, %v1440_v48  ;;  %v3898_v6 = vld [vmem:[#allocation13 + $0x98] ss:$12 sps:$4 sm:$0xff]   ;;  %v5066_v48 = vld [vmem:[#allocation15 + $0x40] ss:$8 sps:$4 sm:$0xff]   ;;  %v5070_v27 = vld [vmem:[#allocation15 + $0x34] ss:$8 sps:$4 sm:$0xff]  }
 0x752   :  { %v1401_v44 = vpop.f32.mrf.mxu0  ;;  %v3566_v10 = vpop.f32.mrf.mxu1  ;;  %v5064_v52 = vld [vmem:[#allocation15 + $0x44] ss:$8 sps:$4 sm:$0xff]  }
 0x753   :  { %v3149_v1 = vmul.f32 -1.442695, %v1446_v26  ;;  %v1453_v25 = vadd.f32 %v1401_v44, %v5578_v16  ;;  %v5072_v26 = vld [vmem:[#allocation15 + $0x30] ss:$8 sps:$4 sm:$0xff]   ;;  %v5076_v44 = vld [vmem:[#allocation15 + $0x24] ss:$8 sps:$4 sm:$0xff]  }
 0x754   :  { %v1403_v62 = vpop.f32.mrf.mxu0  ;;  %v1443_v17 = vpop.f32.mrf.mxu1  ;;  %v5078_v10 = vld [vmem:[#allocation15 + $0x20] ss:$8 sps:$4 sm:$0xff]   ;;  %v5098_v16 = vld [vmem:[#allocation16 + $0x30] sm:$0xff]  }
 0x755   :  { %4015 = vpow2.f32 %v3149_v1  ;;  %v3150_v14 = vmul.f32 -1.442695, %v1453_v25  ;;  %v5082_v1 = vld [vmem:[#allocation15 + $0x14] ss:$8 sps:$4 sm:$0xff]   ;;  %v5084_v62 = vld [vmem:[#allocation15 + $0x10] ss:$8 sps:$4 sm:$0xff]  }
 0x756   :  { %v1404_v24 = vpop.f32.mrf.mxu0  ;;  %v3567_v59 = vpop.f32.mrf.mxu1  ;;  %v5086_v17 = vld [vmem:[#allocation15 + $0x4] ss:$8 sps:$4 sm:$0xff]  }
 0x757   :  { %4017 = vpow2.f32 %v3150_v14  ;;  %v5088_v24 = vld [vmem:[#allocation16 + $0x38] sm:$0xff]   ;;  %v5093_v59 = vld [vmem:[#allocation15] ss:$8 sps:$4 sm:$0xff]  }
 0x758   :  { %v5102_v25 = vld [vmem:[#allocation16 + $0x28] sm:$0xff]   ;;  %v5106_v14 = vld [vmem:[#allocation16 + $0x20] sm:$0xff]  }
 0x762   :  { %v4016_v63 = vpop.eup %4015 }
 0x763   :  { %v1450_v36 = vadd.f32 1.0, %v4016_v63  ;;  %v5110_v63 = vld [vmem:[#allocation16 + $0x18] sm:$0xff]  }
 0x764   :  { %v4018_v50 = vpop.eup %4017 }
 0x765   :  { %4019 = vrcp.f32 %v1450_v36  ;;  %v1457_v51 = vadd.f32 1.0, %v4018_v50  ;;  %v5114_v36 = vld [vmem:[#allocation16 + $0x10] sm:$0xff]   ;;  %v5118_v50 = vld [vmem:[#allocation16 + $0x8] sm:$0xff]  }
 0x767   :  { %4021 = vrcp.f32 %v1457_v51  ;;  %v5122_v51 = vld [vmem:[#allocation16] sm:$0xff]  }
 0x772   :  { %v4020_v54 = vpop.eup %4019 }
 0x773   :  { %v1460_v57 = vmul.f32 %v4020_v54, %v1441_v53 }
 0x774   :  { %v4022_v39 = vpop.eup %4021 }
 0x775   :  { %v1461_v60 = vadd.f32 %v1460_v57, %v5579_v55  ;;  %v1463_v31 = vsub.f32 1.0, %v4022_v39  ;;  %v1465_v58 = vmul.f32 %v4022_v39, %v4998_v32  ;;  %v5060_v32 = vld [vmem:[#allocation15 + $0x50] ss:$8 sps:$4 sm:$0xff]   ;;  %v5580_v57 = vld [vmem:[#allocation34_spill] sm:$0xff] }
 0x777   :  { %4023 = vtanh.f32 %v1461_v60 }
 0x784   :  { %v4024_v56 = vpop.eup %4023 }
 0x785   :  { %v1464_v5 = vmul.f32 %v4024_v56, %v1463_v31 }
 0x787   :  { %v5031_v29 = vadd.f32 %v1465_v58, %v1464_v5 }
 0x789   :  { %v1475_v28 = vpack.c.bf16 %v5031_v29, %v5031_v29 }
 0x78b   :  { %1509 = vmatmul.mubr.bf16.vlgmr.msra.gmra.mxu0 %v1475_v28  ;;  %3585 = vmatmul.mubr.bf16.vlgmr.msra.gmra.mxu1 %v1475_v28 }
 0x78c   :  { %1771 = vmatpush1.bf16.msra.mxu0 %v3891_v30  ;;  %3589 = vmatpush3.bf16.msra.mxu1 %v3894_v11  ;;  %v5048_v11 = vld [vmem:[#allocation15 + $0x70] ss:$8 sps:$4 sm:$0xff]  }
 0x78d   :  { %3604 = vmatprep.mubr.bf16.mxu1 %v1589_v35  ;;  %1772 = vmatprep.subr.bf16.mxu0 %v3897_v34 }
 0x78e   :  { %3590 = vmatprep.subr.bf16.mxu1 %v3898_v6  ;;  %1802 = vmatprep.mubr.bf16.mxu0 %v5576_v23 }
 0x790   :  { %1773 = vmatpush1.bf16.msra.mxu0 %v3895_v37  ;;  %3591 = vmatpush3.bf16.msra.mxu1 %v3898_v6 }
 0x791   :  { %1774 = vmatprep.subr.bf16.mxu0 %v3901_v4  ;;  %3592 = vmatprep.subr.bf16.mxu1 %v3902_v40 }
 0x794   :  { %1775 = vmatpush1.bf16.msra.mxu0 %v3899_v41  ;;  %3593 = vmatpush3.bf16.msra.mxu1 %v3902_v40  ;;  %v4137_v40 = vld [vmem:[%s5550_s6] ss:$0 sm:$0xff] }
 0x795   :  { %1776 = vmatprep.subr.bf16.mxu0 %v3905_v42  ;;  %3594 = vmatprep.subr.bf16.mxu1 %v3906_v45 }
 0x798   :  { %1777 = vmatpush1.bf16.msra.mxu0 %v3903_v61  ;;  %3595 = vmatpush3.bf16.msra.mxu1 %v3906_v45  ;;  %v5581_v61 = vld [vmem:[#allocation31_spill] sm:$0xff] }
 0x799   :  { %1778 = vmatprep.subr.bf16.mxu0 %v3909_v22  ;;  %3596 = vmatprep.subr.bf16.mxu1 %v3910_v46 }
 0x79c   :  { %1779 = vmatpush1.bf16.msra.mxu0 %v3907_v49  ;;  %3597 = vmatpush3.bf16.msra.mxu1 %v3910_v46 }
 0x79d   :  { %1780 = vmatprep.subr.bf16.mxu0 %v3913_v18  ;;  %3598 = vmatprep.subr.bf16.mxu1 %v3914_v21 }
 0x7a0   :  { %1781 = vmatpush1.bf16.msra.mxu0 %v3911_v33  ;;  %3599 = vmatpush3.bf16.msra.mxu1 %v3914_v21 }
 0x7a1   :  { %1782 = vmatprep.subr.bf16.mxu0 %v3917_v19  ;;  %3600 = vmatprep.subr.bf16.mxu1 %v3918_v43 }
 0x7a4   :  { %1783 = vmatpush1.bf16.msra.mxu0 %v3915_v0  ;;  %3601 = vmatpush3.bf16.msra.mxu1 %v3918_v43  ;;  %v5136_v43 = vld [vmem:[#allocation7 + $0x8] sm:$0xff] }
 0x7a5   :  { %1784 = vmatprep.subr.bf16.mxu0 %v3921_v2  ;;  %3602 = vmatprep.subr.bf16.mxu1 %v3922_v38  ;;  %v1976_v0 = vpack.c.bf16 %v5136_v43, %v5136_v43 }
 0x7a8   :  { %1785 = vmatpush1.bf16.msra.mxu0 %v3919_v3  ;;  %3603 = vmatpush3.bf16.msra.mxu1 %v3922_v38 }
 0x7a9   :  { %3612 = vmatprep.subr.bf16.mxu1 %v5575_v15  ;;  %2057 = vmatprep.subr.bf16.mxu0 %v5046_v9 }
 0x7ab   :  { %1803 = vmatmul.mubr.bf16.vlgmr.msra.gmra.mxu0 %v1589_v35  ;;  %3605 = vmatmul.mubr.bf16.vlgmr.msra.gmra.mxu1 %v1590_v7 }
 0x7ac   :  { %3608 = vmatprep.mubr.bf16.mxu1 %v1591_v8  ;;  %1812 = vmatprep.mubr.bf16.mxu0 %v5576_v23 }
 0x7ad   :  { %2058 = vmatpush1.bf16.msra.mxu0 %v5048_v11  ;;  %3613 = vmatpush3.bf16.msra.mxu1 %v5088_v24 }
 0x7ae   :  { %2059 = vmatprep.subr.bf16.mxu0 %v5052_v47  ;;  %3614 = vmatprep.subr.bf16.mxu1 %v5575_v15 }
 0x7b1   :  { %2060 = vmatpush1.bf16.msra.mxu0 %v5054_v20  ;;  %3615 = vmatpush3.bf16.msra.mxu1 %v5098_v16 }
 0x7b2   :  { %2061 = vmatprep.subr.bf16.mxu0 %v5058_v12  ;;  %3616 = vmatprep.subr.bf16.mxu1 %v5575_v15 }
 0x7b3   :  { %1813 = vmatmul.mubr.bf16.gmra.mxu0 %v1590_v7 }
 0x7b4   :  { %1822 = vmatprep.mubr.bf16.mxu0 %v5576_v23 }
 0x7b5   :  { %2062 = vmatpush1.bf16.msra.mxu0 %v5060_v32  ;;  %3617 = vmatpush3.bf16.msra.mxu1 %v5102_v25 }
 0x7b6   :  { %2063 = vmatprep.subr.bf16.mxu0 %v5064_v52  ;;  %3618 = vmatprep.subr.bf16.mxu1 %v5575_v15 }
 0x7b9   :  { %2064 = vmatpush1.bf16.msra.mxu0 %v5066_v48  ;;  %3619 = vmatpush3.bf16.msra.mxu1 %v5106_v14 }
 0x7ba   :  { %2065 = vmatprep.subr.bf16.mxu0 %v5070_v27  ;;  %3620 = vmatprep.subr.bf16.mxu1 %v5575_v15 }
 0x7bb   :  { %1823 = vmatmul.mubr.bf16.gmra.mxu0 %v1591_v8 }
 0x7bc   :  { %1832 = vmatprep.mubr.bf16.mxu0 %v5576_v23 }
 0x7bd   :  { %2066 = vmatpush1.bf16.msra.mxu0 %v5072_v26  ;;  %3621 = vmatpush3.bf16.msra.mxu1 %v5110_v63 }
 0x7be   :  { %2067 = vmatprep.subr.bf16.mxu0 %v5076_v44  ;;  %3622 = vmatprep.subr.bf16.mxu1 %v5575_v15 }
 0x7c1   :  { %2068 = vmatpush1.bf16.msra.mxu0 %v5078_v10  ;;  %3623 = vmatpush3.bf16.msra.mxu1 %v5114_v36 }
 0x7c2   :  { %2069 = vmatprep.subr.bf16.mxu0 %v5082_v1  ;;  %3624 = vmatprep.subr.bf16.mxu1 %v5575_v15 }
 0x7c5   :  { %2070 = vmatpush1.bf16.msra.mxu0 %v5084_v62  ;;  %3625 = vmatpush3.bf16.msra.mxu1 %v5118_v50 }
 0x7c6   :  { %2071 = vmatprep.subr.bf16.mxu0 %v5086_v17  ;;  %3626 = vmatprep.subr.bf16.mxu1 %v5575_v15 }
 0x7c9   :  { %2072 = vmatpush1.bf16.msra.mxu0 %v5093_v59  ;;  %3627 = vmatpush3.bf16.msra.mxu1 %v5122_v51 }
 0x7ca   :  { %2211 = vmatprep.subr.bf16.mxu0 %v5046_v9  ;;  %3632 = vmatprep.subr.bf16.mxu1 %v5575_v15 }
 0x84b   :  { %v1510_v53 = vpop.f32.mrf.mxu0  ;;  %v1551_v54 = vpop.f32.mrf.mxu1 }
 0x84c   :  { %v1557_v55 = vadd.f32 %v1510_v53, %v5580_v57  ;;  %v1552_v41 = vadd.f32 %v4137_v40, %v1551_v54 }
 0x84d   :  { %v1512_v60 = vpop.f32.mrf.mxu0  ;;  %v3586_v39 = vpop.f32.mrf.mxu1 }
 0x84e   :  { %v3151_v31 = vmul.f32 -1.442695, %v1557_v55  ;;  %v1564_v28 = vadd.f32 %v1512_v60, %v4742_v13 }
 0x84f   :  { %v1514_v56 = vpop.f32.mrf.mxu0  ;;  %v1554_v5 = vpop.f32.mrf.mxu1 }
 0x850   :  { %4025 = vpow2.f32 %v3151_v31  ;;  %v3152_v34 = vmul.f32 -1.442695, %v1564_v28 }
 0x851   :  { %v1515_v58 = vpop.f32.mrf.mxu0  ;;  %v3587_v30 = vpop.f32.mrf.mxu1 }
 0x852   :  { %4027 = vpow2.f32 %v3152_v34  ;;  %v1625_v30 = vld [vmem:[%s5554_s10] sm:$0x7] }
 0x85d   :  { %v4026_v6 = vpop.eup %4025 }
 0x85e   :  { %v1561_v35 = vadd.f32 1.0, %v4026_v6 }
 0x85f   :  { %v4028_v37 = vpop.eup %4027 }
 0x860   :  { %4029 = vrcp.f32 %v1561_v35  ;;  %v1568_v4 = vadd.f32 1.0, %v4028_v37  ;;  %v5586_v37 = vld [vmem:[#allocation29_spill] sm:$0xff] }
 0x862   :  { %4031 = vrcp.f32 %v1568_v4  ;;  %v5587_v4 = vsub.s32 0, %v5586_v37 }
 0x864   :  { %v5216_v40 = vrot.slane %v1625_v30, %v5587_v4 }
 0x86b   :  { %v5189_v57 = vpop.f32.mrf.mxu1 }
 0x86d   :  { %v4030_v42 = vpop.eup %4029  ;;  %v1877_v60 = vpop.f32.mrf.mxu1 }
 0x86e   :  { %v1571_v45 = vmul.f32 %v4030_v42, %v1552_v41 }
 0x86f   :  { %v4032_v46 = vpop.eup %4031  ;;  %v5195_v31 = vpop.f32.mrf.mxu1 }
 0x870   :  { %v1572_v22 = vadd.f32 %v1571_v45, %v5581_v61  ;;  %v1574_v13 = vsub.f32 1.0, %v4032_v46  ;;  %v1576_v21 = vmul.f32 %v4032_v46, %v5031_v29 }
 0x871   :  { %v5199_v5 = vpop.f32.mrf.mxu1 }
 0x872   :  { %4033 = vtanh.f32 %v1572_v22 }
 0x87f   :  { %v4034_v49 = vpop.eup %4033 }
 0x880   :  { %v1575_v18 = vmul.f32 %v4034_v49, %v1574_v13  ;;  %v5592_v49 = vsub.s32 1, %v5586_v37 }
 0x882   :  { %v1577_v33 = vadd.f32 %v1576_v21, %v1575_v18  ;;  %v5229_v18 = vrot.slane %v1625_v30, %v5592_v49 }
 0x884   :  { %v1592_v19 = vpack.c.bf16 %v1577_v33, %v5031_v29  ;;  %1580 = vst [vmem:[#allocation20] sm:$0xff] %v1577_v33  ;;  %v1804_v29 = vpop.f32.mrf.mxu0 }
 0x885   :  { %v1805_v22 = vadd.f32 %v1804_v29, %v5216_v40 }
 0x886   :  { %1833 = vmatmul.mubr.bf16.gmra.mxu0 %v1592_v19  ;;  %3609 = vmatmul.mubr.bf16.gmra.mxu1 %v1592_v19  ;;  %v1806_v2 = vpop.f32.mrf.mxu0 }
 0x887   :  { %2089 = vmatprep.mubr.bf16.mxu0 %v5576_v23  ;;  %3628 = vmatprep.mubr.msk.bf16.mxu1 %vm4414_vm0, %v5575_v15 }
 0x888   :  { %v5177_v38 = vpop.f32.mrf.mxu0 }
 0x88a   :  { %v5179_v3 = vpop.f32.mrf.mxu0 }
 0x88c   :  { %v5181_v7 = vpop.f32.mrf.mxu0 }
 0x88e   :  { %2090 = vmatmul.mubr.bf16.vlgmr.msra.gmra.mxu0 %v1976_v0  ;;  %3629 = vmatmul.mubr.bf16.vlgmr.msra.gmra.mxu1 %v1976_v0  ;;  %v5183_v8 = vpop.f32.mrf.mxu0 }
 0x88f   :  { %2212 = vmatpush1.bf16.msra.mxu0 %v5048_v11  ;;  %3633 = vmatpush3.bf16.msra.mxu1 %v5088_v24 }
 0x890   :  { %2213 = vmatprep.subr.bf16.mxu0 %v5052_v47  ;;  %3634 = vmatprep.subr.bf16.mxu1 %v5575_v15  ;;  %v5185_v53 = vpop.f32.mrf.mxu0 }
 0x891   :  { %2243 = vmatprep.mubr.bf16.mxu0 %v5576_v23  ;;  %3648 = vmatprep.mubr.msk.bf16.mxu1 %vm4414_vm0, %v5575_v15 }
 0x892   :  { %v5187_v54 = vpop.f32.mrf.mxu0 }
 0x893   :  { %2214 = vmatpush1.bf16.msra.mxu0 %v5054_v20  ;;  %3635 = vmatpush3.bf16.msra.mxu1 %v5098_v16 }
 0x894   :  { %2215 = vmatprep.subr.bf16.mxu0 %v5058_v12  ;;  %3636 = vmatprep.subr.bf16.mxu1 %v5575_v15  ;;  %v5191_v55 = vpop.f32.mrf.mxu0 }
 0x896   :  { %v5193_v39 = vpop.f32.mrf.mxu0 }
 0x897   :  { %2216 = vmatpush1.bf16.msra.mxu0 %v5060_v32  ;;  %3637 = vmatpush3.bf16.msra.mxu1 %v5102_v25 }
 0x898   :  { %2217 = vmatprep.subr.bf16.mxu0 %v5064_v52  ;;  %3638 = vmatprep.subr.bf16.mxu1 %v5575_v15  ;;  %v5197_v56 = vpop.f32.mrf.mxu0 }
 0x89a   :  { %v5201_v58 = vpop.f32.mrf.mxu0 }
 0x89b   :  { %2218 = vmatpush1.bf16.msra.mxu0 %v5066_v48  ;;  %3639 = vmatpush3.bf16.msra.mxu1 %v5106_v14  ;;  %5582 = vst [vmem:[#allocation32_spill] sm:$0xff] %v5201_v58 }
 0x89c   :  { %2219 = vmatprep.subr.bf16.mxu0 %v5070_v27  ;;  %3640 = vmatprep.subr.bf16.mxu1 %v5575_v15 }
 0x89f   :  { %2220 = vmatpush1.bf16.msra.mxu0 %v5072_v26  ;;  %3641 = vmatpush3.bf16.msra.mxu1 %v5110_v63 }
 0x8a0   :  { %2221 = vmatprep.subr.bf16.mxu0 %v5076_v44  ;;  %3642 = vmatprep.subr.bf16.mxu1 %v5575_v15 }
 0x8a3   :  { %2222 = vmatpush1.bf16.msra.mxu0 %v5078_v10  ;;  %3643 = vmatpush3.bf16.msra.mxu1 %v5114_v36 }
 0x8a4   :  { %2223 = vmatprep.subr.bf16.mxu0 %v5082_v1  ;;  %3644 = vmatprep.subr.bf16.mxu1 %v5575_v15 }
 0x8a7   :  { %2224 = vmatpush1.bf16.msra.mxu0 %v5084_v62  ;;  %3645 = vmatpush3.bf16.msra.mxu1 %v5118_v50 }
 0x8a8   :  { %2225 = vmatprep.subr.bf16.mxu0 %v5086_v17  ;;  %3646 = vmatprep.subr.bf16.mxu1 %v5575_v15 }
 0x8ab   :  { %2226 = vmatpush1.bf16.msra.mxu0 %v5093_v59  ;;  %3647 = vmatpush3.bf16.msra.mxu1 %v5122_v51 }
 0x8ac   :  { %2317 = vmatprep.subr.bf16.mxu0 %v5046_v9  ;;  %3652 = vmatprep.subr.bf16.mxu1 %v5575_v15 }
 0x946   :  { %v5206_v28 = vpop.f32.mrf.mxu0  ;;  %v5208_v34 = vpop.f32.mrf.mxu1 }
 0x947   :  { %5583 = vst [vmem:[#allocation33_spill] sm:$0xff] %v5206_v28  ;;  %5584 = vst [vmem:[#allocation30_spill] sm:$0xff] %v5208_v34 }
 0x948   :  { %v5210_v6 = vpop.f32.mrf.mxu0  ;;  %v5212_v35 = vpop.f32.mrf.mxu1 }
 0x949   :  { %5585 = vst [vmem:[#allocation34_spill] sm:$0xff] %v5210_v6 }
 0x94a   :  { %v5218_v41 = vpop.f32.mrf.mxu0  ;;  %v5220_v42 = vpop.f32.mrf.mxu1 }
 0x94b   :  { %5588 = vst [vmem:[#allocation31_spill] sm:$0xff] %v5218_v41  ;;  %5589 = vst [vmem:[#allocation29_spill] sm:$0xff] %v5220_v42  ;;  %v1807_v42 = vadd.f32 %v1806_v2, %v5229_v18  ;;  %v5593_v2 = vsub.s32 2, %v5586_v37 }
 0x94c   :  { %v5222_v45 = vpop.f32.mrf.mxu0  ;;  %v5224_v61 = vpop.f32.mrf.mxu1 }
 0x94d   :  { %5590 = vst [vmem:[#allocation35_spill] sm:$0xff] %v5222_v45  ;;  %5591 = vst [vmem:[#allocation36_spill] sm:$0xff] %v5224_v61  ;;  %v5240_v49 = vrot.slane %v1625_v30, %v5593_v2  ;;  %v1811_v2 = vadd.f32 %v5179_v3, %v5229_v18 }
 0x94e   :  { %v2091_v46 = vpop.f32.mrf.mxu0  ;;  %v2180_v13 = vpop.f32.mrf.mxu1 }
 0x94f   :  { %v2186_v21 = vadd.f32 %v2091_v46, %v1805_v22  ;;  %v5235_v22 = vld [vmem:[%s5555_s11] ss:$0 sm:$0xff] }
 0x950   :  { %v2093_v33 = vpop.f32.mrf.mxu0  ;;  %v3630_v19 = vpop.f32.mrf.mxu1 }
 0x951   :  { %v3202_v0 = vmul.f32 -1.442695, %v2186_v21  ;;  %v2193_v6 = vadd.f32 %v2093_v33, %v1807_v42 }
 0x952   :  { %v2095_v4 = vpop.f32.mrf.mxu0  ;;  %v2183_v41 = vpop.f32.mrf.mxu1 }
 0x953   :  { %4035 = vpow2.f32 %v3202_v0  ;;  %v3203_v28 = vmul.f32 -1.442695, %v2193_v6  ;;  %v2181_v41 = vadd.f32 %v5235_v22, %v2180_v13  ;;  %v1878_v6 = vadd.f32 %v1877_v60, %v5240_v49 }
 0x954   :  { %v2096_v45 = vpop.f32.mrf.mxu0  ;;  %v3631_v34 = vpop.f32.mrf.mxu1 }
 0x955   :  { %4037 = vpow2.f32 %v3203_v28 }
 0x960   :  { %v4036_v29 = vpop.eup %4035 }
 0x961   :  { %v2190_v61 = vadd.f32 1.0, %v4036_v29 }
 0x962   :  { %v4038_v58 = vpop.eup %4037 }
 0x963   :  { %4039 = vrcp.f32 %v2190_v61  ;;  %v2197_v46 = vadd.f32 1.0, %v4038_v58 }
 0x965   :  { %4041 = vrcp.f32 %v2197_v46 }
 0x970   :  { %v4040_v34 = vpop.eup %4039 }
 0x971   :  { %v2200_v28 = vmul.f32 %v4040_v34, %v2181_v41 }
 0x972   :  { %v4042_v45 = vpop.eup %4041 }
 0x973   :  { %v2201_v42 = vadd.f32 %v2200_v28, %v1878_v6  ;;  %v2203_v61 = vsub.f32 1.0, %v4042_v45  ;;  %v2205_v19 = vmul.f32 %v4042_v45, %v5136_v43  ;;  %v1809_v43 = vadd.f32 %v5177_v38, %v5216_v40 }
 0x975   :  { %4043 = vtanh.f32 %v2201_v42 }
 0x982   :  { %v4044_v21 = vpop.eup %4043 }
 0x983   :  { %v2204_v33 = vmul.f32 %v4044_v21, %v2203_v61 }
 0x985   :  { %v5244_v58 = vadd.f32 %v2205_v19, %v2204_v33 }
 0x987   :  { %v2210_v37 = vpack.c.bf16 %v5244_v58, %v5244_v58 }
 0x989   :  { %2244 = vmatmul.mubr.bf16.vlgmr.msra.gmra.mxu0 %v2210_v37  ;;  %3649 = vmatmul.mubr.bf16.vlgmr.msra.gmra.mxu1 %v2210_v37  ;;  %v1881_v37 = vadd.f32 %v5199_v5, %v5240_v49  ;;  %v1815_v5 = vadd.f32 %v5181_v7, %v5216_v40 }
 0x98a   :  { %2318 = vmatpush1.bf16.msra.mxu0 %v5048_v11  ;;  %3653 = vmatpush3.bf16.msra.mxu1 %v5088_v24 }
 0x98b   :  { %2319 = vmatprep.subr.bf16.mxu0 %v5052_v47  ;;  %3654 = vmatprep.subr.bf16.mxu1 %v5575_v15 }
 0x98c   :  { %2349 = vmatprep.mubr.bf16.mxu0 %v5576_v23  ;;  %3668 = vmatprep.mubr.msk.bf16.mxu1 %vm4414_vm0, %v5575_v15 }
 0x98e   :  { %2320 = vmatpush1.bf16.msra.mxu0 %v5054_v20  ;;  %3655 = vmatpush3.bf16.msra.mxu1 %v5098_v16 }
 0x98f   :  { %2321 = vmatprep.subr.bf16.mxu0 %v5058_v12  ;;  %3656 = vmatprep.subr.bf16.mxu1 %v5575_v15 }
 0x992   :  { %2322 = vmatpush1.bf16.msra.mxu0 %v5060_v32  ;;  %3657 = vmatpush3.bf16.msra.mxu1 %v5102_v25 }
 0x993   :  { %2323 = vmatprep.subr.bf16.mxu0 %v5064_v52  ;;  %3658 = vmatprep.subr.bf16.mxu1 %v5575_v15 }
 0x996   :  { %2324 = vmatpush1.bf16.msra.mxu0 %v5066_v48  ;;  %3659 = vmatpush3.bf16.msra.mxu1 %v5106_v14 }
 0x997   :  { %2325 = vmatprep.subr.bf16.mxu0 %v5070_v27  ;;  %3660 = vmatprep.subr.bf16.mxu1 %v5575_v15 }
 0x99a   :  { %2326 = vmatpush1.bf16.msra.mxu0 %v5072_v26  ;;  %3661 = vmatpush3.bf16.msra.mxu1 %v5110_v63 }
 0x99b   :  { %2327 = vmatprep.subr.bf16.mxu0 %v5076_v44  ;;  %3662 = vmatprep.subr.bf16.mxu1 %v5575_v15 }
 0x99e   :  { %2328 = vmatpush1.bf16.msra.mxu0 %v5078_v10  ;;  %3663 = vmatpush3.bf16.msra.mxu1 %v5114_v36 }
 0x99f   :  { %2329 = vmatprep.subr.bf16.mxu0 %v5082_v1  ;;  %3664 = vmatprep.subr.bf16.mxu1 %v5575_v15 }
 0x9a2   :  { %2330 = vmatpush1.bf16.msra.mxu0 %v5084_v62  ;;  %3665 = vmatpush3.bf16.msra.mxu1 %v5118_v50 }
 0x9a3   :  { %2331 = vmatprep.subr.bf16.mxu0 %v5086_v17  ;;  %3666 = vmatprep.subr.bf16.mxu1 %v5575_v15 }
 0x9a6   :  { %2332 = vmatpush1.bf16.msra.mxu0 %v5093_v59  ;;  %3667 = vmatpush3.bf16.msra.mxu1 %v5122_v51 }
 0x9a7   :  { %2423 = vmatprep.subr.bf16.mxu0 %v5046_v9  ;;  %3672 = vmatprep.subr.bf16.mxu1 %v5575_v15 }
 0xa49   :  { %v2245_v60 = vpop.f32.mrf.mxu0  ;;  %v2286_v30 = vpop.f32.mrf.mxu1 }
 0xa4a   :  { %v2292_v13 = vadd.f32 %v2245_v60, %v1809_v43  ;;  %v2287_v33 = vadd.f32 %v5235_v22, %v2286_v30 }
 0xa4b   :  { %v2247_v0 = vpop.f32.mrf.mxu0  ;;  %v3650_v4 = vpop.f32.mrf.mxu1 }
 0xa4c   :  { %v3204_v29 = vmul.f32 -1.442695, %v2292_v13  ;;  %v2299_v28 = vadd.f32 %v2247_v0, %v1811_v2 }
 0xa4d   :  { %v2249_v46 = vpop.f32.mrf.mxu0  ;;  %v2289_v41 = vpop.f32.mrf.mxu1 }
 0xa4e   :  { %4045 = vpow2.f32 %v3204_v29  ;;  %v3205_v42 = vmul.f32 -1.442695, %v2299_v28 }
 0xa4f   :  { %v2250_v34 = vpop.f32.mrf.mxu0  ;;  %v3651_v6 = vpop.f32.mrf.mxu1 }
 0xa50   :  { %4047 = vpow2.f32 %v3205_v42 }
 0xa5b   :  { %v4046_v45 = vpop.eup %4045 }
 0xa5c   :  { %v2296_v61 = vadd.f32 1.0, %v4046_v45 }
 0xa5d   :  { %v4048_v38 = vpop.eup %4047 }
 0xa5e   :  { %4049 = vrcp.f32 %v2296_v61  ;;  %v2303_v21 = vadd.f32 1.0, %v4048_v38  ;;  %v1817_v61 = vadd.f32 %v5183_v8, %v5229_v18 }
 0xa60   :  { %4051 = vrcp.f32 %v2303_v21 }
 0xa6b   :  { %v4050_v19 = vpop.eup %4049 }
 0xa6c   :  { %v2306_v43 = vmul.f32 %v4050_v19, %v2287_v33 }
 0xa6d   :  { %v4052_v60 = vpop.eup %4051 }
 0xa6e   :  { %v2307_v3 = vadd.f32 %v2306_v43, %v1881_v37  ;;  %v2309_v13 = vsub.f32 1.0, %v4052_v60  ;;  %v2311_v29 = vmul.f32 %v4052_v60, %v5244_v58 }
 0xa70   :  { %4053 = vtanh.f32 %v2307_v3 }
 0xa7d   :  { %v4054_v0 = vpop.eup %4053 }
 0xa7e   :  { %v2310_v4 = vmul.f32 %v4054_v0, %v2309_v13  ;;  %v1886_v0 = vadd.f32 %v5189_v57, %v5240_v49  ;;  %v1819_v57 = vadd.f32 %v5185_v53, %v5216_v40 }
 0xa80   :  { %v5291_v46 = vadd.f32 %v2311_v29, %v2310_v4 }
 0xa82   :  { %v2316_v41 = vpack.c.bf16 %v5291_v46, %v5291_v46 }
 0xa84   :  { %2350 = vmatmul.mubr.bf16.vlgmr.msra.gmra.mxu0 %v2316_v41  ;;  %3669 = vmatmul.mubr.bf16.vlgmr.msra.gmra.mxu1 %v2316_v41 }
 0xa85   :  { %2424 = vmatpush1.bf16.msra.mxu0 %v5048_v11  ;;  %3673 = vmatpush3.bf16.msra.mxu1 %v5088_v24 }
 0xa86   :  { %2425 = vmatprep.subr.bf16.mxu0 %v5052_v47  ;;  %3674 = vmatprep.subr.bf16.mxu1 %v5575_v15 }
 0xa87   :  { %2455 = vmatprep.mubr.bf16.mxu0 %v5576_v23  ;;  %3688 = vmatprep.mubr.msk.bf16.mxu1 %vm4414_vm0, %v5575_v15 }
 0xa89   :  { %2426 = vmatpush1.bf16.msra.mxu0 %v5054_v20  ;;  %3675 = vmatpush3.bf16.msra.mxu1 %v5098_v16 }
 0xa8a   :  { %2427 = vmatprep.subr.bf16.mxu0 %v5058_v12  ;;  %3676 = vmatprep.subr.bf16.mxu1 %v5575_v15 }
 0xa8d   :  { %2428 = vmatpush1.bf16.msra.mxu0 %v5060_v32  ;;  %3677 = vmatpush3.bf16.msra.mxu1 %v5102_v25 }
 0xa8e   :  { %2429 = vmatprep.subr.bf16.mxu0 %v5064_v52  ;;  %3678 = vmatprep.subr.bf16.mxu1 %v5575_v15 }
 0xa91   :  { %2430 = vmatpush1.bf16.msra.mxu0 %v5066_v48  ;;  %3679 = vmatpush3.bf16.msra.mxu1 %v5106_v14 }
 0xa92   :  { %2431 = vmatprep.subr.bf16.mxu0 %v5070_v27  ;;  %3680 = vmatprep.subr.bf16.mxu1 %v5575_v15 }
 0xa95   :  { %2432 = vmatpush1.bf16.msra.mxu0 %v5072_v26  ;;  %3681 = vmatpush3.bf16.msra.mxu1 %v5110_v63 }
 0xa96   :  { %2433 = vmatprep.subr.bf16.mxu0 %v5076_v44  ;;  %3682 = vmatprep.subr.bf16.mxu1 %v5575_v15 }
 0xa99   :  { %2434 = vmatpush1.bf16.msra.mxu0 %v5078_v10  ;;  %3683 = vmatpush3.bf16.msra.mxu1 %v5114_v36 }
 0xa9a   :  { %2435 = vmatprep.subr.bf16.mxu0 %v5082_v1  ;;  %3684 = vmatprep.subr.bf16.mxu1 %v5575_v15 }
 0xa9d   :  { %2436 = vmatpush1.bf16.msra.mxu0 %v5084_v62  ;;  %3685 = vmatpush3.bf16.msra.mxu1 %v5118_v50 }
 0xa9e   :  { %2437 = vmatprep.subr.bf16.mxu0 %v5086_v17  ;;  %3686 = vmatprep.subr.bf16.mxu1 %v5575_v15 }
 0xaa1   :  { %2438 = vmatpush1.bf16.msra.mxu0 %v5093_v59  ;;  %3687 = vmatpush3.bf16.msra.mxu1 %v5122_v51 }
 0xaa2   :  { %2529 = vmatprep.subr.bf16.mxu0 %v5046_v9  ;;  %3692 = vmatprep.subr.bf16.mxu1 %v5575_v15 }
 0xb44   :  { %v2351_v58 = vpop.f32.mrf.mxu0  ;;  %v2392_v30 = vpop.f32.mrf.mxu1 }
 0xb45   :  { %v2398_v2 = vadd.f32 %v2351_v58, %v1815_v5  ;;  %v2393_v60 = vadd.f32 %v5235_v22, %v2392_v30 }
 0xb46   :  { %v2353_v34 = vpop.f32.mrf.mxu0  ;;  %v3670_v6 = vpop.f32.mrf.mxu1 }
 0xb47   :  { %v3206_v28 = vmul.f32 -1.442695, %v2398_v2  ;;  %v2405_v33 = vadd.f32 %v2353_v34, %v1817_v61 }
 0xb48   :  { %v2355_v42 = vpop.f32.mrf.mxu0  ;;  %v2395_v45 = vpop.f32.mrf.mxu1 }
 0xb49   :  { %4055 = vpow2.f32 %v3206_v28  ;;  %v3207_v19 = vmul.f32 -1.442695, %v2405_v33  ;;  %v1821_v33 = vadd.f32 %v5187_v54, %v5229_v18 }
 0xb4a   :  { %v2356_v38 = vpop.f32.mrf.mxu0  ;;  %v3671_v21 = vpop.f32.mrf.mxu1 }
 0xb4b   :  { %4057 = vpow2.f32 %v3207_v19 }
 0xb56   :  { %v4056_v37 = vpop.eup %4055 }
 0xb57   :  { %v2402_v43 = vadd.f32 1.0, %v4056_v37 }
 0xb58   :  { %v4058_v7 = vpop.eup %4057 }
 0xb59   :  { %4059 = vrcp.f32 %v2402_v43  ;;  %v2409_v3 = vadd.f32 1.0, %v4058_v7 }
 0xb5b   :  { %4061 = vrcp.f32 %v2409_v3 }
 0xb66   :  { %v4060_v13 = vpop.eup %4059 }
 0xb67   :  { %v2412_v4 = vmul.f32 %v4060_v13, %v2393_v60 }
 0xb68   :  { %v4062_v29 = vpop.eup %4061 }
 0xb69   :  { %v2413_v8 = vadd.f32 %v2412_v4, %v1886_v0  ;;  %v2415_v41 = vsub.f32 1.0, %v4062_v29  ;;  %v2417_v2 = vmul.f32 %v4062_v29, %v5291_v46 }
 0xb6b   :  { %4063 = vtanh.f32 %v2413_v8  ;;  %v1889_v8 = vadd.f32 %v5195_v31, %v5240_v49  ;;  %v1825_v31 = vadd.f32 %v5191_v55, %v5216_v40 }
 0xb78   :  { %v4064_v5 = vpop.eup %4063 }
 0xb79   :  { %v2416_v58 = vmul.f32 %v4064_v5, %v2415_v41 }
 0xb7b   :  { %v5338_v34 = vadd.f32 %v2417_v2, %v2416_v58 }
 0xb7d   :  { %v2422_v6 = vpack.c.bf16 %v5338_v34, %v5338_v34 }
 0xb7f   :  { %2456 = vmatmul.mubr.bf16.vlgmr.msra.gmra.mxu0 %v2422_v6  ;;  %3689 = vmatmul.mubr.bf16.vlgmr.msra.gmra.mxu1 %v2422_v6 }
 0xb80   :  { %2530 = vmatpush1.bf16.msra.mxu0 %v5048_v11  ;;  %3693 = vmatpush3.bf16.msra.mxu1 %v5088_v24 }
 0xb81   :  { %2531 = vmatprep.subr.bf16.mxu0 %v5052_v47  ;;  %3694 = vmatprep.subr.bf16.mxu1 %v5575_v15 }
 0xb82   :  { %2561 = vmatprep.mubr.bf16.mxu0 %v5576_v23  ;;  %3708 = vmatprep.mubr.msk.bf16.mxu1 %vm4414_vm0, %v5575_v15 }
 0xb84   :  { %2532 = vmatpush1.bf16.msra.mxu0 %v5054_v20  ;;  %3695 = vmatpush3.bf16.msra.mxu1 %v5098_v16 }
 0xb85   :  { %2533 = vmatprep.subr.bf16.mxu0 %v5058_v12  ;;  %3696 = vmatprep.subr.bf16.mxu1 %v5575_v15 }
 0xb88   :  { %2534 = vmatpush1.bf16.msra.mxu0 %v5060_v32  ;;  %3697 = vmatpush3.bf16.msra.mxu1 %v5102_v25 }
 0xb89   :  { %2535 = vmatprep.subr.bf16.mxu0 %v5064_v52  ;;  %3698 = vmatprep.subr.bf16.mxu1 %v5575_v15 }
 0xb8c   :  { %2536 = vmatpush1.bf16.msra.mxu0 %v5066_v48  ;;  %3699 = vmatpush3.bf16.msra.mxu1 %v5106_v14 }
 0xb8d   :  { %2537 = vmatprep.subr.bf16.mxu0 %v5070_v27  ;;  %3700 = vmatprep.subr.bf16.mxu1 %v5575_v15 }
 0xb90   :  { %2538 = vmatpush1.bf16.msra.mxu0 %v5072_v26  ;;  %3701 = vmatpush3.bf16.msra.mxu1 %v5110_v63 }
 0xb91   :  { %2539 = vmatprep.subr.bf16.mxu0 %v5076_v44  ;;  %3702 = vmatprep.subr.bf16.mxu1 %v5575_v15 }
 0xb94   :  { %2540 = vmatpush1.bf16.msra.mxu0 %v5078_v10  ;;  %3703 = vmatpush3.bf16.msra.mxu1 %v5114_v36 }
 0xb95   :  { %2541 = vmatprep.subr.bf16.mxu0 %v5082_v1  ;;  %3704 = vmatprep.subr.bf16.mxu1 %v5575_v15 }
 0xb98   :  { %2542 = vmatpush1.bf16.msra.mxu0 %v5084_v62  ;;  %3705 = vmatpush3.bf16.msra.mxu1 %v5118_v50 }
 0xb99   :  { %2543 = vmatprep.subr.bf16.mxu0 %v5086_v17  ;;  %3706 = vmatprep.subr.bf16.mxu1 %v5575_v15 }
 0xb9c   :  { %2544 = vmatpush1.bf16.msra.mxu0 %v5093_v59  ;;  %3707 = vmatpush3.bf16.msra.mxu1 %v5122_v51 }
 0xb9d   :  { %2635 = vmatprep.subr.bf16.mxu0 %v5046_v9  ;;  %3712 = vmatprep.subr.bf16.mxu1 %v5575_v15 }
 0xc3f   :  { %v2457_v46 = vpop.f32.mrf.mxu0  ;;  %v2498_v30 = vpop.f32.mrf.mxu1 }
 0xc40   :  { %v2504_v28 = vadd.f32 %v2457_v46, %v1819_v57  ;;  %v2499_v0 = vadd.f32 %v5235_v22, %v2498_v30 }
 0xc41   :  { %v2459_v42 = vpop.f32.mrf.mxu0  ;;  %v3690_v45 = vpop.f32.mrf.mxu1 }
 0xc42   :  { %v3208_v61 = vmul.f32 -1.442695, %v2504_v28  ;;  %v2511_v43 = vadd.f32 %v2459_v42, %v1821_v33  ;;  %v1827_v33 = vadd.f32 %v5193_v39, %v5229_v18 }
 0xc43   :  { %v2461_v38 = vpop.f32.mrf.mxu0  ;;  %v2501_v21 = vpop.f32.mrf.mxu1 }
 0xc44   :  { %4065 = vpow2.f32 %v3208_v61  ;;  %v3209_v7 = vmul.f32 -1.442695, %v2511_v43 }
 0xc45   :  { %v2462_v19 = vpop.f32.mrf.mxu0  ;;  %v3691_v37 = vpop.f32.mrf.mxu1 }
 0xc46   :  { %4067 = vpow2.f32 %v3209_v7 }
 0xc51   :  { %v4066_v3 = vpop.eup %4065 }
 0xc52   :  { %v2508_v60 = vadd.f32 1.0, %v4066_v3 }
 0xc53   :  { %v4068_v53 = vpop.eup %4067 }
 0xc54   :  { %4069 = vrcp.f32 %v2508_v60  ;;  %v2515_v13 = vadd.f32 1.0, %v4068_v53 }
 0xc56   :  { %4071 = vrcp.f32 %v2515_v13 }
 0xc61   :  { %v4070_v4 = vpop.eup %4069 }
 0xc62   :  { %v2518_v29 = vmul.f32 %v4070_v4, %v2499_v0  ;;  %v1894_v0 = vadd.f32 %v5212_v35, %v5240_v49 }
 0xc63   :  { %v4072_v41 = vpop.eup %4071 }
 0xc64   :  { %v2519_v54 = vadd.f32 %v2518_v29, %v1889_v8  ;;  %v2521_v5 = vsub.f32 1.0, %v4072_v41  ;;  %v2523_v6 = vmul.f32 %v4072_v41, %v5338_v34 }
 0xc66   :  { %4073 = vtanh.f32 %v2519_v54 }
 0xc73   :  { %v4074_v58 = vpop.eup %4073 }
 0xc74   :  { %v2522_v2 = vmul.f32 %v4074_v58, %v2521_v5 }
 0xc76   :  { %v5385_v57 = vadd.f32 %v2523_v6, %v2522_v2 }
 0xc78   :  { %v2528_v46 = vpack.c.bf16 %v5385_v57, %v5385_v57 }
 0xc7a   :  { %2562 = vmatmul.mubr.bf16.vlgmr.msra.gmra.mxu0 %v2528_v46  ;;  %3709 = vmatmul.mubr.bf16.vlgmr.msra.gmra.mxu1 %v2528_v46 }
 0xc7b   :  { %2636 = vmatpush1.bf16.msra.mxu0 %v5048_v11  ;;  %3713 = vmatpush3.bf16.msra.mxu1 %v5088_v24 }
 0xc7c   :  { %2637 = vmatprep.subr.bf16.mxu0 %v5052_v47  ;;  %3714 = vmatprep.subr.bf16.mxu1 %v5575_v15 }
 0xc7d   :  { %2667 = vmatprep.mubr.bf16.mxu0 %v5576_v23  ;;  %3728 = vmatprep.mubr.msk.bf16.mxu1 %vm4414_vm0, %v5575_v15 }
 0xc7f   :  { %2638 = vmatpush1.bf16.msra.mxu0 %v5054_v20  ;;  %3715 = vmatpush3.bf16.msra.mxu1 %v5098_v16 }
 0xc80   :  { %2639 = vmatprep.subr.bf16.mxu0 %v5058_v12  ;;  %3716 = vmatprep.subr.bf16.mxu1 %v5575_v15 }
 0xc83   :  { %2640 = vmatpush1.bf16.msra.mxu0 %v5060_v32  ;;  %3717 = vmatpush3.bf16.msra.mxu1 %v5102_v25 }
 0xc84   :  { %2641 = vmatprep.subr.bf16.mxu0 %v5064_v52  ;;  %3718 = vmatprep.subr.bf16.mxu1 %v5575_v15 }
 0xc87   :  { %2642 = vmatpush1.bf16.msra.mxu0 %v5066_v48  ;;  %3719 = vmatpush3.bf16.msra.mxu1 %v5106_v14 }
 0xc88   :  { %2643 = vmatprep.subr.bf16.mxu0 %v5070_v27  ;;  %3720 = vmatprep.subr.bf16.mxu1 %v5575_v15 }
 0xc8b   :  { %2644 = vmatpush1.bf16.msra.mxu0 %v5072_v26  ;;  %3721 = vmatpush3.bf16.msra.mxu1 %v5110_v63 }
 0xc8c   :  { %2645 = vmatprep.subr.bf16.mxu0 %v5076_v44  ;;  %3722 = vmatprep.subr.bf16.mxu1 %v5575_v15 }
 0xc8f   :  { %2646 = vmatpush1.bf16.msra.mxu0 %v5078_v10  ;;  %3723 = vmatpush3.bf16.msra.mxu1 %v5114_v36 }
 0xc90   :  { %2647 = vmatprep.subr.bf16.mxu0 %v5082_v1  ;;  %3724 = vmatprep.subr.bf16.mxu1 %v5575_v15 }
 0xc93   :  { %2648 = vmatpush1.bf16.msra.mxu0 %v5084_v62  ;;  %3725 = vmatpush3.bf16.msra.mxu1 %v5118_v50 }
 0xc94   :  { %2649 = vmatprep.subr.bf16.mxu0 %v5086_v17  ;;  %3726 = vmatprep.subr.bf16.mxu1 %v5575_v15 }
 0xc97   :  { %2650 = vmatpush1.bf16.msra.mxu0 %v5093_v59  ;;  %3727 = vmatpush3.bf16.msra.mxu1 %v5122_v51 }
 0xc98   :  { %2741 = vmatprep.subr.bf16.mxu0 %v5046_v9  ;;  %3732 = vmatprep.subr.bf16.mxu1 %v5575_v15 }
 0xd3a   :  { %v2563_v34 = vpop.f32.mrf.mxu0  ;;  %v2604_v30 = vpop.f32.mrf.mxu1 }
 0xd3b   :  { %v2610_v28 = vadd.f32 %v2563_v34, %v1825_v31  ;;  %v2605_v53 = vadd.f32 %v5235_v22, %v2604_v30 }
 0xd3c   :  { %v2565_v42 = vpop.f32.mrf.mxu0  ;;  %v3710_v45 = vpop.f32.mrf.mxu1 }
 0xd3d   :  { %v3210_v61 = vmul.f32 -1.442695, %v2610_v28  ;;  %v2617_v9 = vadd.f32 %v2565_v42, %v1827_v33  ;;  %v4139_v45 = vld [vmem:[#allocation15 + $0x70] ss:$8 sps:$4 sm:$0xff]  }
 0xd3e   :  { %v2567_v38 = vpop.f32.mrf.mxu0  ;;  %v2607_v21 = vpop.f32.mrf.mxu1  ;;  %v4143_v33 = vld [vmem:[#allocation16 + $0x30] sm:$0xff]  }
 0xd3f   :  { %4075 = vpow2.f32 %v3210_v61  ;;  %v3211_v43 = vmul.f32 -1.442695, %v2617_v9  ;;  %v4140_v61 = vld [vmem:[#allocation16 + $0x38] sm:$0xff]   ;;  %v4141_v38 = vld [vmem:[#allocation15 + $0x64] ss:$8 sps:$4 sm:$0xff]  }
 0xd40   :  { %v2568_v19 = vpop.f32.mrf.mxu0  ;;  %v3711_v37 = vpop.f32.mrf.mxu1  ;;  %v4142_v21 = vld [vmem:[#allocation15 + $0x60] ss:$8 sps:$4 sm:$0xff]  }
 0xd41   :  { %4077 = vpow2.f32 %v3211_v43  ;;  %v4144_v19 = vld [vmem:[#allocation15 + $0x54] ss:$8 sps:$4 sm:$0xff]   ;;  %v4145_v37 = vld [vmem:[#allocation15 + $0x50] ss:$8 sps:$4 sm:$0xff]   ;;  %v4146_v9 = vld [vmem:[#allocation16 + $0x28] sm:$0xff]  }
 0xd42   :  { %v4147_v43 = vld [vmem:[#allocation15 + $0x44] ss:$8 sps:$4 sm:$0xff]  }
 0xd4c   :  { %v4076_v7 = vpop.eup %4075 }
 0xd4d   :  { %v2614_v3 = vadd.f32 1.0, %v4076_v7  ;;  %v4149_v7 = vld [vmem:[#allocation16 + $0x20] sm:$0xff]  }
 0xd4e   :  { %v4078_v55 = vpop.eup %4077 }
 0xd4f   :  { %4079 = vrcp.f32 %v2614_v3  ;;  %v2621_v60 = vadd.f32 1.0, %v4078_v55  ;;  %v4150_v3 = vld [vmem:[#allocation15 + $0x34] ss:$8 sps:$4 sm:$0xff]   ;;  %v4151_v55 = vld [vmem:[#allocation15 + $0x30] ss:$8 sps:$4 sm:$0xff]  }
 0xd51   :  { %4081 = vrcp.f32 %v2621_v60  ;;  %v4152_v60 = vld [vmem:[#allocation16 + $0x18] sm:$0xff]  }
 0xd5c   :  { %v4080_v13 = vpop.eup %4079 }
 0xd5d   :  { %v2624_v4 = vmul.f32 %v4080_v13, %v2605_v53  ;;  %v4153_v53 = vld [vmem:[#allocation15 + $0x24] ss:$8 sps:$4 sm:$0xff]   ;;  %v4154_v13 = vld [vmem:[#allocation15 + $0x20] ss:$8 sps:$4 sm:$0xff]  }
 0xd5e   :  { %v4082_v8 = vpop.eup %4081 }
 0xd5f   :  { %v2625_v39 = vadd.f32 %v2624_v4, %v1894_v0  ;;  %v2627_v29 = vsub.f32 1.0, %v4082_v8  ;;  %v2629_v5 = vmul.f32 %v4082_v8, %v5385_v57  ;;  %v4155_v0 = vld [vmem:[#allocation16 + $0x10] sm:$0xff]   ;;  %v4158_v8 = vld [vmem:[#allocation16 + $0x8] sm:$0xff]  }
 0xd60   :  { %v4156_v4 = vld [vmem:[#allocation15 + $0x14] ss:$8 sps:$4 sm:$0xff]  }
 0xd61   :  { %4083 = vtanh.f32 %v2625_v39  ;;  %v4157_v39 = vld [vmem:[#allocation15 + $0x10] ss:$8 sps:$4 sm:$0xff]  }
 0xd6e   :  { %v4084_v54 = vpop.eup %4083 }
 0xd6f   :  { %v2628_v41 = vmul.f32 %v4084_v54, %v2627_v29  ;;  %v4159_v29 = vld [vmem:[#allocation15 + $0x4] ss:$8 sps:$4 sm:$0xff]   ;;  %v4160_v54 = vld [vmem:[#allocation15] ss:$8 sps:$4 sm:$0xff]  }
 0xd71   :  { %v5432_v58 = vadd.f32 %v2629_v5, %v2628_v41  ;;  %v4161_v41 = vld [vmem:[#allocation16] sm:$0xff]   ;;  %v5596_v5 = vld [vmem:[#allocation33_spill] sm:$0xff] }
 0xd73   :  { %v2634_v2 = vpack.c.bf16 %v5432_v58, %v5432_v58 }
 0xd75   :  { %2668 = vmatmul.mubr.bf16.vlgmr.msra.gmra.mxu0 %v2634_v2  ;;  %3729 = vmatmul.mubr.bf16.vlgmr.msra.gmra.mxu1 %v2634_v2 }
 0xd76   :  { %2742 = vmatpush1.bf16.msra.mxu0 %v5048_v11  ;;  %3733 = vmatpush3.bf16.msra.mxu1 %v5088_v24  ;;  %v4138_v11 = vld [vmem:[#allocation15 + $0x74] ss:$8 sps:$4 sm:$0xff]  }
 0xd77   :  { %2743 = vmatprep.subr.bf16.mxu0 %v5052_v47  ;;  %3734 = vmatprep.subr.bf16.mxu1 %v5575_v15  ;;  %v1829_v47 = vadd.f32 %v5197_v56, %v5216_v40 }
 0xd78   :  { %2773 = vmatprep.mubr.bf16.mxu0 %v5576_v23  ;;  %3748 = vmatprep.mubr.msk.bf16.mxu1 %vm4414_vm0, %v5575_v15 }
 0xd7a   :  { %2744 = vmatpush1.bf16.msra.mxu0 %v5054_v20  ;;  %3735 = vmatpush3.bf16.msra.mxu1 %v5098_v16 }
 0xd7b   :  { %2745 = vmatprep.subr.bf16.mxu0 %v5058_v12  ;;  %3736 = vmatprep.subr.bf16.mxu1 %v5575_v15 }
 0xd7e   :  { %2746 = vmatpush1.bf16.msra.mxu0 %v5060_v32  ;;  %3737 = vmatpush3.bf16.msra.mxu1 %v5102_v25 }
 0xd7f   :  { %2747 = vmatprep.subr.bf16.mxu0 %v5064_v52  ;;  %3738 = vmatprep.subr.bf16.mxu1 %v5575_v15 }
 0xd82   :  { %2748 = vmatpush1.bf16.msra.mxu0 %v5066_v48  ;;  %3739 = vmatpush3.bf16.msra.mxu1 %v5106_v14 }
 0xd83   :  { %2749 = vmatprep.subr.bf16.mxu0 %v5070_v27  ;;  %3740 = vmatprep.subr.bf16.mxu1 %v5575_v15 }
 0xd86   :  { %2750 = vmatpush1.bf16.msra.mxu0 %v5072_v26  ;;  %3741 = vmatpush3.bf16.msra.mxu1 %v5110_v63 }
 0xd87   :  { %2751 = vmatprep.subr.bf16.mxu0 %v5076_v44  ;;  %3742 = vmatprep.subr.bf16.mxu1 %v5575_v15 }
 0xd8a   :  { %2752 = vmatpush1.bf16.msra.mxu0 %v5078_v10  ;;  %3743 = vmatpush3.bf16.msra.mxu1 %v5114_v36  ;;  %v5594_v10 = vld [vmem:[#allocation32_spill] sm:$0xff] }
 0xd8b   :  { %2753 = vmatprep.subr.bf16.mxu0 %v5082_v1  ;;  %3744 = vmatprep.subr.bf16.mxu1 %v5575_v15  ;;  %v1831_v1 = vadd.f32 %v5594_v10, %v5229_v18 }
 0xd8e   :  { %2754 = vmatpush1.bf16.msra.mxu0 %v5084_v62  ;;  %3745 = vmatpush3.bf16.msra.mxu1 %v5118_v50 }
 0xd8f   :  { %2755 = vmatprep.subr.bf16.mxu0 %v5086_v17  ;;  %3746 = vmatprep.subr.bf16.mxu1 %v5575_v15 }
 0xd92   :  { %2756 = vmatpush1.bf16.msra.mxu0 %v5093_v59  ;;  %3747 = vmatpush3.bf16.msra.mxu1 %v5122_v51  ;;  %v5595_v51 = vld [vmem:[#allocation36_spill] sm:$0xff] }
 0xd93   :  { %2847 = vmatprep.subr.bf16.mxu0 %v4138_v11  ;;  %3752 = vmatprep.subr.bf16.mxu1 %v5575_v15  ;;  %v1897_v56 = vadd.f32 %v5595_v51, %v5240_v49 }
 0xe35   :  { %v2669_v20 = vpop.f32.mrf.mxu0  ;;  %v2710_v12 = vpop.f32.mrf.mxu1 }
 0xe36   :  { %v2716_v32 = vadd.f32 %v2669_v20, %v1829_v47  ;;  %v2711_v36 = vadd.f32 %v5235_v22, %v2710_v12 }
 0xe37   :  { %v2671_v52 = vpop.f32.mrf.mxu0  ;;  %v3730_v48 = vpop.f32.mrf.mxu1 }
 0xe38   :  { %v3212_v27 = vmul.f32 -1.442695, %v2716_v32  ;;  %v2723_v24 = vadd.f32 %v2671_v52, %v1831_v1 }
 0xe39   :  { %v2673_v26 = vpop.f32.mrf.mxu0  ;;  %v2713_v44 = vpop.f32.mrf.mxu1 }
 0xe3a   :  { %4085 = vpow2.f32 %v3212_v27  ;;  %v3213_v59 = vmul.f32 -1.442695, %v2723_v24  ;;  %v5597_v27 = vld [vmem:[#allocation34_spill] sm:$0xff] }
 0xe3b   :  { %v2674_v62 = vpop.f32.mrf.mxu0  ;;  %v3731_v17 = vpop.f32.mrf.mxu1  ;;  %v1837_v26 = vadd.f32 %v5597_v27, %v5229_v18  ;;  %v5601_v27 = vld [vmem:[#allocation29_spill] sm:$0xff] }
 0xe3c   :  { %4087 = vpow2.f32 %v3213_v59 }
 0xe47   :  { %v4086_v16 = vpop.eup %4085 }
 0xe48   :  { %v2720_v25 = vadd.f32 1.0, %v4086_v16 }
 0xe49   :  { %v4088_v14 = vpop.eup %4087 }
 0xe4a   :  { %4089 = vrcp.f32 %v2720_v25  ;;  %v2727_v63 = vadd.f32 1.0, %v4088_v14 }
 0xe4c   :  { %4091 = vrcp.f32 %v2727_v63  ;;  %v5598_v63 = vld [vmem:[#allocation30_spill] sm:$0xff] }
 0xe57   :  { %v4090_v50 = vpop.eup %4089 }
 0xe58   :  { %v2730_v35 = vmul.f32 %v4090_v50, %v2711_v36  ;;  %v1902_v36 = vadd.f32 %v5598_v63, %v5240_v49 }
 0xe59   :  { %v4092_v57 = vpop.eup %4091 }
 0xe5a   :  { %v2731_v6 = vadd.f32 %v2730_v35, %v1897_v56  ;;  %v2733_v46 = vsub.f32 1.0, %v4092_v57  ;;  %v2735_v30 = vmul.f32 %v4092_v57, %v5432_v58  ;;  %v1835_v58 = vadd.f32 %v5596_v5, %v5216_v40 }
 0xe5c   :  { %4093 = vtanh.f32 %v2731_v6 }
 0xe69   :  { %v4094_v31 = vpop.eup %4093 }
 0xe6a   :  { %v2734_v34 = vmul.f32 %v4094_v31, %v2733_v46 }
 0xe6c   :  { %v5478_v28 = vadd.f32 %v2735_v30, %v2734_v34  ;;  %v2966_v30 = vld [vmem:[#allocation18 + $0x70] sm:$0xff] }
 0xe6e   :  { %v2740_v42 = vpack.c.bf16 %v5478_v28, %v5478_v28 }
 0xe70   :  { %2774 = vmatmul.mubr.bf16.vlgmr.msra.gmra.mxu0 %v2740_v42  ;;  %3749 = vmatmul.mubr.bf16.vlgmr.msra.gmra.mxu1 %v2740_v42  ;;  %v2965_v42 = vld [vmem:[#allocation18 + $0x68] sm:$0xff] }
 0xe71   :  { %2848 = vmatpush1.bf16.msra.mxu0 %v4139_v45  ;;  %3753 = vmatpush3.bf16.msra.mxu1 %v4140_v61  ;;  %v2963_v45 = vld [vmem:[#allocation18 + $0x58] sm:$0xff]  ;;  %v2962_v61 = vld [vmem:[#allocation18 + $0x50] sm:$0xff] }
 0xe72   :  { %2849 = vmatprep.subr.bf16.mxu0 %v4141_v38  ;;  %3754 = vmatprep.subr.bf16.mxu1 %v5575_v15  ;;  %v2961_v38 = vld [vmem:[#allocation18 + $0x48] sm:$0xff] }
 0xe73   :  { %2879 = vmatprep.mubr.bf16.mxu0 %v5576_v23  ;;  %3768 = vmatprep.mubr.msk.bf16.mxu1 %vm4414_vm0, %v5575_v15  ;;  %v4148_v23 = vld [vmem:[#allocation15 + $0x40] ss:$8 sps:$4 sm:$0xff]  }
 0xe75   :  { %2850 = vmatpush1.bf16.msra.mxu0 %v4142_v21  ;;  %3755 = vmatpush3.bf16.msra.mxu1 %v4143_v33  ;;  %v2960_v21 = vld [vmem:[#allocation18 + $0x40] sm:$0xff]  ;;  %v2959_v33 = vld [vmem:[#allocation18 + $0x38] sm:$0xff] }
 0xe76   :  { %2851 = vmatprep.subr.bf16.mxu0 %v4144_v19  ;;  %3756 = vmatprep.subr.bf16.mxu1 %v5575_v15  ;;  %v2958_v19 = vld [vmem:[#allocation18 + $0x30] sm:$0xff] }
 0xe79   :  { %2852 = vmatpush1.bf16.msra.mxu0 %v4145_v37  ;;  %3757 = vmatpush3.bf16.msra.mxu1 %v4146_v9  ;;  %v2957_v37 = vld [vmem:[#allocation18 + $0x28] sm:$0xff]  ;;  %v2956_v9 = vld [vmem:[#allocation18 + $0x20] sm:$0xff] }
 0xe7a   :  { %2853 = vmatprep.subr.bf16.mxu0 %v4147_v43  ;;  %3758 = vmatprep.subr.bf16.mxu1 %v5575_v15  ;;  %v2955_v43 = vld [vmem:[#allocation18 + $0x18] sm:$0xff] }
 0xe7d   :  { %2854 = vmatpush1.bf16.msra.mxu0 %v4148_v23  ;;  %3759 = vmatpush3.bf16.msra.mxu1 %v4149_v7  ;;  %v2954_v23 = vld [vmem:[#allocation18 + $0x10] sm:$0xff]  ;;  %v2953_v7 = vld [vmem:[#allocation18 + $0x8] sm:$0xff] }
 0xe7e   :  { %2855 = vmatprep.subr.bf16.mxu0 %v4150_v3  ;;  %3760 = vmatprep.subr.bf16.mxu1 %v5575_v15  ;;  %v2952_v3 = vld [vmem:[#allocation18] sm:$0xff] }
 0xe81   :  { %2856 = vmatpush1.bf16.msra.mxu0 %v4151_v55  ;;  %3761 = vmatpush3.bf16.msra.mxu1 %v4152_v60  ;;  %v5599_v55 = vld [vmem:[#allocation31_spill] sm:$0xff] }
 0xe82   :  { %2857 = vmatprep.subr.bf16.mxu0 %v4153_v53  ;;  %3762 = vmatprep.subr.bf16.mxu1 %v5575_v15  ;;  %v1839_v60 = vadd.f32 %v5599_v55, %v5216_v40 }
 0xe85   :  { %2858 = vmatpush1.bf16.msra.mxu0 %v4154_v13  ;;  %3763 = vmatpush3.bf16.msra.mxu1 %v4155_v0 }
 0xe86   :  { %2859 = vmatprep.subr.bf16.mxu0 %v4156_v4  ;;  %3764 = vmatprep.subr.bf16.mxu1 %v5575_v15 }
 0xe89   :  { %2860 = vmatpush1.bf16.msra.mxu0 %v4157_v39  ;;  %3765 = vmatpush3.bf16.msra.mxu1 %v4158_v8 }
 0xe8a   :  { %2861 = vmatprep.subr.bf16.mxu0 %v4159_v29  ;;  %3766 = vmatprep.subr.bf16.mxu1 %v5575_v15 }
 0xe8d   :  { %2862 = vmatpush1.bf16.msra.mxu0 %v4160_v54  ;;  %3767 = vmatpush3.bf16.msra.mxu1 %v4161_v41  ;;  %v5600_v41 = vld [vmem:[#allocation35_spill] sm:$0xff] }
 0xe8e   :  { %3772 = vmatprep.subr.mxu0 %v5575_v15  ;;  %v1841_v5 = vadd.f32 %v5600_v41, %v5229_v18  ;;  %v1905_v18 = vadd.f32 %v5601_v27, %v5240_v49 }
 0xf30   :  { %v2775_v2 = vpop.f32.mrf.mxu0  ;;  %v2816_v11 = vpop.f32.mrf.mxu1 }
 0xf31   :  { %v2822_v47 = vadd.f32 %v2775_v2, %v1835_v58  ;;  %v2817_v25 = vadd.f32 %v5235_v22, %v2816_v11  ;;  %v2967_v22 = vld [vmem:[#allocation18 + $0x78] sm:$0xff] }
 0xf32   :  { %v2777_v20 = vpop.f32.mrf.mxu0  ;;  %v3750_v12 = vpop.f32.mrf.mxu1 }
 0xf33   :  { %v3214_v32 = vmul.f32 -1.442695, %v2822_v47  ;;  %v2829_v1 = vadd.f32 %v2777_v20, %v1837_v26 }
 0xf34   :  { %v2779_v52 = vpop.f32.mrf.mxu0  ;;  %v2819_v48 = vpop.f32.mrf.mxu1 }
 0xf35   :  { %4095 = vpow2.f32 %v3214_v32  ;;  %v3215_v62 = vmul.f32 -1.442695, %v2829_v1  ;;  %v4162_v32 = vld [vmem:[%s5555_s11] ss:$0 sm:$0xff]  ;;  %s4415_s11 = smov [#allocation20]  }
 0xf36   :  { %v2780_v44 = vpop.f32.mrf.mxu0  ;;  %v3751_v10 = vpop.f32.mrf.mxu1  ;;  %s3061_s0 = sshll.u32 %s4415_s11, 4  ;;  %s3062_s0 = int_to_ptr.vmem [resolvable:$true] %s3061_s0 }
 0xf37   :  { %4097 = vpow2.f32 %v3215_v62  ;;  %s4343_s25 = scalar_lea.vmem %s3062_s0, 256  ;;  %p4348_p4 = scmp.lt.s32.totalorder %s3062_s0, %s3062_s0 }
 0xf38   :  { %p4344_p3 = scmp.ne.s32.totalorder %s3062_s0, %s4343_s25  ;;  %p4349_p5 = scmp.lt.s32.totalorder %s4343_s25, %s4343_s25 }
 0xf3a   :  { %p4350_p6 = por %p4349_p5, %p4348_p4 }
 0xf3c   :  { %p4351_p7 = pnand %p4350_p6, %p4344_p3 }
 0xf42   :  { %v4096_v17 = vpop.eup %4095 }
 0xf43   :  { %v2826_v24 = vadd.f32 1.0, %v4096_v17 }
 0xf44   :  { %v4098_v59 = vpop.eup %4097 }
 0xf45   :  { %4099 = vrcp.f32 %v2826_v24  ;;  %v2833_v16 = vadd.f32 1.0, %v4098_v59 }
 0xf47   :  { %4101 = vrcp.f32 %v2833_v16 }
 0xf52   :  { %v4100_v14 = vpop.eup %4099 }
 0xf53   :  { %v2836_v50 = vmul.f32 %v4100_v14, %v2817_v25 }
 0xf54   :  { %v4102_v56 = vpop.eup %4101 }
 0xf55   :  { %v2837_v51 = vadd.f32 %v2836_v50, %v1902_v36  ;;  %v2839_v35 = vsub.f32 1.0, %v4102_v56  ;;  %v2841_v46 = vmul.f32 %v4102_v56, %v5478_v28  ;;  %v2964_v28 = vld [vmem:[#allocation18 + $0x60] sm:$0xff] }
 0xf57   :  { %4103 = vtanh.f32 %v2837_v51 }
 0xf64   :  { %v4104_v6 = vpop.eup %4103 }
 0xf65   :  { %v2840_v57 = vmul.f32 %v4104_v6, %v2839_v35 }
 0xf67   :  { %v5501_v31 = vadd.f32 %v2841_v46, %v2840_v57 }
 0xf69   :  { %v2846_v34 = vpack.c.bf16 %v5501_v31, %v5501_v31 }
 0xf6b   :  { %2880 = vmatmul.mubr.bf16.vlgmr.msra.gmra.mxu0 %v2846_v34  ;;  %3769 = vmatmul.mubr.bf16.vlgmr.msra.gmra.mxu1 %v2846_v34 }
 0xf6c   :  { %3804 = vmatprep.mubr.msk.f32.mxu0 %vm4414_vm0, %v5575_v15  ;;  %3773 = vmatpush3.msra.mxu0 %v2967_v22 }
 0xf6d   :  { %3774 = vmatprep.subr.mxu0 %v5575_v15 }
 0xf6e   :  { %3775 = vmatpush3.msra.mxu0 %v2966_v30 }
 0xf6f   :  { %3776 = vmatprep.subr.mxu0 %v5575_v15 }
 0xf70   :  { %3777 = vmatpush3.msra.mxu0 %v2965_v42 }
 0xf71   :  { %3778 = vmatprep.subr.mxu0 %v5575_v15 }
 0xf72   :  { %3779 = vmatpush3.msra.mxu0 %v2964_v28 }
 0xf73   :  { %3780 = vmatprep.subr.mxu0 %v5575_v15 }
 0xf74   :  { %3781 = vmatpush3.msra.mxu0 %v2963_v45 }
 0xf75   :  { %3782 = vmatprep.subr.mxu0 %v5575_v15 }
 0xf76   :  { %3783 = vmatpush3.msra.mxu0 %v2962_v61 }
 0xf77   :  { %3784 = vmatprep.subr.mxu0 %v5575_v15 }
 0xf78   :  { %3785 = vmatpush3.msra.mxu0 %v2961_v38 }
 0xf79   :  { %3786 = vmatprep.subr.mxu0 %v5575_v15 }
 0xf7a   :  { %3787 = vmatpush3.msra.mxu0 %v2960_v21 }
 0xf7b   :  { %3788 = vmatprep.subr.mxu0 %v5575_v15 }
 0xf7c   :  { %3789 = vmatpush3.msra.mxu0 %v2959_v33 }
 0xf7d   :  { %3790 = vmatprep.subr.mxu0 %v5575_v15 }
 0xf7e   :  { %3791 = vmatpush3.msra.mxu0 %v2958_v19 }
 0xf7f   :  { %3792 = vmatprep.subr.mxu0 %v5575_v15 }
 0xf80   :  { %3793 = vmatpush3.msra.mxu0 %v2957_v37 }
 0xf81   :  { %3794 = vmatprep.subr.mxu0 %v5575_v15 }
 0xf82   :  { %3795 = vmatpush3.msra.mxu0 %v2956_v9 }
 0xf83   :  { %3796 = vmatprep.subr.mxu0 %v5575_v15 }
 0xf84   :  { %3797 = vmatpush3.msra.mxu0 %v2955_v43 }
 0xf85   :  { %3798 = vmatprep.subr.mxu0 %v5575_v15 }
 0xf86   :  { %3799 = vmatpush3.msra.mxu0 %v2954_v23 }
 0xf87   :  { %3800 = vmatprep.subr.mxu0 %v5575_v15 }
 0xf88   :  { %3801 = vmatpush3.msra.mxu0 %v2953_v7 }
 0xf89   :  { %3802 = vmatprep.subr.mxu0 %v5575_v15 }
 0xf8a   :  { %3803 = vmatpush3.msra.mxu0 %v2952_v3 }
0x102b   :  { %v2881_v53 = vpop.f32.mrf.mxu0  ;;  %v2922_v13 = vpop.f32.mrf.mxu1 }
0x102c   :  { %v2928_v0 = vadd.f32 %v2881_v53, %v1839_v60  ;;  %v2923_v52 = vadd.f32 %v4162_v32, %v2922_v13 }
0x102d   :  { %v2883_v4 = vpop.f32.mrf.mxu0  ;;  %v3770_v39 = vpop.f32.mrf.mxu1 }
0x102e   :  { %v3216_v8 = vmul.f32 -1.442695, %v2928_v0  ;;  %v2935_v11 = vadd.f32 %v2883_v4, %v1841_v5 }
0x102f   :  { %v2885_v29 = vpop.f32.mrf.mxu0  ;;  %v2925_v54 = vpop.f32.mrf.mxu1 }
0x1030   :  { %4105 = vpow2.f32 %v3216_v8  ;;  %v3217_v15 = vmul.f32 -1.442695, %v2935_v11 }
0x1031   :  { %v2886_v58 = vpop.f32.mrf.mxu0  ;;  %v3771_v2 = vpop.f32.mrf.mxu1 }
0x1032   :  { %4107 = vpow2.f32 %v3217_v15 }
0x103d   :  { %v4106_v47 = vpop.eup %4105 }
0x103e   :  { %v2932_v20 = vadd.f32 1.0, %v4106_v47 }
0x103f   :  { %v4108_v40 = vpop.eup %4107 }
0x1040   :  { %4109 = vrcp.f32 %v2932_v20  ;;  %v2939_v12 = vadd.f32 1.0, %v4108_v40 }
0x1042   :  { %4111 = vrcp.f32 %v2939_v12 }
0x104d   :  { %v4110_v48 = vpop.eup %4109 }
0x104e   :  { %v2942_v26 = vmul.f32 %v4110_v48, %v2923_v52 }
0x104f   :  { %v4112_v10 = vpop.eup %4111 }
0x1050   :  { %v2943_v44 = vadd.f32 %v2942_v26, %v1905_v18  ;;  %v2945_v1 = vsub.f32 1.0, %v4112_v10  ;;  %v2947_v24 = vmul.f32 %v4112_v10, %v5501_v31 }
0x1052   :  { %4113 = vtanh.f32 %v2943_v44 }
0x105f   :  { %v4114_v62 = vpop.eup %4113 }
0x1060   :  { %v2946_v17 = vmul.f32 %v4114_v62, %v2945_v1 }
0x1062   :  { %v2948_v59 = vadd.f32 %v2947_v24, %v2946_v17 }
0x1064   :  { %v2951_v16 = vmax.f32 %v2948_v59, 0.0  ;;  %2950 = vst [vmem:[#allocation20 + $0x8] sm:$0xff] %v2948_v59 }
0x1066   :  { %3805 = vmatmul.mubr.f32.vlgmr.msra.gmra.mxu0 %v2951_v16 }
0x1067   :  { %4354 = shalt.err (!%p4351_p7)
}
0x1068   :  { %3067 = dma.vmem_to_hbm [thread:$0]  %s3062_s0, 256, %s5559_s15, [#allocation21], %s4399_s23, %s4399_s23, %s4400_s24  }
0x1069   :  { %v3218_v49 = vld [vmem:[%s5557_s13] ss:$0 sm:$0xff]  ;;  %s4416_s2 = smov [#allocation19]  }
0x106a   :  { %s3052_s1 = sshll.u32 %s4416_s2, 4  ;;  %s3053_s1 = int_to_ptr.vmem [resolvable:$true] %s3052_s1 }
0x106b   :  { %s4363_s18 = scalar_lea.vmem %s3053_s1, 128  ;;  %p4368_p9 = scmp.lt.s32.totalorder %s3053_s1, %s3053_s1 }
0x106c   :  { %p4364_p8 = scmp.ne.s32.totalorder %s3053_s1, %s4363_s18  ;;  %p4369_p10 = scmp.lt.s32.totalorder %s4363_s18, %s4363_s18 }
0x106e   :  { %p4370_p11 = por %p4369_p10, %p4368_p9 }
0x1070   :  { %p4371_p12 = pnand %p4370_p11, %p4364_p8 }
0x1126   :  { %v3041_v25 = vpop.f32.mrf.mxu0 }
0x1127   :  { %v3042_v14 = vadd.f32 %v3218_v49, %v3041_v25 }
0x1128   :  { %v3806_v63 = vpop.f32.mrf.mxu0 }
0x1129   :  { %3045 = vst [vmem:[#allocation19] sm:$0xff] %v3042_v14 }
0x112a   :  { %4374 = shalt.err (!%p4371_p12)
}
0x112b   :  { %3055 = dma.vmem_to_hbm [thread:$0]  %s3053_s1, 128, %s5558_s14, [#allocation6]  }
0x112c   :  { %4393 = dma.done.wait [#allocation6], 128  }
0x112d   :  { %4394 = vsyncadd [#allocation6], 4294967168 }
0x112e   :  { %4395 = dma.done.wait [#allocation21], 256  }
0x112f   :  { %4396 = vsyncadd [#allocation21], 4294967040 }
0x1130   :  { %3074 = vsyncpa [#allocation5], 1 }
0x1131   :  { %3075 = vsyncpa [#allocation8], 1 }
0x1132   :  { %3076 = vsyncpa [#allocation11], 1 }
0x1133   :  { %3077 = vsyncpa [#allocation14], 1 }
0x1134   :  { %3078 = vsyncpa [#allocation17], 1 }
0x1135   :  { %3079 = vsyncpa [#allocation6], 1 }
0x1136   :  { %3080 = vsyncpa [#allocation21], 1 }

</bundles_post_ra>
